<compile_context>
chip_gen: v7x
topology: tpu7x:2x2x1
jax: 0.10.0
libtpu: 0.0.40
codegen_flags: <defaults>
</compile_context>

<pallas_src>
import math

import jax
import jax.numpy as jnp
from jax.experimental import pallas as pl
from jax.experimental.pallas import tpu as pltpu

# ---------------- small ELECTRA config (synthetic) ----------------
VOCAB_SIZE = 100
MAX_POS = 16
TYPE_VOCAB = 2
HIDDEN = 32
NUM_HEADS = 2
HEAD_DIM = HIDDEN // NUM_HEADS
INTERMEDIATE = 64
NUM_LAYERS = 2
LN_EPS = 1e-12

BATCH = 2
SEQ = 8

# ---------------- packed-slab layout constants ----------------
# embedding slab: all rows are HIDDEN lanes wide; section starts are 8-aligned
WORD_OFF = 0
POS_OFF = 104
TYPE_OFF = POS_OFF + MAX_POS        # 120
EG_OFF = TYPE_OFF + TYPE_VOCAB      # 122  (embeddings LayerNorm gamma)
EB_OFF = EG_OFF + 1                 # 123  (embeddings LayerNorm beta)
EMB_ROWS = 128

# per-layer vector slab rows (lane width = max(HIDDEN, INTERMEDIATE))
ROW_BO, ROW_LN1G, ROW_LN1B, ROW_BI, ROW_BD, ROW_LN2G, ROW_LN2B = range(7)
NUM_VEC = 7
VEC_W = max(HIDDEN, INTERMEDIATE)

# head slab rows
HEAD_B1_ROW = HIDDEN                # out_linear1 bias
HEAD_W2_ROW = HIDDEN + 1            # out_linear2 weight stored as a row
HEAD_B2_ROW = HIDDEN + 2            # out_linear2 bias (lane 0)
HEAD_ROWS = HIDDEN + 3


# ---------------- in-kernel helpers ----------------
def _layernorm(x, gamma, beta, eps=LN_EPS):
    mean = jnp.mean(x, axis=-1, keepdims=True)
    var = jnp.mean((x - mean) ** 2, axis=-1, keepdims=True)
    return (x - mean) * jax.lax.rsqrt(var + eps) * gamma + beta


def _gelu_exact(x):
    # HF ELECTRA default hidden_act = "gelu" (erf form)
    return x * 0.5 * (1.0 + jax.lax.erf(x * (1.0 / math.sqrt(2.0))))


# ---------------- single fused kernel ----------------
def fused_electra_kernel(tok_ref, mask_ref, emb_ref, qkv_ref, wo_ref,
                         wi_ref, wd_ref, vec_ref, head_ref, out_ref):
    H, nh, dh, S = HIDDEN, NUM_HEADS, HEAD_DIM, SEQ
    BS = mask_ref.shape[1]            # B2 * S  (static)
    B2 = BS // S
    scale = 1.0 / math.sqrt(dh)
    bf16, f32 = jnp.bfloat16, jnp.float32

    # ---- embeddings: one-hot MXU "gathers" (no external XLA gather ops) ----
    ids = tok_ref[0]                                       # (BS, 1) int32
    typ = tok_ref[1]                                       # (BS, 1) int32

    word_oh = (ids == jax.lax.broadcasted_iota(jnp.int32, (1, VOCAB_SIZE), 1)).astype(bf16)
    emb = jnp.dot(word_oh, emb_ref[WORD_OFF:WORD_OFF + VOCAB_SIZE, :].astype(bf16),
                  preferred_element_type=f32)              # (BS, H)

    type_oh = (typ == jax.lax.broadcasted_iota(jnp.int32, (1, TYPE_VOCAB), 1)).astype(bf16)
    emb = emb + jnp.dot(type_oh, emb_ref[TYPE_OFF:TYPE_OFF + TYPE_VOCAB, :].astype(bf16),
                        preferred_element_type=f32)

    pos_tbl = emb_ref[POS_OFF:POS_OFF + S, :]              # (S, H) f32
    emb = emb + jnp.broadcast_to(pos_tbl[None], (B2, S, H)).reshape(BS, H)

    x = _layernorm(emb, emb_ref[EG_OFF:EG_OFF + 1, :], emb_ref[EB_OFF:EB_OFF + 1, :])

    # ---- additive attention bias: block-diagonal (same sequence) + key mask ----
    ri = jax.lax.broadcasted_iota(jnp.int32, (BS, BS), 0)
    ci = jax.lax.broadcasted_iota(jnp.int32, (BS, BS), 1)
    same_seq = None
    for b in range(B2):
        lo, hi = b * S, (b + 1) * S
        blk = (ri >= lo) & (ri < hi) & (ci >= lo) & (ci < hi)
        same_seq = blk if same_seq is None else (same_seq | blk)
    key_ok = mask_ref[...] > 0.5                           # (1, BS) — key mask per column
    bias = jnp.where(same_seq & key_ok, 0.0, -1e9).astype(f32)   # (BS, BS)

    # ---- transformer encoder layers (static loop, stacked weights) ----
    for l in range(NUM_LAYERS):
        xb = x.astype(bf16)
        attn = jnp.zeros((BS, H), f32)
        for h in range(nh):
            iq = (l * 3 + 0) * nh + h
            ik = (l * 3 + 1) * nh + h
            iv = (l * 3 + 2) * nh + h
            q = jnp.dot(xb, qkv_ref[iq, 0:H, :].astype(bf16),
                        preferred_element_type=f32) + qkv_ref[iq, H:H + 1, :]
            k = jnp.dot(xb, qkv_ref[ik, 0:H, :].astype(bf16),
                        preferred_element_type=f32) + qkv_ref[ik, H:H + 1, :]
            v = jnp.dot(xb, qkv_ref[iv, 0:H, :].astype(bf16),
                        preferred_element_type=f32) + qkv_ref[iv, H:H + 1, :]

            # (BS, dh) x (BS, dh) -> (BS, BS) scores, contracting the head dim
            s = jax.lax.dot_general(q.astype(bf16), k.astype(bf16),
                                    (((1,), (1,)), ((), ())),
                                    preferred_element_type=f32) * scale + bias
            s = s - jnp.max(s, axis=-1, keepdims=True)     # stable softmax
            p = jnp.exp(s)
            p = p * pl.reciprocal(jnp.sum(p, axis=-1, keepdims=True), approx=True)

            ctx = jnp.dot(p.astype(bf16), v.astype(bf16),
                          preferred_element_type=f32)      # (BS, dh)
            # per-head output projection, accumulated (no concat / reshape)
            attn = attn + jnp.dot(ctx.astype(bf16), wo_ref[l * nh + h].astype(bf16),
                                  preferred_element_type=f32)

        attn = attn + vec_ref[l, ROW_BO:ROW_BO + 1, 0:H]
        y = _layernorm(attn + x,
                       vec_ref[l, ROW_LN1G:ROW_LN1G + 1, 0:H],
                       vec_ref[l, ROW_LN1B:ROW_LN1B + 1, 0:H])

        hmid = jnp.dot(y.astype(bf16), wi_ref[l].astype(bf16),
                       preferred_element_type=f32) + vec_ref[l, ROW_BI:ROW_BI + 1, 0:INTERMEDIATE]
        hmid = _gelu_exact(hmid)
        hout = jnp.dot(hmid.astype(bf16), wd_ref[l].astype(bf16),
                       preferred_element_type=f32) + vec_ref[l, ROW_BD:ROW_BD + 1, 0:H]
        x = _layernorm(hout + y,
                       vec_ref[l, ROW_LN2G:ROW_LN2G + 1, 0:H],
                       vec_ref[l, ROW_LN2B:ROW_LN2B + 1, 0:H])

    # ---- CLS token -> energy head: Linear -> ReLU -> Linear -> tanh ----
    cls = x.reshape(B2, S, H)[:, 0, :]                     # (B2, H)
    hdn = jnp.dot(cls.astype(bf16), head_ref[0:H, :].astype(bf16),
                  preferred_element_type=f32) + head_ref[HEAD_B1_ROW:HEAD_B1_ROW + 1, :]
    hdn = jnp.maximum(hdn, 0.0)
    w2 = head_ref[HEAD_W2_ROW:HEAD_W2_ROW + 1, :]          # (1, H)
    b2 = head_ref[HEAD_B2_ROW:HEAD_B2_ROW + 1, 0:1]        # (1, 1)
    sc = jnp.sum(hdn * w2, axis=-1, keepdims=True) + b2    # (B2, 1)
    out_ref[...] = jnp.tanh(sc)


# ---------------- parameter init (deterministic, synthetic, pre-packed) ----------------
def init_params(key):
    keys = iter(jax.random.split(key, 64))

    def dense(shape):
        return jax.random.normal(next(keys), shape, jnp.float32) * 0.02

    # embedding slab: word / pos / type tables + embeddings LayerNorm gamma & beta
    emb_slab = jnp.zeros((EMB_ROWS, HIDDEN), jnp.float32)
    emb_slab = emb_slab.at[WORD_OFF:WORD_OFF + VOCAB_SIZE].set(dense((VOCAB_SIZE, HIDDEN)))
    emb_slab = emb_slab.at[POS_OFF:POS_OFF + MAX_POS].set(dense((MAX_POS, HIDDEN)))
    emb_slab = emb_slab.at[TYPE_OFF:TYPE_OFF + TYPE_VOCAB].set(dense((TYPE_VOCAB, HIDDEN)))
    emb_slab = emb_slab.at[EG_OFF].set(jnp.ones((HIDDEN,), jnp.float32))
    # EB_OFF row stays zero

    qkv_pieces, wo_pieces, wi_list, wd_list, vec_list = [], [], [], [], []
    for _ in range(NUM_LAYERS):
        for w_full in (dense((HIDDEN, HIDDEN)),    # Wq
                       dense((HIDDEN, HIDDEN)),    # Wk
                       dense((HIDDEN, HIDDEN))):   # Wv
            for h in range(NUM_HEADS):
                piece = jnp.zeros((HIDDEN + 1, HEAD_DIM), jnp.float32)
                piece = piece.at[0:HIDDEN].set(w_full[:, h * HEAD_DIM:(h + 1) * HEAD_DIM])
                # row HIDDEN = per-head bias (zeros)
                qkv_pieces.append(piece)
        wo_full = dense((HIDDEN, HIDDEN))
        for h in range(NUM_HEADS):
            wo_pieces.append(wo_full[h * HEAD_DIM:(h + 1) * HEAD_DIM, :])   # (dh, H)
        wi_list.append(dense((HIDDEN, INTERMEDIATE)))
        wd_list.append(dense((INTERMEDIATE, HIDDEN)))
        v = jnp.zeros((NUM_VEC, VEC_W), jnp.float32)
        v = v.at[ROW_LN1G, 0:HIDDEN].set(1.0)
        v = v.at[ROW_LN2G, 0:HIDDEN].set(1.0)
        vec_list.append(v)

    head = jnp.zeros((HEAD_ROWS, HIDDEN), jnp.float32)
    head = head.at[0:HIDDEN].set(dense((HIDDEN, HIDDEN)))     # out_linear1 weight (in x out)
    head = head.at[HEAD_W2_ROW].set(dense((HIDDEN,)))         # out_linear2 weight as a row
    # HEAD_B1_ROW / HEAD_B2_ROW stay zero

    return {
        'emb_slab': emb_slab,                                  # (128, 32)
        'qkv_slab': jnp.stack(qkv_pieces, axis=0),             # (L*3*nh, H+1, dh)
        'wo_slab': jnp.stack(wo_pieces, axis=0),               # (L*nh, dh, H)
        'wi': jnp.stack(wi_list, axis=0),                      # (L, H, I)
        'wd': jnp.stack(wd_list, axis=0),                      # (L, I, H)
        'vec_slab': jnp.stack(vec_list, axis=0),               # (L, 7, 64)
        'head_slab': head,                                     # (H+3, H)
    }


# ---------------- forward (mirrors forward(): pos + neg fused in one call) ----------------
@jax.jit
def electra_energy_discriminator_forward(params,
                                         pos_input_ids, pos_attention_mask, pos_token_type_ids,
                                         neg_input_ids, neg_attention_mask, neg_token_type_ids):
    b = pos_input_ids.shape[0]
    ids = jnp.concatenate([pos_input_ids, neg_input_ids], axis=0)              # (2B, S)
    types = jnp.concatenate([pos_token_type_ids, neg_token_type_ids], axis=0)
    mask = jnp.concatenate([pos_attention_mask, neg_attention_mask], axis=0)
    B2, S = ids.shape
    BS = B2 * S

    tok = jnp.stack([ids.reshape(BS, 1), types.reshape(BS, 1)], axis=0).astype(jnp.int32)  # (2, BS, 1)
    mask_flat = mask.astype(jnp.float32).reshape(1, BS)                                    # (1, BS)

    args = (tok, mask_flat, params['emb_slab'], params['qkv_slab'], params['wo_slab'],
            params['wi'], params['wd'], params['vec_slab'], params['head_slab'])

    scores = pl.pallas_call(
        fused_electra_kernel,
        out_shape=jax.ShapeDtypeStruct((B2, 1), jnp.float32),
        in_specs=[pl.BlockSpec(memory_space=pltpu.MemorySpace.VMEM)] * len(args),
        out_specs=pl.BlockSpec(memory_space=pltpu.MemorySpace.VMEM),
    )(*args)

    return scores[:b], scores[b:]


# ---------------- main ----------------
if __name__ == "__main__":
    key = jax.random.PRNGKey(0)
    k_param, k_pos, k_neg = jax.random.split(key, 3)

    params = init_params(k_param)

    pos_input_ids = jax.random.randint(k_pos, (BATCH, SEQ), 0, VOCAB_SIZE, dtype=jnp.int32)
    neg_input_ids = jax.random.randint(k_neg, (BATCH, SEQ), 0, VOCAB_SIZE, dtype=jnp.int32)

    pos_attention_mask = jnp.ones((BATCH, SEQ), jnp.int32)
    neg_attention_mask = jnp.ones((BATCH, SEQ), jnp.int32).at[1, SEQ - 2:].set(0)  # ragged mask

    pos_token_type_ids = jnp.zeros((BATCH, SEQ), jnp.int32)
    neg_token_type_ids = jnp.zeros((BATCH, SEQ), jnp.int32)

    pos_scores, neg_scores = electra_energy_discriminator_forward(
        params,
        pos_input_ids, pos_attention_mask, pos_token_type_ids,
        neg_input_ids, neg_attention_mask, neg_token_type_ids)

    jax.block_until_ready((pos_scores, neg_scores))
    assert pos_scores.shape == (BATCH, 1) and neg_scores.shape == (BATCH, 1)
    assert bool(jnp.all(jnp.isfinite(pos_scores))) and bool(jnp.all(jnp.isfinite(neg_scores)))
    print("KERNEL_OK")
</pallas_src>

<mosaic_0001>
module attributes {stable_mosaic.version = 11 : i64} {
  func.func @fused_electra_kernel(%arg0: memref<2x32x1xi32, #tpu.memory_space<vmem>>, %arg1: memref<1x32xf32, #tpu.memory_space<vmem>>, %arg2: memref<128x32xf32, #tpu.memory_space<vmem>>, %arg3: memref<12x33x16xf32, #tpu.memory_space<vmem>>, %arg4: memref<4x16x32xf32, #tpu.memory_space<vmem>>, %arg5: memref<2x32x64xf32, #tpu.memory_space<vmem>>, %arg6: memref<2x64x32xf32, #tpu.memory_space<vmem>>, %arg7: memref<2x7x64xf32, #tpu.memory_space<vmem>>, %arg8: memref<35x32xf32, #tpu.memory_space<vmem>>, %arg9: memref<4x1xf32, #tpu.memory_space<vmem>>) attributes {dimension_semantics = [], scalar_prefetch = 0 : i64, scratch_operands = 0 : i64, tpu.core_type = #tpu.core_type<tc>} {
    %c0 = arith.constant 0 : index
    %c0_0 = arith.constant 0 : index
    %c0_1 = arith.constant 0 : index
    %0 = vector.load %arg0[%c0, %c0_0, %c0_1] : memref<2x32x1xi32, #tpu.memory_space<vmem>>, vector<1x32x1xi32>
    %1 = vector.shape_cast %0 : vector<1x32x1xi32> to vector<32x1xi32>
    %c1 = arith.constant 1 : index
    %c0_2 = arith.constant 0 : index
    %c0_3 = arith.constant 0 : index
    %2 = vector.load %arg0[%c1, %c0_2, %c0_3] : memref<2x32x1xi32, #tpu.memory_space<vmem>>, vector<1x32x1xi32>
    %3 = vector.shape_cast %2 : vector<1x32x1xi32> to vector<32x1xi32>
    %4 = tpu.iota {dimensions = array<i32: 1>} : vector<1x100xi32>
    %5 = vector.broadcast %1 : vector<32x1xi32> to vector<32x100xi32>
    %6 = vector.broadcast %4 : vector<1x100xi32> to vector<32x100xi32>
    %7 = arith.cmpi eq, %5, %6 : vector<32x100xi32>
    %8 = arith.extui %7 : vector<32x100xi1> to vector<32x100xi32>
    %9 = arith.sitofp %8 : vector<32x100xi32> to vector<32x100xf32>
    %10 = arith.truncf %9 : vector<32x100xf32> to vector<32x100xbf16>
    %c0_4 = arith.constant 0 : index
    %c0_5 = arith.constant 0 : index
    %11 = vector.load %arg2[%c0_4, %c0_5] : memref<128x32xf32, #tpu.memory_space<vmem>>, vector<100x32xf32>
    %12 = arith.truncf %11 : vector<100x32xf32> to vector<100x32xbf16>
    %cst = arith.constant dense<0.000000e+00> : vector<32x32xf32>
    %13 = tpu.matmul %10, %12, %cst {dimension_numbers = #tpu.dot_dimension_numbers<[1], [0], [0], [1], [0, 0, 1, 1], [], []>} : vector<32x100xbf16>, vector<100x32xbf16>, vector<32x32xf32> -> vector<32x32xf32>
    %14 = tpu.iota {dimensions = array<i32: 1>} : vector<1x2xi32>
    %15 = vector.broadcast %3 : vector<32x1xi32> to vector<32x2xi32>
    %16 = vector.broadcast %14 : vector<1x2xi32> to vector<32x2xi32>
    %17 = arith.cmpi eq, %15, %16 : vector<32x2xi32>
    %18 = arith.extui %17 : vector<32x2xi1> to vector<32x2xi32>
    %19 = arith.sitofp %18 : vector<32x2xi32> to vector<32x2xf32>
    %20 = arith.truncf %19 : vector<32x2xf32> to vector<32x2xbf16>
    %c120 = arith.constant 120 : index
    %c0_6 = arith.constant 0 : index
    %21 = vector.load %arg2[%c120, %c0_6] : memref<128x32xf32, #tpu.memory_space<vmem>>, vector<2x32xf32>
    %22 = arith.truncf %21 : vector<2x32xf32> to vector<2x32xbf16>
    %cst_7 = arith.constant dense<0.000000e+00> : vector<32x32xf32>
    %23 = tpu.matmul %20, %22, %cst_7 {dimension_numbers = #tpu.dot_dimension_numbers<[1], [0], [0], [1], [0, 0, 1, 1], [], []>} : vector<32x2xbf16>, vector<2x32xbf16>, vector<32x32xf32> -> vector<32x32xf32>
    %24 = arith.addf %13, %23 : vector<32x32xf32>
    %c104 = arith.constant 104 : index
    %c0_8 = arith.constant 0 : index
    %25 = vector.load %arg2[%c104, %c0_8] : memref<128x32xf32, #tpu.memory_space<vmem>>, vector<8x32xf32>
    %26 = vector.shape_cast %25 : vector<8x32xf32> to vector<1x8x32xf32>
    %27 = vector.shape_cast %26 : vector<1x8x32xf32> to vector<1x8x32xf32>
    %28 = vector.broadcast %27 : vector<1x8x32xf32> to vector<4x8x32xf32>
    %29 = vector.shape_cast %28 : vector<4x8x32xf32> to vector<32x32xf32>
    %30 = arith.addf %24, %29 : vector<32x32xf32>
    %c122 = arith.constant 122 : index
    %c0_9 = arith.constant 0 : index
    %31 = vector.load %arg2[%c122, %c0_9] : memref<128x32xf32, #tpu.memory_space<vmem>>, vector<1x32xf32>
    %c123 = arith.constant 123 : index
    %c0_10 = arith.constant 0 : index
    %32 = vector.load %arg2[%c123, %c0_10] : memref<128x32xf32, #tpu.memory_space<vmem>>, vector<1x32xf32>
    %cst_11 = arith.constant dense<0.000000e+00> : vector<32xf32>
    %33 = vector.multi_reduction <add>, %30, %cst_11 [1] : vector<32x32xf32> to vector<32xf32>
    %34 = vector.shape_cast %33 : vector<32xf32> to vector<32x1xf32>
    %cst_12 = arith.constant 3.200000e+01 : f32
    %35 = vector.broadcast %cst_12 : f32 to vector<32x1xf32>
    %36 = arith.divf %34, %35 : vector<32x1xf32>
    %37 = vector.broadcast %36 : vector<32x1xf32> to vector<32x32xf32>
    %38 = arith.subf %30, %37 : vector<32x32xf32>
    %39 = arith.mulf %38, %38 : vector<32x32xf32>
    %cst_13 = arith.constant dense<0.000000e+00> : vector<32xf32>
    %40 = vector.multi_reduction <add>, %39, %cst_13 [1] : vector<32x32xf32> to vector<32xf32>
    %41 = vector.shape_cast %40 : vector<32xf32> to vector<32x1xf32>
    %cst_14 = arith.constant 3.200000e+01 : f32
    %42 = vector.broadcast %cst_14 : f32 to vector<32x1xf32>
    %43 = arith.divf %41, %42 : vector<32x1xf32>
    %44 = vector.broadcast %36 : vector<32x1xf32> to vector<32x32xf32>
    %45 = arith.subf %30, %44 : vector<32x32xf32>
    %cst_15 = arith.constant 9.99999996E-13 : f32
    %46 = vector.broadcast %cst_15 : f32 to vector<32x1xf32>
    %47 = arith.addf %43, %46 : vector<32x1xf32>
    %48 = math.rsqrt %47 : vector<32x1xf32>
    %49 = vector.broadcast %48 : vector<32x1xf32> to vector<32x32xf32>
    %50 = arith.mulf %45, %49 : vector<32x32xf32>
    %51 = vector.broadcast %31 : vector<1x32xf32> to vector<32x32xf32>
    %52 = arith.mulf %50, %51 : vector<32x32xf32>
    %53 = vector.broadcast %32 : vector<1x32xf32> to vector<32x32xf32>
    %54 = arith.addf %52, %53 : vector<32x32xf32>
    %55 = tpu.iota {dimensions = array<i32: 0>} : vector<32x32xi32>
    %56 = tpu.iota {dimensions = array<i32: 1>} : vector<32x32xi32>
    %c0_i32 = arith.constant 0 : i32
    %57 = vector.broadcast %c0_i32 : i32 to vector<32x32xi32>
    %58 = arith.cmpi sge, %55, %57 : vector<32x32xi32>
    %c8_i32 = arith.constant 8 : i32
    %59 = vector.broadcast %c8_i32 : i32 to vector<32x32xi32>
    %60 = arith.cmpi slt, %55, %59 : vector<32x32xi32>
    %61 = arith.andi %58, %60 : vector<32x32xi1>
    %c0_i32_16 = arith.constant 0 : i32
    %62 = vector.broadcast %c0_i32_16 : i32 to vector<32x32xi32>
    %63 = arith.cmpi sge, %56, %62 : vector<32x32xi32>
    %64 = arith.andi %61, %63 : vector<32x32xi1>
    %c8_i32_17 = arith.constant 8 : i32
    %65 = vector.broadcast %c8_i32_17 : i32 to vector<32x32xi32>
    %66 = arith.cmpi slt, %56, %65 : vector<32x32xi32>
    %67 = arith.andi %64, %66 : vector<32x32xi1>
    %c8_i32_18 = arith.constant 8 : i32
    %68 = vector.broadcast %c8_i32_18 : i32 to vector<32x32xi32>
    %69 = arith.cmpi sge, %55, %68 : vector<32x32xi32>
    %c16_i32 = arith.constant 16 : i32
    %70 = vector.broadcast %c16_i32 : i32 to vector<32x32xi32>
    %71 = arith.cmpi slt, %55, %70 : vector<32x32xi32>
    %72 = arith.andi %69, %71 : vector<32x32xi1>
    %c8_i32_19 = arith.constant 8 : i32
    %73 = vector.broadcast %c8_i32_19 : i32 to vector<32x32xi32>
    %74 = arith.cmpi sge, %56, %73 : vector<32x32xi32>
    %75 = arith.andi %72, %74 : vector<32x32xi1>
    %c16_i32_20 = arith.constant 16 : i32
    %76 = vector.broadcast %c16_i32_20 : i32 to vector<32x32xi32>
    %77 = arith.cmpi slt, %56, %76 : vector<32x32xi32>
    %78 = arith.andi %75, %77 : vector<32x32xi1>
    %79 = arith.ori %67, %78 : vector<32x32xi1>
    %c16_i32_21 = arith.constant 16 : i32
    %80 = vector.broadcast %c16_i32_21 : i32 to vector<32x32xi32>
    %81 = arith.cmpi sge, %55, %80 : vector<32x32xi32>
    %c24_i32 = arith.constant 24 : i32
    %82 = vector.broadcast %c24_i32 : i32 to vector<32x32xi32>
    %83 = arith.cmpi slt, %55, %82 : vector<32x32xi32>
    %84 = arith.andi %81, %83 : vector<32x32xi1>
    %c16_i32_22 = arith.constant 16 : i32
    %85 = vector.broadcast %c16_i32_22 : i32 to vector<32x32xi32>
    %86 = arith.cmpi sge, %56, %85 : vector<32x32xi32>
    %87 = arith.andi %84, %86 : vector<32x32xi1>
    %c24_i32_23 = arith.constant 24 : i32
    %88 = vector.broadcast %c24_i32_23 : i32 to vector<32x32xi32>
    %89 = arith.cmpi slt, %56, %88 : vector<32x32xi32>
    %90 = arith.andi %87, %89 : vector<32x32xi1>
    %91 = arith.ori %79, %90 : vector<32x32xi1>
    %c24_i32_24 = arith.constant 24 : i32
    %92 = vector.broadcast %c24_i32_24 : i32 to vector<32x32xi32>
    %93 = arith.cmpi sge, %55, %92 : vector<32x32xi32>
    %c32_i32 = arith.constant 32 : i32
    %94 = vector.broadcast %c32_i32 : i32 to vector<32x32xi32>
    %95 = arith.cmpi slt, %55, %94 : vector<32x32xi32>
    %96 = arith.andi %93, %95 : vector<32x32xi1>
    %c24_i32_25 = arith.constant 24 : i32
    %97 = vector.broadcast %c24_i32_25 : i32 to vector<32x32xi32>
    %98 = arith.cmpi sge, %56, %97 : vector<32x32xi32>
    %99 = arith.andi %96, %98 : vector<32x32xi1>
    %c32_i32_26 = arith.constant 32 : i32
    %100 = vector.broadcast %c32_i32_26 : i32 to vector<32x32xi32>
    %101 = arith.cmpi slt, %56, %100 : vector<32x32xi32>
    %102 = arith.andi %99, %101 : vector<32x32xi1>
    %103 = arith.ori %91, %102 : vector<32x32xi1>
    %c0_27 = arith.constant 0 : index
    %c0_28 = arith.constant 0 : index
    %104 = vector.load %arg1[%c0_27, %c0_28] : memref<1x32xf32, #tpu.memory_space<vmem>>, vector<1x32xf32>
    %cst_29 = arith.constant 5.000000e-01 : f32
    %105 = vector.broadcast %cst_29 : f32 to vector<1x32xf32>
    %106 = arith.cmpf ogt, %104, %105 : vector<1x32xf32>
    %107 = vector.broadcast %106 : vector<1x32xi1> to vector<32x32xi1>
    %108 = arith.andi %103, %107 : vector<32x32xi1>
    %cst_30 = arith.constant 0.000000e+00 : f32
    %cst_31 = arith.constant -1.000000e+09 : f32
    %109 = vector.broadcast %cst_30 : f32 to vector<32x32xf32>
    %110 = vector.broadcast %cst_31 : f32 to vector<32x32xf32>
    %111 = arith.select %108, %109, %110 : vector<32x32xi1>, vector<32x32xf32>
    %112 = arith.truncf %54 : vector<32x32xf32> to vector<32x32xbf16>
    %cst_32 = arith.constant 0.000000e+00 : f32
    %113 = vector.broadcast %cst_32 : f32 to vector<32x32xf32>
    %c0_33 = arith.constant 0 : index
    %c0_34 = arith.constant 0 : index
    %c0_35 = arith.constant 0 : index
    %114 = vector.load %arg3[%c0_33, %c0_34, %c0_35] : memref<12x33x16xf32, #tpu.memory_space<vmem>>, vector<1x32x16xf32>
    %115 = vector.shape_cast %114 : vector<1x32x16xf32> to vector<32x16xf32>
    %116 = arith.truncf %115 : vector<32x16xf32> to vector<32x16xbf16>
    %cst_36 = arith.constant dense<0.000000e+00> : vector<32x16xf32>
    %117 = tpu.matmul %112, %116, %cst_36 {dimension_numbers = #tpu.dot_dimension_numbers<[1], [0], [0], [1], [0, 0, 1, 1], [], []>} : vector<32x32xbf16>, vector<32x16xbf16>, vector<32x16xf32> -> vector<32x16xf32>
    %c0_37 = arith.constant 0 : index
    %c32 = arith.constant 32 : index
    %c0_38 = arith.constant 0 : index
    %118 = vector.load %arg3[%c0_37, %c32, %c0_38] : memref<12x33x16xf32, #tpu.memory_space<vmem>>, vector<1x1x16xf32>
    %119 = vector.shape_cast %118 : vector<1x1x16xf32> to vector<1x16xf32>
    %120 = vector.broadcast %119 : vector<1x16xf32> to vector<32x16xf32>
    %121 = arith.addf %117, %120 : vector<32x16xf32>
    %c2 = arith.constant 2 : index
    %c0_39 = arith.constant 0 : index
    %c0_40 = arith.constant 0 : index
    %122 = vector.load %arg3[%c2, %c0_39, %c0_40] : memref<12x33x16xf32, #tpu.memory_space<vmem>>, vector<1x32x16xf32>
    %123 = vector.shape_cast %122 : vector<1x32x16xf32> to vector<32x16xf32>
    %124 = arith.truncf %123 : vector<32x16xf32> to vector<32x16xbf16>
    %cst_41 = arith.constant dense<0.000000e+00> : vector<32x16xf32>
    %125 = tpu.matmul %112, %124, %cst_41 {dimension_numbers = #tpu.dot_dimension_numbers<[1], [0], [0], [1], [0, 0, 1, 1], [], []>} : vector<32x32xbf16>, vector<32x16xbf16>, vector<32x16xf32> -> vector<32x16xf32>
    %c2_42 = arith.constant 2 : index
    %c32_43 = arith.constant 32 : index
    %c0_44 = arith.constant 0 : index
    %126 = vector.load %arg3[%c2_42, %c32_43, %c0_44] : memref<12x33x16xf32, #tpu.memory_space<vmem>>, vector<1x1x16xf32>
    %127 = vector.shape_cast %126 : vector<1x1x16xf32> to vector<1x16xf32>
    %128 = vector.broadcast %127 : vector<1x16xf32> to vector<32x16xf32>
    %129 = arith.addf %125, %128 : vector<32x16xf32>
    %c4 = arith.constant 4 : index
    %c0_45 = arith.constant 0 : index
    %c0_46 = arith.constant 0 : index
    %130 = vector.load %arg3[%c4, %c0_45, %c0_46] : memref<12x33x16xf32, #tpu.memory_space<vmem>>, vector<1x32x16xf32>
    %131 = vector.shape_cast %130 : vector<1x32x16xf32> to vector<32x16xf32>
    %132 = arith.truncf %131 : vector<32x16xf32> to vector<32x16xbf16>
    %cst_47 = arith.constant dense<0.000000e+00> : vector<32x16xf32>
    %133 = tpu.matmul %112, %132, %cst_47 {dimension_numbers = #tpu.dot_dimension_numbers<[1], [0], [0], [1], [0, 0, 1, 1], [], []>} : vector<32x32xbf16>, vector<32x16xbf16>, vector<32x16xf32> -> vector<32x16xf32>
    %c4_48 = arith.constant 4 : index
    %c32_49 = arith.constant 32 : index
    %c0_50 = arith.constant 0 : index
    %134 = vector.load %arg3[%c4_48, %c32_49, %c0_50] : memref<12x33x16xf32, #tpu.memory_space<vmem>>, vector<1x1x16xf32>
    %135 = vector.shape_cast %134 : vector<1x1x16xf32> to vector<1x16xf32>
    %136 = vector.broadcast %135 : vector<1x16xf32> to vector<32x16xf32>
    %137 = arith.addf %133, %136 : vector<32x16xf32>
    %138 = arith.truncf %121 : vector<32x16xf32> to vector<32x16xbf16>
    %139 = arith.truncf %129 : vector<32x16xf32> to vector<32x16xbf16>
    %cst_51 = arith.constant dense<0.000000e+00> : vector<32x32xf32>
    %140 = tpu.matmul %138, %139, %cst_51 {dimension_numbers = #tpu.dot_dimension_numbers<[1], [1], [0], [0], [0, 0, 1, 0], [], []>} : vector<32x16xbf16>, vector<32x16xbf16>, vector<32x32xf32> -> vector<32x32xf32>
    %cst_52 = arith.constant 2.500000e-01 : f32
    %141 = vector.broadcast %cst_52 : f32 to vector<32x32xf32>
    %142 = arith.mulf %140, %141 : vector<32x32xf32>
    %143 = arith.addf %142, %111 : vector<32x32xf32>
    %cst_53 = arith.constant dense<0xFF800000> : vector<32xf32>
    %144 = vector.multi_reduction <maximumf>, %143, %cst_53 [1] : vector<32x32xf32> to vector<32xf32>
    %145 = vector.shape_cast %144 : vector<32xf32> to vector<32x1xf32>
    %146 = vector.broadcast %145 : vector<32x1xf32> to vector<32x32xf32>
    %147 = arith.subf %143, %146 : vector<32x32xf32>
    %148 = math.exp %147 : vector<32x32xf32>
    %cst_54 = arith.constant dense<0.000000e+00> : vector<32xf32>
    %149 = vector.multi_reduction <add>, %148, %cst_54 [1] : vector<32x32xf32> to vector<32xf32>
    %150 = vector.shape_cast %149 : vector<32xf32> to vector<32x1xf32>
    %151 = tpu.reciprocal %150 {approx = true} : vector<32x1xf32> -> vector<32x1xf32>
    %152 = vector.broadcast %151 : vector<32x1xf32> to vector<32x32xf32>
    %153 = arith.mulf %148, %152 : vector<32x32xf32>
    %154 = arith.truncf %153 : vector<32x32xf32> to vector<32x32xbf16>
    %155 = arith.truncf %137 : vector<32x16xf32> to vector<32x16xbf16>
    %cst_55 = arith.constant dense<0.000000e+00> : vector<32x16xf32>
    %156 = tpu.matmul %154, %155, %cst_55 {dimension_numbers = #tpu.dot_dimension_numbers<[1], [0], [0], [1], [0, 0, 1, 1], [], []>} : vector<32x32xbf16>, vector<32x16xbf16>, vector<32x16xf32> -> vector<32x16xf32>
    %157 = arith.truncf %156 : vector<32x16xf32> to vector<32x16xbf16>
    %c0_56 = arith.constant 0 : index
    %c0_57 = arith.constant 0 : index
    %c0_58 = arith.constant 0 : index
    %158 = vector.load %arg4[%c0_56, %c0_57, %c0_58] : memref<4x16x32xf32, #tpu.memory_space<vmem>>, vector<1x16x32xf32>
    %159 = vector.shape_cast %158 : vector<1x16x32xf32> to vector<16x32xf32>
    %160 = arith.truncf %159 : vector<16x32xf32> to vector<16x32xbf16>
    %cst_59 = arith.constant dense<0.000000e+00> : vector<32x32xf32>
    %161 = tpu.matmul %157, %160, %cst_59 {dimension_numbers = #tpu.dot_dimension_numbers<[1], [0], [0], [1], [0, 0, 1, 1], [], []>} : vector<32x16xbf16>, vector<16x32xbf16>, vector<32x32xf32> -> vector<32x32xf32>
    %162 = arith.addf %113, %161 : vector<32x32xf32>
    %c1_60 = arith.constant 1 : index
    %c0_61 = arith.constant 0 : index
    %c0_62 = arith.constant 0 : index
    %163 = vector.load %arg3[%c1_60, %c0_61, %c0_62] : memref<12x33x16xf32, #tpu.memory_space<vmem>>, vector<1x32x16xf32>
    %164 = vector.shape_cast %163 : vector<1x32x16xf32> to vector<32x16xf32>
    %165 = arith.truncf %164 : vector<32x16xf32> to vector<32x16xbf16>
    %cst_63 = arith.constant dense<0.000000e+00> : vector<32x16xf32>
    %166 = tpu.matmul %112, %165, %cst_63 {dimension_numbers = #tpu.dot_dimension_numbers<[1], [0], [0], [1], [0, 0, 1, 1], [], []>} : vector<32x32xbf16>, vector<32x16xbf16>, vector<32x16xf32> -> vector<32x16xf32>
    %c1_64 = arith.constant 1 : index
    %c32_65 = arith.constant 32 : index
    %c0_66 = arith.constant 0 : index
    %167 = vector.load %arg3[%c1_64, %c32_65, %c0_66] : memref<12x33x16xf32, #tpu.memory_space<vmem>>, vector<1x1x16xf32>
    %168 = vector.shape_cast %167 : vector<1x1x16xf32> to vector<1x16xf32>
    %169 = vector.broadcast %168 : vector<1x16xf32> to vector<32x16xf32>
    %170 = arith.addf %166, %169 : vector<32x16xf32>
    %c3 = arith.constant 3 : index
    %c0_67 = arith.constant 0 : index
    %c0_68 = arith.constant 0 : index
    %171 = vector.load %arg3[%c3, %c0_67, %c0_68] : memref<12x33x16xf32, #tpu.memory_space<vmem>>, vector<1x32x16xf32>
    %172 = vector.shape_cast %171 : vector<1x32x16xf32> to vector<32x16xf32>
    %173 = arith.truncf %172 : vector<32x16xf32> to vector<32x16xbf16>
    %cst_69 = arith.constant dense<0.000000e+00> : vector<32x16xf32>
    %174 = tpu.matmul %112, %173, %cst_69 {dimension_numbers = #tpu.dot_dimension_numbers<[1], [0], [0], [1], [0, 0, 1, 1], [], []>} : vector<32x32xbf16>, vector<32x16xbf16>, vector<32x16xf32> -> vector<32x16xf32>
    %c3_70 = arith.constant 3 : index
    %c32_71 = arith.constant 32 : index
    %c0_72 = arith.constant 0 : index
    %175 = vector.load %arg3[%c3_70, %c32_71, %c0_72] : memref<12x33x16xf32, #tpu.memory_space<vmem>>, vector<1x1x16xf32>
    %176 = vector.shape_cast %175 : vector<1x1x16xf32> to vector<1x16xf32>
    %177 = vector.broadcast %176 : vector<1x16xf32> to vector<32x16xf32>
    %178 = arith.addf %174, %177 : vector<32x16xf32>
    %c5 = arith.constant 5 : index
    %c0_73 = arith.constant 0 : index
    %c0_74 = arith.constant 0 : index
    %179 = vector.load %arg3[%c5, %c0_73, %c0_74] : memref<12x33x16xf32, #tpu.memory_space<vmem>>, vector<1x32x16xf32>
    %180 = vector.shape_cast %179 : vector<1x32x16xf32> to vector<32x16xf32>
    %181 = arith.truncf %180 : vector<32x16xf32> to vector<32x16xbf16>
    %cst_75 = arith.constant dense<0.000000e+00> : vector<32x16xf32>
    %182 = tpu.matmul %112, %181, %cst_75 {dimension_numbers = #tpu.dot_dimension_numbers<[1], [0], [0], [1], [0, 0, 1, 1], [], []>} : vector<32x32xbf16>, vector<32x16xbf16>, vector<32x16xf32> -> vector<32x16xf32>
    %c5_76 = arith.constant 5 : index
    %c32_77 = arith.constant 32 : index
    %c0_78 = arith.constant 0 : index
    %183 = vector.load %arg3[%c5_76, %c32_77, %c0_78] : memref<12x33x16xf32, #tpu.memory_space<vmem>>, vector<1x1x16xf32>
    %184 = vector.shape_cast %183 : vector<1x1x16xf32> to vector<1x16xf32>
    %185 = vector.broadcast %184 : vector<1x16xf32> to vector<32x16xf32>
    %186 = arith.addf %182, %185 : vector<32x16xf32>
    %187 = arith.truncf %170 : vector<32x16xf32> to vector<32x16xbf16>
    %188 = arith.truncf %178 : vector<32x16xf32> to vector<32x16xbf16>
    %cst_79 = arith.constant dense<0.000000e+00> : vector<32x32xf32>
    %189 = tpu.matmul %187, %188, %cst_79 {dimension_numbers = #tpu.dot_dimension_numbers<[1], [1], [0], [0], [0, 0, 1, 0], [], []>} : vector<32x16xbf16>, vector<32x16xbf16>, vector<32x32xf32> -> vector<32x32xf32>
    %cst_80 = arith.constant 2.500000e-01 : f32
    %190 = vector.broadcast %cst_80 : f32 to vector<32x32xf32>
    %191 = arith.mulf %189, %190 : vector<32x32xf32>
    %192 = arith.addf %191, %111 : vector<32x32xf32>
    %cst_81 = arith.constant dense<0xFF800000> : vector<32xf32>
    %193 = vector.multi_reduction <maximumf>, %192, %cst_81 [1] : vector<32x32xf32> to vector<32xf32>
    %194 = vector.shape_cast %193 : vector<32xf32> to vector<32x1xf32>
    %195 = vector.broadcast %194 : vector<32x1xf32> to vector<32x32xf32>
    %196 = arith.subf %192, %195 : vector<32x32xf32>
    %197 = math.exp %196 : vector<32x32xf32>
    %cst_82 = arith.constant dense<0.000000e+00> : vector<32xf32>
    %198 = vector.multi_reduction <add>, %197, %cst_82 [1] : vector<32x32xf32> to vector<32xf32>
    %199 = vector.shape_cast %198 : vector<32xf32> to vector<32x1xf32>
    %200 = tpu.reciprocal %199 {approx = true} : vector<32x1xf32> -> vector<32x1xf32>
    %201 = vector.broadcast %200 : vector<32x1xf32> to vector<32x32xf32>
    %202 = arith.mulf %197, %201 : vector<32x32xf32>
    %203 = arith.truncf %202 : vector<32x32xf32> to vector<32x32xbf16>
    %204 = arith.truncf %186 : vector<32x16xf32> to vector<32x16xbf16>
    %cst_83 = arith.constant dense<0.000000e+00> : vector<32x16xf32>
    %205 = tpu.matmul %203, %204, %cst_83 {dimension_numbers = #tpu.dot_dimension_numbers<[1], [0], [0], [1], [0, 0, 1, 1], [], []>} : vector<32x32xbf16>, vector<32x16xbf16>, vector<32x16xf32> -> vector<32x16xf32>
    %206 = arith.truncf %205 : vector<32x16xf32> to vector<32x16xbf16>
    %c1_84 = arith.constant 1 : index
    %c0_85 = arith.constant 0 : index
    %c0_86 = arith.constant 0 : index
    %207 = vector.load %arg4[%c1_84, %c0_85, %c0_86] : memref<4x16x32xf32, #tpu.memory_space<vmem>>, vector<1x16x32xf32>
    %208 = vector.shape_cast %207 : vector<1x16x32xf32> to vector<16x32xf32>
    %209 = arith.truncf %208 : vector<16x32xf32> to vector<16x32xbf16>
    %cst_87 = arith.constant dense<0.000000e+00> : vector<32x32xf32>
    %210 = tpu.matmul %206, %209, %cst_87 {dimension_numbers = #tpu.dot_dimension_numbers<[1], [0], [0], [1], [0, 0, 1, 1], [], []>} : vector<32x16xbf16>, vector<16x32xbf16>, vector<32x32xf32> -> vector<32x32xf32>
    %211 = arith.addf %162, %210 : vector<32x32xf32>
    %c0_88 = arith.constant 0 : index
    %c0_89 = arith.constant 0 : index
    %c0_90 = arith.constant 0 : index
    %212 = vector.load %arg7[%c0_88, %c0_89, %c0_90] : memref<2x7x64xf32, #tpu.memory_space<vmem>>, vector<1x1x32xf32>
    %213 = vector.shape_cast %212 : vector<1x1x32xf32> to vector<1x32xf32>
    %214 = vector.broadcast %213 : vector<1x32xf32> to vector<32x32xf32>
    %215 = arith.addf %211, %214 : vector<32x32xf32>
    %216 = arith.addf %215, %54 : vector<32x32xf32>
    %c0_91 = arith.constant 0 : index
    %c1_92 = arith.constant 1 : index
    %c0_93 = arith.constant 0 : index
    %217 = vector.load %arg7[%c0_91, %c1_92, %c0_93] : memref<2x7x64xf32, #tpu.memory_space<vmem>>, vector<1x1x32xf32>
    %218 = vector.shape_cast %217 : vector<1x1x32xf32> to vector<1x32xf32>
    %c0_94 = arith.constant 0 : index
    %c2_95 = arith.constant 2 : index
    %c0_96 = arith.constant 0 : index
    %219 = vector.load %arg7[%c0_94, %c2_95, %c0_96] : memref<2x7x64xf32, #tpu.memory_space<vmem>>, vector<1x1x32xf32>
    %220 = vector.shape_cast %219 : vector<1x1x32xf32> to vector<1x32xf32>
    %cst_97 = arith.constant dense<0.000000e+00> : vector<32xf32>
    %221 = vector.multi_reduction <add>, %216, %cst_97 [1] : vector<32x32xf32> to vector<32xf32>
    %222 = vector.shape_cast %221 : vector<32xf32> to vector<32x1xf32>
    %cst_98 = arith.constant 3.200000e+01 : f32
    %223 = vector.broadcast %cst_98 : f32 to vector<32x1xf32>
    %224 = arith.divf %222, %223 : vector<32x1xf32>
    %225 = vector.broadcast %224 : vector<32x1xf32> to vector<32x32xf32>
    %226 = arith.subf %216, %225 : vector<32x32xf32>
    %227 = arith.mulf %226, %226 : vector<32x32xf32>
    %cst_99 = arith.constant dense<0.000000e+00> : vector<32xf32>
    %228 = vector.multi_reduction <add>, %227, %cst_99 [1] : vector<32x32xf32> to vector<32xf32>
    %229 = vector.shape_cast %228 : vector<32xf32> to vector<32x1xf32>
    %cst_100 = arith.constant 3.200000e+01 : f32
    %230 = vector.broadcast %cst_100 : f32 to vector<32x1xf32>
    %231 = arith.divf %229, %230 : vector<32x1xf32>
    %232 = vector.broadcast %224 : vector<32x1xf32> to vector<32x32xf32>
    %233 = arith.subf %216, %232 : vector<32x32xf32>
    %cst_101 = arith.constant 9.99999996E-13 : f32
    %234 = vector.broadcast %cst_101 : f32 to vector<32x1xf32>
    %235 = arith.addf %231, %234 : vector<32x1xf32>
    %236 = math.rsqrt %235 : vector<32x1xf32>
    %237 = vector.broadcast %236 : vector<32x1xf32> to vector<32x32xf32>
    %238 = arith.mulf %233, %237 : vector<32x32xf32>
    %239 = vector.broadcast %218 : vector<1x32xf32> to vector<32x32xf32>
    %240 = arith.mulf %238, %239 : vector<32x32xf32>
    %241 = vector.broadcast %220 : vector<1x32xf32> to vector<32x32xf32>
    %242 = arith.addf %240, %241 : vector<32x32xf32>
    %243 = arith.truncf %242 : vector<32x32xf32> to vector<32x32xbf16>
    %c0_102 = arith.constant 0 : index
    %c0_103 = arith.constant 0 : index
    %c0_104 = arith.constant 0 : index
    %244 = vector.load %arg5[%c0_102, %c0_103, %c0_104] : memref<2x32x64xf32, #tpu.memory_space<vmem>>, vector<1x32x64xf32>
    %245 = vector.shape_cast %244 : vector<1x32x64xf32> to vector<32x64xf32>
    %246 = arith.truncf %245 : vector<32x64xf32> to vector<32x64xbf16>
    %cst_105 = arith.constant dense<0.000000e+00> : vector<32x64xf32>
    %247 = tpu.matmul %243, %246, %cst_105 {dimension_numbers = #tpu.dot_dimension_numbers<[1], [0], [0], [1], [0, 0, 1, 1], [], []>} : vector<32x32xbf16>, vector<32x64xbf16>, vector<32x64xf32> -> vector<32x64xf32>
    %c0_106 = arith.constant 0 : index
    %c3_107 = arith.constant 3 : index
    %c0_108 = arith.constant 0 : index
    %248 = vector.load %arg7[%c0_106, %c3_107, %c0_108] : memref<2x7x64xf32, #tpu.memory_space<vmem>>, vector<1x1x64xf32>
    %249 = vector.shape_cast %248 : vector<1x1x64xf32> to vector<1x64xf32>
    %250 = vector.broadcast %249 : vector<1x64xf32> to vector<32x64xf32>
    %251 = arith.addf %247, %250 : vector<32x64xf32>
    %cst_109 = arith.constant 5.000000e-01 : f32
    %252 = vector.broadcast %cst_109 : f32 to vector<32x64xf32>
    %253 = arith.mulf %251, %252 : vector<32x64xf32>
    %cst_110 = arith.constant 0.707106769 : f32
    %254 = vector.broadcast %cst_110 : f32 to vector<32x64xf32>
    %255 = arith.mulf %251, %254 : vector<32x64xf32>
    %256 = math.erf %255 : vector<32x64xf32>
    %cst_111 = arith.constant 1.000000e+00 : f32
    %257 = vector.broadcast %cst_111 : f32 to vector<32x64xf32>
    %258 = arith.addf %257, %256 : vector<32x64xf32>
    %259 = arith.mulf %253, %258 : vector<32x64xf32>
    %260 = arith.truncf %259 : vector<32x64xf32> to vector<32x64xbf16>
    %c0_112 = arith.constant 0 : index
    %c0_113 = arith.constant 0 : index
    %c0_114 = arith.constant 0 : index
    %261 = vector.load %arg6[%c0_112, %c0_113, %c0_114] : memref<2x64x32xf32, #tpu.memory_space<vmem>>, vector<1x64x32xf32>
    %262 = vector.shape_cast %261 : vector<1x64x32xf32> to vector<64x32xf32>
    %263 = arith.truncf %262 : vector<64x32xf32> to vector<64x32xbf16>
    %cst_115 = arith.constant dense<0.000000e+00> : vector<32x32xf32>
    %264 = tpu.matmul %260, %263, %cst_115 {dimension_numbers = #tpu.dot_dimension_numbers<[1], [0], [0], [1], [0, 0, 1, 1], [], []>} : vector<32x64xbf16>, vector<64x32xbf16>, vector<32x32xf32> -> vector<32x32xf32>
    %c0_116 = arith.constant 0 : index
    %c4_117 = arith.constant 4 : index
    %c0_118 = arith.constant 0 : index
    %265 = vector.load %arg7[%c0_116, %c4_117, %c0_118] : memref<2x7x64xf32, #tpu.memory_space<vmem>>, vector<1x1x32xf32>
    %266 = vector.shape_cast %265 : vector<1x1x32xf32> to vector<1x32xf32>
    %267 = vector.broadcast %266 : vector<1x32xf32> to vector<32x32xf32>
    %268 = arith.addf %264, %267 : vector<32x32xf32>
    %269 = arith.addf %268, %242 : vector<32x32xf32>
    %c0_119 = arith.constant 0 : index
    %c5_120 = arith.constant 5 : index
    %c0_121 = arith.constant 0 : index
    %270 = vector.load %arg7[%c0_119, %c5_120, %c0_121] : memref<2x7x64xf32, #tpu.memory_space<vmem>>, vector<1x1x32xf32>
    %271 = vector.shape_cast %270 : vector<1x1x32xf32> to vector<1x32xf32>
    %c0_122 = arith.constant 0 : index
    %c6 = arith.constant 6 : index
    %c0_123 = arith.constant 0 : index
    %272 = vector.load %arg7[%c0_122, %c6, %c0_123] : memref<2x7x64xf32, #tpu.memory_space<vmem>>, vector<1x1x32xf32>
    %273 = vector.shape_cast %272 : vector<1x1x32xf32> to vector<1x32xf32>
    %cst_124 = arith.constant dense<0.000000e+00> : vector<32xf32>
    %274 = vector.multi_reduction <add>, %269, %cst_124 [1] : vector<32x32xf32> to vector<32xf32>
    %275 = vector.shape_cast %274 : vector<32xf32> to vector<32x1xf32>
    %cst_125 = arith.constant 3.200000e+01 : f32
    %276 = vector.broadcast %cst_125 : f32 to vector<32x1xf32>
    %277 = arith.divf %275, %276 : vector<32x1xf32>
    %278 = vector.broadcast %277 : vector<32x1xf32> to vector<32x32xf32>
    %279 = arith.subf %269, %278 : vector<32x32xf32>
    %280 = arith.mulf %279, %279 : vector<32x32xf32>
    %cst_126 = arith.constant dense<0.000000e+00> : vector<32xf32>
    %281 = vector.multi_reduction <add>, %280, %cst_126 [1] : vector<32x32xf32> to vector<32xf32>
    %282 = vector.shape_cast %281 : vector<32xf32> to vector<32x1xf32>
    %cst_127 = arith.constant 3.200000e+01 : f32
    %283 = vector.broadcast %cst_127 : f32 to vector<32x1xf32>
    %284 = arith.divf %282, %283 : vector<32x1xf32>
    %285 = vector.broadcast %277 : vector<32x1xf32> to vector<32x32xf32>
    %286 = arith.subf %269, %285 : vector<32x32xf32>
    %cst_128 = arith.constant 9.99999996E-13 : f32
    %287 = vector.broadcast %cst_128 : f32 to vector<32x1xf32>
    %288 = arith.addf %284, %287 : vector<32x1xf32>
    %289 = math.rsqrt %288 : vector<32x1xf32>
    %290 = vector.broadcast %289 : vector<32x1xf32> to vector<32x32xf32>
    %291 = arith.mulf %286, %290 : vector<32x32xf32>
    %292 = vector.broadcast %271 : vector<1x32xf32> to vector<32x32xf32>
    %293 = arith.mulf %291, %292 : vector<32x32xf32>
    %294 = vector.broadcast %273 : vector<1x32xf32> to vector<32x32xf32>
    %295 = arith.addf %293, %294 : vector<32x32xf32>
    %296 = arith.truncf %295 : vector<32x32xf32> to vector<32x32xbf16>
    %cst_129 = arith.constant 0.000000e+00 : f32
    %297 = vector.broadcast %cst_129 : f32 to vector<32x32xf32>
    %c6_130 = arith.constant 6 : index
    %c0_131 = arith.constant 0 : index
    %c0_132 = arith.constant 0 : index
    %298 = vector.load %arg3[%c6_130, %c0_131, %c0_132] : memref<12x33x16xf32, #tpu.memory_space<vmem>>, vector<1x32x16xf32>
    %299 = vector.shape_cast %298 : vector<1x32x16xf32> to vector<32x16xf32>
    %300 = arith.truncf %299 : vector<32x16xf32> to vector<32x16xbf16>
    %cst_133 = arith.constant dense<0.000000e+00> : vector<32x16xf32>
    %301 = tpu.matmul %296, %300, %cst_133 {dimension_numbers = #tpu.dot_dimension_numbers<[1], [0], [0], [1], [0, 0, 1, 1], [], []>} : vector<32x32xbf16>, vector<32x16xbf16>, vector<32x16xf32> -> vector<32x16xf32>
    %c6_134 = arith.constant 6 : index
    %c32_135 = arith.constant 32 : index
    %c0_136 = arith.constant 0 : index
    %302 = vector.load %arg3[%c6_134, %c32_135, %c0_136] : memref<12x33x16xf32, #tpu.memory_space<vmem>>, vector<1x1x16xf32>
    %303 = vector.shape_cast %302 : vector<1x1x16xf32> to vector<1x16xf32>
    %304 = vector.broadcast %303 : vector<1x16xf32> to vector<32x16xf32>
    %305 = arith.addf %301, %304 : vector<32x16xf32>
    %c8 = arith.constant 8 : index
    %c0_137 = arith.constant 0 : index
    %c0_138 = arith.constant 0 : index
    %306 = vector.load %arg3[%c8, %c0_137, %c0_138] : memref<12x33x16xf32, #tpu.memory_space<vmem>>, vector<1x32x16xf32>
    %307 = vector.shape_cast %306 : vector<1x32x16xf32> to vector<32x16xf32>
    %308 = arith.truncf %307 : vector<32x16xf32> to vector<32x16xbf16>
    %cst_139 = arith.constant dense<0.000000e+00> : vector<32x16xf32>
    %309 = tpu.matmul %296, %308, %cst_139 {dimension_numbers = #tpu.dot_dimension_numbers<[1], [0], [0], [1], [0, 0, 1, 1], [], []>} : vector<32x32xbf16>, vector<32x16xbf16>, vector<32x16xf32> -> vector<32x16xf32>
    %c8_140 = arith.constant 8 : index
    %c32_141 = arith.constant 32 : index
    %c0_142 = arith.constant 0 : index
    %310 = vector.load %arg3[%c8_140, %c32_141, %c0_142] : memref<12x33x16xf32, #tpu.memory_space<vmem>>, vector<1x1x16xf32>
    %311 = vector.shape_cast %310 : vector<1x1x16xf32> to vector<1x16xf32>
    %312 = vector.broadcast %311 : vector<1x16xf32> to vector<32x16xf32>
    %313 = arith.addf %309, %312 : vector<32x16xf32>
    %c10 = arith.constant 10 : index
    %c0_143 = arith.constant 0 : index
    %c0_144 = arith.constant 0 : index
    %314 = vector.load %arg3[%c10, %c0_143, %c0_144] : memref<12x33x16xf32, #tpu.memory_space<vmem>>, vector<1x32x16xf32>
    %315 = vector.shape_cast %314 : vector<1x32x16xf32> to vector<32x16xf32>
    %316 = arith.truncf %315 : vector<32x16xf32> to vector<32x16xbf16>
    %cst_145 = arith.constant dense<0.000000e+00> : vector<32x16xf32>
    %317 = tpu.matmul %296, %316, %cst_145 {dimension_numbers = #tpu.dot_dimension_numbers<[1], [0], [0], [1], [0, 0, 1, 1], [], []>} : vector<32x32xbf16>, vector<32x16xbf16>, vector<32x16xf32> -> vector<32x16xf32>
    %c10_146 = arith.constant 10 : index
    %c32_147 = arith.constant 32 : index
    %c0_148 = arith.constant 0 : index
    %318 = vector.load %arg3[%c10_146, %c32_147, %c0_148] : memref<12x33x16xf32, #tpu.memory_space<vmem>>, vector<1x1x16xf32>
    %319 = vector.shape_cast %318 : vector<1x1x16xf32> to vector<1x16xf32>
    %320 = vector.broadcast %319 : vector<1x16xf32> to vector<32x16xf32>
    %321 = arith.addf %317, %320 : vector<32x16xf32>
    %322 = arith.truncf %305 : vector<32x16xf32> to vector<32x16xbf16>
    %323 = arith.truncf %313 : vector<32x16xf32> to vector<32x16xbf16>
    %cst_149 = arith.constant dense<0.000000e+00> : vector<32x32xf32>
    %324 = tpu.matmul %322, %323, %cst_149 {dimension_numbers = #tpu.dot_dimension_numbers<[1], [1], [0], [0], [0, 0, 1, 0], [], []>} : vector<32x16xbf16>, vector<32x16xbf16>, vector<32x32xf32> -> vector<32x32xf32>
    %cst_150 = arith.constant 2.500000e-01 : f32
    %325 = vector.broadcast %cst_150 : f32 to vector<32x32xf32>
    %326 = arith.mulf %324, %325 : vector<32x32xf32>
    %327 = arith.addf %326, %111 : vector<32x32xf32>
    %cst_151 = arith.constant dense<0xFF800000> : vector<32xf32>
    %328 = vector.multi_reduction <maximumf>, %327, %cst_151 [1] : vector<32x32xf32> to vector<32xf32>
    %329 = vector.shape_cast %328 : vector<32xf32> to vector<32x1xf32>
    %330 = vector.broadcast %329 : vector<32x1xf32> to vector<32x32xf32>
    %331 = arith.subf %327, %330 : vector<32x32xf32>
    %332 = math.exp %331 : vector<32x32xf32>
    %cst_152 = arith.constant dense<0.000000e+00> : vector<32xf32>
    %333 = vector.multi_reduction <add>, %332, %cst_152 [1] : vector<32x32xf32> to vector<32xf32>
    %334 = vector.shape_cast %333 : vector<32xf32> to vector<32x1xf32>
    %335 = tpu.reciprocal %334 {approx = true} : vector<32x1xf32> -> vector<32x1xf32>
    %336 = vector.broadcast %335 : vector<32x1xf32> to vector<32x32xf32>
    %337 = arith.mulf %332, %336 : vector<32x32xf32>
    %338 = arith.truncf %337 : vector<32x32xf32> to vector<32x32xbf16>
    %339 = arith.truncf %321 : vector<32x16xf32> to vector<32x16xbf16>
    %cst_153 = arith.constant dense<0.000000e+00> : vector<32x16xf32>
    %340 = tpu.matmul %338, %339, %cst_153 {dimension_numbers = #tpu.dot_dimension_numbers<[1], [0], [0], [1], [0, 0, 1, 1], [], []>} : vector<32x32xbf16>, vector<32x16xbf16>, vector<32x16xf32> -> vector<32x16xf32>
    %341 = arith.truncf %340 : vector<32x16xf32> to vector<32x16xbf16>
    %c2_154 = arith.constant 2 : index
    %c0_155 = arith.constant 0 : index
    %c0_156 = arith.constant 0 : index
    %342 = vector.load %arg4[%c2_154, %c0_155, %c0_156] : memref<4x16x32xf32, #tpu.memory_space<vmem>>, vector<1x16x32xf32>
    %343 = vector.shape_cast %342 : vector<1x16x32xf32> to vector<16x32xf32>
    %344 = arith.truncf %343 : vector<16x32xf32> to vector<16x32xbf16>
    %cst_157 = arith.constant dense<0.000000e+00> : vector<32x32xf32>
    %345 = tpu.matmul %341, %344, %cst_157 {dimension_numbers = #tpu.dot_dimension_numbers<[1], [0], [0], [1], [0, 0, 1, 1], [], []>} : vector<32x16xbf16>, vector<16x32xbf16>, vector<32x32xf32> -> vector<32x32xf32>
    %346 = arith.addf %297, %345 : vector<32x32xf32>
    %c7 = arith.constant 7 : index
    %c0_158 = arith.constant 0 : index
    %c0_159 = arith.constant 0 : index
    %347 = vector.load %arg3[%c7, %c0_158, %c0_159] : memref<12x33x16xf32, #tpu.memory_space<vmem>>, vector<1x32x16xf32>
    %348 = vector.shape_cast %347 : vector<1x32x16xf32> to vector<32x16xf32>
    %349 = arith.truncf %348 : vector<32x16xf32> to vector<32x16xbf16>
    %cst_160 = arith.constant dense<0.000000e+00> : vector<32x16xf32>
    %350 = tpu.matmul %296, %349, %cst_160 {dimension_numbers = #tpu.dot_dimension_numbers<[1], [0], [0], [1], [0, 0, 1, 1], [], []>} : vector<32x32xbf16>, vector<32x16xbf16>, vector<32x16xf32> -> vector<32x16xf32>
    %c7_161 = arith.constant 7 : index
    %c32_162 = arith.constant 32 : index
    %c0_163 = arith.constant 0 : index
    %351 = vector.load %arg3[%c7_161, %c32_162, %c0_163] : memref<12x33x16xf32, #tpu.memory_space<vmem>>, vector<1x1x16xf32>
    %352 = vector.shape_cast %351 : vector<1x1x16xf32> to vector<1x16xf32>
    %353 = vector.broadcast %352 : vector<1x16xf32> to vector<32x16xf32>
    %354 = arith.addf %350, %353 : vector<32x16xf32>
    %c9 = arith.constant 9 : index
    %c0_164 = arith.constant 0 : index
    %c0_165 = arith.constant 0 : index
    %355 = vector.load %arg3[%c9, %c0_164, %c0_165] : memref<12x33x16xf32, #tpu.memory_space<vmem>>, vector<1x32x16xf32>
    %356 = vector.shape_cast %355 : vector<1x32x16xf32> to vector<32x16xf32>
    %357 = arith.truncf %356 : vector<32x16xf32> to vector<32x16xbf16>
    %cst_166 = arith.constant dense<0.000000e+00> : vector<32x16xf32>
    %358 = tpu.matmul %296, %357, %cst_166 {dimension_numbers = #tpu.dot_dimension_numbers<[1], [0], [0], [1], [0, 0, 1, 1], [], []>} : vector<32x32xbf16>, vector<32x16xbf16>, vector<32x16xf32> -> vector<32x16xf32>
    %c9_167 = arith.constant 9 : index
    %c32_168 = arith.constant 32 : index
    %c0_169 = arith.constant 0 : index
    %359 = vector.load %arg3[%c9_167, %c32_168, %c0_169] : memref<12x33x16xf32, #tpu.memory_space<vmem>>, vector<1x1x16xf32>
    %360 = vector.shape_cast %359 : vector<1x1x16xf32> to vector<1x16xf32>
    %361 = vector.broadcast %360 : vector<1x16xf32> to vector<32x16xf32>
    %362 = arith.addf %358, %361 : vector<32x16xf32>
    %c11 = arith.constant 11 : index
    %c0_170 = arith.constant 0 : index
    %c0_171 = arith.constant 0 : index
    %363 = vector.load %arg3[%c11, %c0_170, %c0_171] : memref<12x33x16xf32, #tpu.memory_space<vmem>>, vector<1x32x16xf32>
    %364 = vector.shape_cast %363 : vector<1x32x16xf32> to vector<32x16xf32>
    %365 = arith.truncf %364 : vector<32x16xf32> to vector<32x16xbf16>
    %cst_172 = arith.constant dense<0.000000e+00> : vector<32x16xf32>
    %366 = tpu.matmul %296, %365, %cst_172 {dimension_numbers = #tpu.dot_dimension_numbers<[1], [0], [0], [1], [0, 0, 1, 1], [], []>} : vector<32x32xbf16>, vector<32x16xbf16>, vector<32x16xf32> -> vector<32x16xf32>
    %c11_173 = arith.constant 11 : index
    %c32_174 = arith.constant 32 : index
    %c0_175 = arith.constant 0 : index
    %367 = vector.load %arg3[%c11_173, %c32_174, %c0_175] : memref<12x33x16xf32, #tpu.memory_space<vmem>>, vector<1x1x16xf32>
    %368 = vector.shape_cast %367 : vector<1x1x16xf32> to vector<1x16xf32>
    %369 = vector.broadcast %368 : vector<1x16xf32> to vector<32x16xf32>
    %370 = arith.addf %366, %369 : vector<32x16xf32>
    %371 = arith.truncf %354 : vector<32x16xf32> to vector<32x16xbf16>
    %372 = arith.truncf %362 : vector<32x16xf32> to vector<32x16xbf16>
    %cst_176 = arith.constant dense<0.000000e+00> : vector<32x32xf32>
    %373 = tpu.matmul %371, %372, %cst_176 {dimension_numbers = #tpu.dot_dimension_numbers<[1], [1], [0], [0], [0, 0, 1, 0], [], []>} : vector<32x16xbf16>, vector<32x16xbf16>, vector<32x32xf32> -> vector<32x32xf32>
    %cst_177 = arith.constant 2.500000e-01 : f32
    %374 = vector.broadcast %cst_177 : f32 to vector<32x32xf32>
    %375 = arith.mulf %373, %374 : vector<32x32xf32>
    %376 = arith.addf %375, %111 : vector<32x32xf32>
    %cst_178 = arith.constant dense<0xFF800000> : vector<32xf32>
    %377 = vector.multi_reduction <maximumf>, %376, %cst_178 [1] : vector<32x32xf32> to vector<32xf32>
    %378 = vector.shape_cast %377 : vector<32xf32> to vector<32x1xf32>
    %379 = vector.broadcast %378 : vector<32x1xf32> to vector<32x32xf32>
    %380 = arith.subf %376, %379 : vector<32x32xf32>
    %381 = math.exp %380 : vector<32x32xf32>
    %cst_179 = arith.constant dense<0.000000e+00> : vector<32xf32>
    %382 = vector.multi_reduction <add>, %381, %cst_179 [1] : vector<32x32xf32> to vector<32xf32>
    %383 = vector.shape_cast %382 : vector<32xf32> to vector<32x1xf32>
    %384 = tpu.reciprocal %383 {approx = true} : vector<32x1xf32> -> vector<32x1xf32>
    %385 = vector.broadcast %384 : vector<32x1xf32> to vector<32x32xf32>
    %386 = arith.mulf %381, %385 : vector<32x32xf32>
    %387 = arith.truncf %386 : vector<32x32xf32> to vector<32x32xbf16>
    %388 = arith.truncf %370 : vector<32x16xf32> to vector<32x16xbf16>
    %cst_180 = arith.constant dense<0.000000e+00> : vector<32x16xf32>
    %389 = tpu.matmul %387, %388, %cst_180 {dimension_numbers = #tpu.dot_dimension_numbers<[1], [0], [0], [1], [0, 0, 1, 1], [], []>} : vector<32x32xbf16>, vector<32x16xbf16>, vector<32x16xf32> -> vector<32x16xf32>
    %390 = arith.truncf %389 : vector<32x16xf32> to vector<32x16xbf16>
    %c3_181 = arith.constant 3 : index
    %c0_182 = arith.constant 0 : index
    %c0_183 = arith.constant 0 : index
    %391 = vector.load %arg4[%c3_181, %c0_182, %c0_183] : memref<4x16x32xf32, #tpu.memory_space<vmem>>, vector<1x16x32xf32>
    %392 = vector.shape_cast %391 : vector<1x16x32xf32> to vector<16x32xf32>
    %393 = arith.truncf %392 : vector<16x32xf32> to vector<16x32xbf16>
    %cst_184 = arith.constant dense<0.000000e+00> : vector<32x32xf32>
    %394 = tpu.matmul %390, %393, %cst_184 {dimension_numbers = #tpu.dot_dimension_numbers<[1], [0], [0], [1], [0, 0, 1, 1], [], []>} : vector<32x16xbf16>, vector<16x32xbf16>, vector<32x32xf32> -> vector<32x32xf32>
    %395 = arith.addf %346, %394 : vector<32x32xf32>
    %c1_185 = arith.constant 1 : index
    %c0_186 = arith.constant 0 : index
    %c0_187 = arith.constant 0 : index
    %396 = vector.load %arg7[%c1_185, %c0_186, %c0_187] : memref<2x7x64xf32, #tpu.memory_space<vmem>>, vector<1x1x32xf32>
    %397 = vector.shape_cast %396 : vector<1x1x32xf32> to vector<1x32xf32>
    %398 = vector.broadcast %397 : vector<1x32xf32> to vector<32x32xf32>
    %399 = arith.addf %395, %398 : vector<32x32xf32>
    %400 = arith.addf %399, %295 : vector<32x32xf32>
    %c1_188 = arith.constant 1 : index
    %c1_189 = arith.constant 1 : index
    %c0_190 = arith.constant 0 : index
    %401 = vector.load %arg7[%c1_188, %c1_189, %c0_190] : memref<2x7x64xf32, #tpu.memory_space<vmem>>, vector<1x1x32xf32>
    %402 = vector.shape_cast %401 : vector<1x1x32xf32> to vector<1x32xf32>
    %c1_191 = arith.constant 1 : index
    %c2_192 = arith.constant 2 : index
    %c0_193 = arith.constant 0 : index
    %403 = vector.load %arg7[%c1_191, %c2_192, %c0_193] : memref<2x7x64xf32, #tpu.memory_space<vmem>>, vector<1x1x32xf32>
    %404 = vector.shape_cast %403 : vector<1x1x32xf32> to vector<1x32xf32>
    %cst_194 = arith.constant dense<0.000000e+00> : vector<32xf32>
    %405 = vector.multi_reduction <add>, %400, %cst_194 [1] : vector<32x32xf32> to vector<32xf32>
    %406 = vector.shape_cast %405 : vector<32xf32> to vector<32x1xf32>
    %cst_195 = arith.constant 3.200000e+01 : f32
    %407 = vector.broadcast %cst_195 : f32 to vector<32x1xf32>
    %408 = arith.divf %406, %407 : vector<32x1xf32>
    %409 = vector.broadcast %408 : vector<32x1xf32> to vector<32x32xf32>
    %410 = arith.subf %400, %409 : vector<32x32xf32>
    %411 = arith.mulf %410, %410 : vector<32x32xf32>
    %cst_196 = arith.constant dense<0.000000e+00> : vector<32xf32>
    %412 = vector.multi_reduction <add>, %411, %cst_196 [1] : vector<32x32xf32> to vector<32xf32>
    %413 = vector.shape_cast %412 : vector<32xf32> to vector<32x1xf32>
    %cst_197 = arith.constant 3.200000e+01 : f32
    %414 = vector.broadcast %cst_197 : f32 to vector<32x1xf32>
    %415 = arith.divf %413, %414 : vector<32x1xf32>
    %416 = vector.broadcast %408 : vector<32x1xf32> to vector<32x32xf32>
    %417 = arith.subf %400, %416 : vector<32x32xf32>
    %cst_198 = arith.constant 9.99999996E-13 : f32
    %418 = vector.broadcast %cst_198 : f32 to vector<32x1xf32>
    %419 = arith.addf %415, %418 : vector<32x1xf32>
    %420 = math.rsqrt %419 : vector<32x1xf32>
    %421 = vector.broadcast %420 : vector<32x1xf32> to vector<32x32xf32>
    %422 = arith.mulf %417, %421 : vector<32x32xf32>
    %423 = vector.broadcast %402 : vector<1x32xf32> to vector<32x32xf32>
    %424 = arith.mulf %422, %423 : vector<32x32xf32>
    %425 = vector.broadcast %404 : vector<1x32xf32> to vector<32x32xf32>
    %426 = arith.addf %424, %425 : vector<32x32xf32>
    %427 = arith.truncf %426 : vector<32x32xf32> to vector<32x32xbf16>
    %c1_199 = arith.constant 1 : index
    %c0_200 = arith.constant 0 : index
    %c0_201 = arith.constant 0 : index
    %428 = vector.load %arg5[%c1_199, %c0_200, %c0_201] : memref<2x32x64xf32, #tpu.memory_space<vmem>>, vector<1x32x64xf32>
    %429 = vector.shape_cast %428 : vector<1x32x64xf32> to vector<32x64xf32>
    %430 = arith.truncf %429 : vector<32x64xf32> to vector<32x64xbf16>
    %cst_202 = arith.constant dense<0.000000e+00> : vector<32x64xf32>
    %431 = tpu.matmul %427, %430, %cst_202 {dimension_numbers = #tpu.dot_dimension_numbers<[1], [0], [0], [1], [0, 0, 1, 1], [], []>} : vector<32x32xbf16>, vector<32x64xbf16>, vector<32x64xf32> -> vector<32x64xf32>
    %c1_203 = arith.constant 1 : index
    %c3_204 = arith.constant 3 : index
    %c0_205 = arith.constant 0 : index
    %432 = vector.load %arg7[%c1_203, %c3_204, %c0_205] : memref<2x7x64xf32, #tpu.memory_space<vmem>>, vector<1x1x64xf32>
    %433 = vector.shape_cast %432 : vector<1x1x64xf32> to vector<1x64xf32>
    %434 = vector.broadcast %433 : vector<1x64xf32> to vector<32x64xf32>
    %435 = arith.addf %431, %434 : vector<32x64xf32>
    %cst_206 = arith.constant 5.000000e-01 : f32
    %436 = vector.broadcast %cst_206 : f32 to vector<32x64xf32>
    %437 = arith.mulf %435, %436 : vector<32x64xf32>
    %cst_207 = arith.constant 0.707106769 : f32
    %438 = vector.broadcast %cst_207 : f32 to vector<32x64xf32>
    %439 = arith.mulf %435, %438 : vector<32x64xf32>
    %440 = math.erf %439 : vector<32x64xf32>
    %cst_208 = arith.constant 1.000000e+00 : f32
    %441 = vector.broadcast %cst_208 : f32 to vector<32x64xf32>
    %442 = arith.addf %441, %440 : vector<32x64xf32>
    %443 = arith.mulf %437, %442 : vector<32x64xf32>
    %444 = arith.truncf %443 : vector<32x64xf32> to vector<32x64xbf16>
    %c1_209 = arith.constant 1 : index
    %c0_210 = arith.constant 0 : index
    %c0_211 = arith.constant 0 : index
    %445 = vector.load %arg6[%c1_209, %c0_210, %c0_211] : memref<2x64x32xf32, #tpu.memory_space<vmem>>, vector<1x64x32xf32>
    %446 = vector.shape_cast %445 : vector<1x64x32xf32> to vector<64x32xf32>
    %447 = arith.truncf %446 : vector<64x32xf32> to vector<64x32xbf16>
    %cst_212 = arith.constant dense<0.000000e+00> : vector<32x32xf32>
    %448 = tpu.matmul %444, %447, %cst_212 {dimension_numbers = #tpu.dot_dimension_numbers<[1], [0], [0], [1], [0, 0, 1, 1], [], []>} : vector<32x64xbf16>, vector<64x32xbf16>, vector<32x32xf32> -> vector<32x32xf32>
    %c1_213 = arith.constant 1 : index
    %c4_214 = arith.constant 4 : index
    %c0_215 = arith.constant 0 : index
    %449 = vector.load %arg7[%c1_213, %c4_214, %c0_215] : memref<2x7x64xf32, #tpu.memory_space<vmem>>, vector<1x1x32xf32>
    %450 = vector.shape_cast %449 : vector<1x1x32xf32> to vector<1x32xf32>
    %451 = vector.broadcast %450 : vector<1x32xf32> to vector<32x32xf32>
    %452 = arith.addf %448, %451 : vector<32x32xf32>
    %453 = arith.addf %452, %426 : vector<32x32xf32>
    %c1_216 = arith.constant 1 : index
    %c5_217 = arith.constant 5 : index
    %c0_218 = arith.constant 0 : index
    %454 = vector.load %arg7[%c1_216, %c5_217, %c0_218] : memref<2x7x64xf32, #tpu.memory_space<vmem>>, vector<1x1x32xf32>
    %455 = vector.shape_cast %454 : vector<1x1x32xf32> to vector<1x32xf32>
    %c1_219 = arith.constant 1 : index
    %c6_220 = arith.constant 6 : index
    %c0_221 = arith.constant 0 : index
    %456 = vector.load %arg7[%c1_219, %c6_220, %c0_221] : memref<2x7x64xf32, #tpu.memory_space<vmem>>, vector<1x1x32xf32>
    %457 = vector.shape_cast %456 : vector<1x1x32xf32> to vector<1x32xf32>
    %cst_222 = arith.constant dense<0.000000e+00> : vector<32xf32>
    %458 = vector.multi_reduction <add>, %453, %cst_222 [1] : vector<32x32xf32> to vector<32xf32>
    %459 = vector.shape_cast %458 : vector<32xf32> to vector<32x1xf32>
    %cst_223 = arith.constant 3.200000e+01 : f32
    %460 = vector.broadcast %cst_223 : f32 to vector<32x1xf32>
    %461 = arith.divf %459, %460 : vector<32x1xf32>
    %462 = vector.broadcast %461 : vector<32x1xf32> to vector<32x32xf32>
    %463 = arith.subf %453, %462 : vector<32x32xf32>
    %464 = arith.mulf %463, %463 : vector<32x32xf32>
    %cst_224 = arith.constant dense<0.000000e+00> : vector<32xf32>
    %465 = vector.multi_reduction <add>, %464, %cst_224 [1] : vector<32x32xf32> to vector<32xf32>
    %466 = vector.shape_cast %465 : vector<32xf32> to vector<32x1xf32>
    %cst_225 = arith.constant 3.200000e+01 : f32
    %467 = vector.broadcast %cst_225 : f32 to vector<32x1xf32>
    %468 = arith.divf %466, %467 : vector<32x1xf32>
    %469 = vector.broadcast %461 : vector<32x1xf32> to vector<32x32xf32>
    %470 = arith.subf %453, %469 : vector<32x32xf32>
    %cst_226 = arith.constant 9.99999996E-13 : f32
    %471 = vector.broadcast %cst_226 : f32 to vector<32x1xf32>
    %472 = arith.addf %468, %471 : vector<32x1xf32>
    %473 = math.rsqrt %472 : vector<32x1xf32>
    %474 = vector.broadcast %473 : vector<32x1xf32> to vector<32x32xf32>
    %475 = arith.mulf %470, %474 : vector<32x32xf32>
    %476 = vector.broadcast %455 : vector<1x32xf32> to vector<32x32xf32>
    %477 = arith.mulf %475, %476 : vector<32x32xf32>
    %478 = vector.broadcast %457 : vector<1x32xf32> to vector<32x32xf32>
    %479 = arith.addf %477, %478 : vector<32x32xf32>
    %480 = vector.shape_cast %479 : vector<32x32xf32> to vector<4x8x32xf32>
    %481 = vector.extract_strided_slice %480 {offsets = [0, 0, 0], sizes = [4, 1, 32], strides = [1, 1, 1]} : vector<4x8x32xf32> to vector<4x1x32xf32>
    %482 = vector.shape_cast %481 : vector<4x1x32xf32> to vector<4x32xf32>
    %483 = arith.truncf %482 : vector<4x32xf32> to vector<4x32xbf16>
    %c0_227 = arith.constant 0 : index
    %c0_228 = arith.constant 0 : index
    %484 = vector.load %arg8[%c0_227, %c0_228] : memref<35x32xf32, #tpu.memory_space<vmem>>, vector<32x32xf32>
    %485 = arith.truncf %484 : vector<32x32xf32> to vector<32x32xbf16>
    %cst_229 = arith.constant dense<0.000000e+00> : vector<4x32xf32>
    %486 = tpu.matmul %483, %485, %cst_229 {dimension_numbers = #tpu.dot_dimension_numbers<[1], [0], [0], [1], [0, 0, 1, 1], [], []>} : vector<4x32xbf16>, vector<32x32xbf16>, vector<4x32xf32> -> vector<4x32xf32>
    %c32_230 = arith.constant 32 : index
    %c0_231 = arith.constant 0 : index
    %487 = vector.load %arg8[%c32_230, %c0_231] : memref<35x32xf32, #tpu.memory_space<vmem>>, vector<1x32xf32>
    %488 = vector.broadcast %487 : vector<1x32xf32> to vector<4x32xf32>
    %489 = arith.addf %486, %488 : vector<4x32xf32>
    %cst_232 = arith.constant 0.000000e+00 : f32
    %490 = vector.broadcast %cst_232 : f32 to vector<4x32xf32>
    %491 = arith.maximumf %489, %490 : vector<4x32xf32>
    %c33 = arith.constant 33 : index
    %c0_233 = arith.constant 0 : index
    %492 = vector.load %arg8[%c33, %c0_233] : memref<35x32xf32, #tpu.memory_space<vmem>>, vector<1x32xf32>
    %c34 = arith.constant 34 : index
    %c0_234 = arith.constant 0 : index
    %493 = vector.load %arg8[%c34, %c0_234] : memref<35x32xf32, #tpu.memory_space<vmem>>, vector<1x1xf32>
    %494 = vector.broadcast %492 : vector<1x32xf32> to vector<4x32xf32>
    %495 = arith.mulf %491, %494 : vector<4x32xf32>
    %cst_235 = arith.constant dense<0.000000e+00> : vector<4xf32>
    %496 = vector.multi_reduction <add>, %495, %cst_235 [1] : vector<4x32xf32> to vector<4xf32>
    %497 = vector.shape_cast %496 : vector<4xf32> to vector<4x1xf32>
    %498 = vector.broadcast %493 : vector<1x1xf32> to vector<4x1xf32>
    %499 = arith.addf %497, %498 : vector<4x1xf32>
    %500 = math.tanh %499 : vector<4x1xf32>
    %c0_236 = arith.constant 0 : index
    %c0_237 = arith.constant 0 : index
    %501 = vector.load %arg9[%c0_236, %c0_237] : memref<4x1xf32, #tpu.memory_space<vmem>>, vector<4x1xf32>
    tpu.vector_store %arg9[%c0_236, %c0_237], %500 {strides = array<i32>} : memref<4x1xf32, #tpu.memory_space<vmem>>, vector<4x1xf32>,
    return
  }
}

</mosaic_0001>

<bundles_post_ra>
// kernel: electra_energy_discriminator_forward.1
= control target key start
LH: loop header
LB: loop body
LE: loop exit
PB: predicated region body
PF: predicated region fallthrough
CT: control target
= control target key end

     0   :  { %v42_v0 = vlaneseq  ;;  %v3590_v1 = vmov 0   ;;  %vm125_vm1 = vcmask 1040384   ;;  %vm185_vm2 = vcmask 1041408   ;;  %s4436_s1 = inlined_call_operand.vmem [shape: f32[1,32], index: 1, kind: input, shape index: {}]   ;;  %s4437_s0 = inlined_call_operand.vmem [shape: s32[2,32,1], index: 0, kind: input, shape index: {}]   ;;  %s4438_s2 = inlined_call_operand.vmem [shape: f32[128,32], index: 2, kind: input, shape index: {}]   ;;  %s4439_s3 = inlined_call_operand.vmem [shape: f32[12,33,16], index: 3, kind: input, shape index: {}]   ;;  %s4440_s4 = inlined_call_operand.vmem [shape: f32[4,16,32], index: 4, kind: input, shape index: {}]   ;;  %s4441_s7 = inlined_call_operand.vmem [shape: f32[2,7,64], index: 7, kind: input, shape index: {}]   ;;  %s4442_s5 = inlined_call_operand.vmem [shape: f32[2,32,64], index: 5, kind: input, shape index: {}]   ;;  %s4443_s6 = inlined_call_operand.vmem [shape: f32[2,64,32], index: 6, kind: input, shape index: {}]   ;;  %s4444_s8 = inlined_call_operand.vmem [shape: f32[35,32], index: 8, kind: input, shape index: {}]   ;;  %s4445_s9 = inlined_call_operand.vmem [shape: f32[4,1], index: 9, kind: output, shape index: {}]  }
   0x1   :  { %3467 = vset.pattern.permute.xlu1 %v3590_v1  ;;  %v420_v2 = vld [vmem:[%s4436_s1] sm:$0x1]  ;;  %3466 = vset.pattern.permute.xlu0 %v3590_v1  ;;  %v2874_v7 = vld [vmem:[%s4437_s0 + $0x28] sm:$0xff]  ;;  %v72_v12 = vld [vmem:[%s4438_s2 + $0x10] sm:$0xff]  ;;  %vm118_vm7 = vcmask 15360   ;;  %vm178_vm8 = vcmask 818176  }
   0x2   :  { %v2873_v3 = vld [vmem:[%s4437_s0 + $0x20] sm:$0xff]  ;;  %vm421_vm0 = vcmp.gt.f32.partialorder %v420_v2, 0.5  ;;  %v424_v5 = vshrl.u32 %v42_v0, 7  ;;  %v34_v8 = vld [vmem:[%s4437_s0 + $0x8] sm:$0xff]  ;;  %v73_v14 = vld [vmem:[%s4438_s2 + $0x18] sm:$0xff]  ;;  %v3717_v39 = vand.u32 127, %v42_v0 }
   0x3   :  { %v33_v4 = vld [vmem:[%s4437_s0] sm:$0xff]  ;;  %91 = vperm.xlu1 %3467, %v2873_v3   ;;  %v422_v6 = vsel %vm421_vm0, 1, %v3590_v1  ;;  %v71_v11 = vld [vmem:[%s4438_s2 + $0x8] sm:$0xff]  ;;  %v84_v16 = vpack.c.bf16 %v73_v14, %v72_v12  ;;  %v36_v19 = vld [vmem:[%s4437_s0 + $0x18] sm:$0xff]  ;;  %v3591_v44 = vmov 0.0   ;;  %vm245_vm13 = vcmask 261120  }
   0x4   :  { %45 = vperm.xlu0 %3466, %v33_v4   ;;  %v425_v9 = vsub.s32 0, %v424_v5  ;;  %v70_v10 = vld [vmem:[%s4438_s2] sm:$0xff]  ;;  %v75_v18 = vld [vmem:[%s4438_s2 + $0x28] sm:$0xff]  ;;  %v35_v20 = vld [vmem:[%s4437_s0 + $0x10] sm:$0xff]  ;;  %vm630_vm14 = vcmask 130048   ;;  %vm380_vm15 = vcmp.ge.s32.totalorder %v3717_v39, 16 }
   0x5   :  { %v83_v13 = vpack.c.bf16 %v71_v11, %v70_v10  ;;  %v74_v17 = vld [vmem:[%s4438_s2 + $0x20] sm:$0xff]  ;;  %v76_v22 = vld [vmem:[%s4438_s2 + $0x30] sm:$0xff]  ;;  %v77_v23 = vld [vmem:[%s4438_s2 + $0x38] sm:$0xff]  ;;  %vm385_vm0 = vcmp.lt.s32.totalorder %v3717_v39, 24 }
   0x6   :  { %v3672_v15 = vrot.slane %v422_v6, %v425_v9  ;;  %v85_v21 = vpack.c.bf16 %v75_v18, %v74_v17  ;;  %v2876_v24 = vld [vmem:[%s4437_s0 + $0x38] sm:$0xff]  ;;  %v2875_v25 = vld [vmem:[%s4437_s0 + $0x30] sm:$0xff]  ;;  %v86_v28 = vpack.c.bf16 %v77_v23, %v76_v22  ;;  %v78_v29 = vld [vmem:[%s4438_s2 + $0x40] sm:$0xff] }
   0x7   :  { %94 = vperm.xlu1 %3467, %v2874_v7   ;;  %3190 = vmatprep.subr.bf16.mxu0 %v83_v13  ;;  %v116_v26 = vld [vmem:[%s4438_s2 + $0x78] sm:$0x3]  ;;  %v79_v30 = vld [vmem:[%s4438_s2 + $0x48] sm:$0xff]  ;;  %v80_v33 = vld [vmem:[%s4438_s2 + $0x50] sm:$0xff] }
   0x8   :  { %48 = vperm.xlu0 %3466, %v34_v8   ;;  %3191 = vmatpush3.bf16.msra.mxu0 %v83_v13  ;;  %v117_v27 = vpack.c.bf16 %v116_v26, %v116_v26  ;;  %v87_v32 = vpack.c.bf16 %v79_v30, %v78_v29  ;;  %v81_v34 = vld [vmem:[%s4438_s2 + $0x58] sm:$0xff]  ;;  %v82_v36 = vld [vmem:[%s4438_s2 + $0x60] sm:$0xf]  ;;  %v238_v4 = vld [vmem:[%s4438_s2 + $0x68] sm:$0xff] }
   0x9   :  { %3192 = vmatprep.subr.bf16.mxu0 %v84_v16  ;;  %v88_v35 = vpack.c.bf16 %v81_v34, %v80_v33  ;;  %v89_v37 = vpack.c.bf16 %v82_v36, %v82_v36 }
   0xa   :  { %v127_v31 = vsel %vm125_vm1, %v117_v27, 0  ;;  %3452 = vmatprep.subr.msk.bf16.mxu1 %vm125_vm1, %v117_v27  ;;  %vm427_vm1 = vcmp.eq.s32.totalorder %v3672_v15, 1 }
   0xb   :  { %54 = vperm.xlu1 %3467, %v36_v19   ;;  %3185 = vmatpush3.bf16.msra.mxu1 %v127_v31  ;;  %v187_v38 = vsel %vm185_vm2, %v89_v37, 0 }
   0xc   :  { %51 = vperm.xlu0 %3466, %v35_v20   ;;  %3193 = vmatpush3.bf16.msra.mxu0 %v84_v16 }
   0xd   :  { %3194 = vmatprep.subr.bf16.mxu0 %v85_v21 }
   0xf   :  { %100 = vperm.xlu1 %3467, %v2876_v24  }
  0x10   :  { %97 = vperm.xlu0 %3466, %v2875_v25   ;;  %3195 = vmatpush3.bf16.msra.mxu0 %v85_v21 }
  0x11   :  { %3196 = vmatprep.subr.bf16.mxu0 %v86_v28 }
  0x14   :  { %3197 = vmatpush3.bf16.msra.mxu0 %v86_v28 }
  0x15   :  { %3198 = vmatprep.subr.bf16.mxu0 %v87_v32 }
  0x18   :  { %3199 = vmatpush3.bf16.msra.mxu0 %v87_v32 }
  0x19   :  { %3200 = vmatprep.subr.bf16.mxu0 %v88_v35 }
  0x1c   :  { %3201 = vmatpush3.bf16.msra.mxu0 %v88_v35 }
  0x1d   :  { %3453 = vmatprep.subr.msk.bf16.mxu0 %vm185_vm2, %v89_v37  ;;  %vm388_vm2 = vmand %vm380_vm15, %vm385_vm0  ;;  %vm1473_vm0 = vcmask 523264  }
  0x20   :  { %3203 = vmatpush3.bf16.msra.mxu0 %v187_v38 }
  0x82   :  { %v92_v40 = vpop.permute.xlu1 %91 }
  0x83   :  { %v46_v41 = vpop.permute.xlu0 %45  ;;  %vm102_vm3 = vcmp.eq.s32.totalorder %v92_v40, %v3717_v39  ;;  %v438_v40 = vld [vmem:[%s4439_s3] sm:$0xff] }
  0x84   :  { %vm56_vm4 = vcmp.eq.s32.totalorder %v46_v41, %v3717_v39  ;;  %v2881_v45 = vsel %vm102_vm3, 1.0, %v3591_v44  ;;  %v439_v41 = vld [vmem:[%s4439_s3 + $0x8] sm:$0xff]  ;;  %vm354_vm3 = vcmp.ge.s32.totalorder %v3717_v39, 8 }
  0x85   :  { %v2877_v46 = vsel %vm56_vm4, 1.0, %v3591_v44  ;;  %vm359_vm4 = vcmp.lt.s32.totalorder %v3717_v39, 16 }
  0x86   :  { %v95_v42 = vpop.permute.xlu1 %94 }
  0x87   :  { %v49_v43 = vpop.permute.xlu0 %48  ;;  %vm103_vm5 = vcmp.eq.s32.totalorder %v95_v42, %v3717_v39  ;;  %v442_v42 = vpack.c.bf16 %v439_v41, %v438_v40  ;;  %v2899_v41 = vld [vmem:[%s4439_s3 + $0x70] ss:$0 sm:$0xff] }
  0x88   :  { %vm57_vm6 = vcmp.eq.s32.totalorder %v49_v43, %v3717_v39  ;;  %v2882_v47 = vsel %vm103_vm5, 1.0, %v3591_v44  ;;  %v440_v43 = vld [vmem:[%s4439_s3 + $0x10] sm:$0xff]  ;;  %vm337_vm5 = vcmp.lt.s32.totalorder %v3717_v39, 8 }
  0x89   :  { %v2878_v48 = vsel %vm57_vm6, 1.0, %v3591_v44  ;;  %v114_v49 = vpack.c.bf16 %v2882_v47, %v2881_v45  ;;  %3208 = vmatprep.subr.bf16.mxu1 %v442_v42  ;;  %v441_v45 = vld [vmem:[%s4439_s3 + $0x18] sm:$0xff]  ;;  %v2894_v47 = vld [vmem:[%s4439_s3 + $0x50] sm:$0xff]  ;;  %vm3859_vm6 = vmand %vm388_vm2, %vm427_vm1  ;;  %vm2800_vm2 = vcmask 1042434  }
  0x8a   :  { %v68_v50 = vpack.c.bf16 %v2878_v48, %v2877_v46  ;;  %v55_v51 = vpop.permute.xlu1 %54  ;;  %v443_v46 = vpack.c.bf16 %v441_v45, %v440_v43  ;;  %v2895_v48 = vld [vmem:[%s4439_s3 + $0x58] sm:$0xff] }
  0x8b   :  { %v52_v52 = vpop.permute.xlu0 %51  ;;  %vm59_vm9 = vcmp.eq.s32.totalorder %v55_v51, %v3717_v39  ;;  %3186 = vmatprep.mubr.msk.bf16.mxu1 %vm118_vm7, %v114_v49  ;;  %v509_v49 = vpack.c.bf16 %v2895_v48, %v2894_v47 }
  0x8c   :  { %vm58_vm10 = vcmp.eq.s32.totalorder %v52_v52, %v3717_v39  ;;  %3204 = vmatprep.mubr.msk.bf16.mxu0 %vm178_vm8, %v68_v50  ;;  %v2880_v53 = vsel %vm59_vm9, 1.0, %v3591_v44  ;;  %vm361_vm9 = vmand %vm354_vm3, %vm359_vm4  ;;  %vm2803_vm3 = vcmask 1043459   ;;  %vm2857_vm4 = vcmask 257024  }
  0x8d   :  { %v2879_v54 = vsel %vm58_vm10, 1.0, %v3591_v44  ;;  %vm428_vm10 = vmand %vm337_vm5, %vm427_vm1 }
  0x8e   :  { %v69_v55 = vpack.c.bf16 %v2880_v53, %v2879_v54  ;;  %v101_v56 = vpop.permute.xlu1 %100 }
  0x8f   :  { %v98_v57 = vpop.permute.xlu0 %97  ;;  %vm105_vm11 = vcmp.eq.s32.totalorder %v101_v56, %v3717_v39 }
  0x90   :  { %vm104_vm12 = vcmp.eq.s32.totalorder %v98_v57, %v3717_v39  ;;  %3205 = vmatmul.mubr.msk.bf16.vlgmr.msra.gmra.mrb[0].mxu0 %vm178_vm8, %v69_v55  ;;  %v2884_v58 = vsel %vm105_vm11, 1.0, %v3591_v44  ;;  %vm411_vm8 = vcmp.lt.s32.totalorder %v3717_v39, 32 }
  0x91   :  { %v2883_v59 = vsel %vm104_vm12, 1.0, %v3591_v44  ;;  %vm429_vm12 = vmand %vm361_vm9, %vm427_vm1 }
  0x92   :  { %v115_v60 = vpack.c.bf16 %v2884_v58, %v2883_v59 }
  0x94   :  { %3187 = vmatmul.mubr.msk.bf16.vlgmr.msra.gmra.mrb[0].mxu1 %vm118_vm7, %v115_v60  ;;  %vm406_vm7 = vcmp.ge.s32.totalorder %v3717_v39, 24 }
  0x95   :  { %3209 = vmatpush3.bf16.msra.mxu1 %v442_v42  ;;  %vm415_vm11 = vmand %vm406_vm7, %vm411_vm8 }
  0x96   :  { %3210 = vmatprep.subr.bf16.mxu1 %v443_v46  ;;  %vm431_vm15 = vmand %vm415_vm11, %vm427_vm1  ;;  %vm2797_vm1 = vcmask 1041409  }
  0x99   :  { %3211 = vmatpush3.bf16.msra.mxu1 %v443_v46 }
  0x9a   :  { %3216 = vmatprep.subr.bf16.mxu1 %v509_v49 }
 0x163   :  { %v3206_v61 = vpop.f32.mrb[0].mxu0 }
 0x164   :  { %v223_v62 = vpop.f32.mrb[1].mxu0 }
 0x165   :  { %v3207_v63 = vpop.f32.mrb[2].mxu0 }
 0x166   :  { %v226_v0 = vpop.f32.mrb[3].mxu0 }
 0x167   :  { %v3188_v1 = vpop.f32.mrb[0].mxu1 }
 0x168   :  { %v232_v2 = vadd.f32 %v3206_v61, %v3188_v1  ;;  %v163_v3 = vpop.f32.mrb[1].mxu1 }
 0x169   :  { %v224_v5 = vadd.f32 %v223_v62, %v163_v3  ;;  %v3189_v6 = vpop.f32.mrb[2].mxu1 }
 0x16a   :  { %v235_v7 = vadd.f32 %v3207_v63, %v3189_v6  ;;  %v166_v8 = vpop.f32.mrb[3].mxu1  ;;  %v241_v13 = vadd.f32 %v238_v4, %v232_v2  ;;  %v2889_v63 = vld [vmem:[%s4438_s2 + $0x7a] ss:$0 sm:$0xff] }
 0x16b   :  { %v227_v9 = vadd.f32 %v226_v0, %v166_v8  ;;  %v239_v10 = vadd.f32 %v238_v4, %v224_v5  ;;  %v2890_v5 = vld [vmem:[%s4438_s2 + $0x7b] ss:$0 sm:$0xff] }
 0x16c   :  { %v252_v16 = vsel %vm245_vm13, %v241_v13, 0.0  ;;  %v242_v17 = vadd.f32 %v238_v4, %v235_v7 }
 0x16d   :  { %v246_v11 = vsel %vm245_vm13, %v239_v10, 0.0  ;;  %v240_v12 = vadd.f32 %v238_v4, %v227_v9 }
 0x16e   :  { %247 = vadd.xlane.f32.xlu0 %v246_v11  ;;  %v255_v18 = vsel %vm245_vm13, %v242_v17, 0.0 }
 0x16f   :  { %v249_v14 = vsel %vm245_vm13, %v240_v12, 0.0 }
 0x170   :  { %250 = vadd.xlane.f32.xlu1 %v249_v14 }
 0x172   :  { %253 = vadd.xlane.f32.xlu0 %v252_v16  ;;  %v2896_v16 = vld [vmem:[%s4439_s3 + $0x60] sm:$0xff] }
 0x176   :  { %256 = vadd.xlane.f32.xlu0 %v255_v18 }
 0x1fb   :  { %v248_v19 = vpop.xlane.xlu0 %247 }
 0x1fc   :  { %v259_v20 = vmul.f32 0.03125, %v248_v19 }
 0x1fd   :  { %v251_v21 = vpop.xlane.xlu1 %250 }
 0x1fe   :  { %v263_v22 = vsub.f32 %v239_v10, %v259_v20  ;;  %v260_v23 = vmul.f32 0.03125, %v251_v21 }
 0x1ff   :  { %v254_v24 = vpop.xlane.xlu0 %253 }
 0x200   :  { %v264_v25 = vsub.f32 %v240_v12, %v260_v23  ;;  %v261_v26 = vmul.f32 0.03125, %v254_v24  ;;  %v267_v27 = vmul.f32 %v263_v22, %v263_v22  ;;  %v2903_v23 = vld [vmem:[%s4439_s3 + $0xa8] sm:$0xff] }
 0x202   :  { %v265_v28 = vsub.f32 %v241_v13, %v261_v26  ;;  %v271_v29 = vsel %vm245_vm13, %v267_v27, 0.0  ;;  %v268_v30 = vmul.f32 %v264_v25, %v264_v25  ;;  %v2905_v26 = vld [vmem:[%s4439_s3 + $0xb8] sm:$0xff] }
 0x203   :  { %v257_v31 = vpop.xlane.xlu0 %256  ;;  %272 = vadd.xlane.f32.xlu1 %v271_v29  ;;  %v2891_v29 = vld [vmem:[%s4439_s3 + $0x20] ss:$0 sm:$0xff] }
 0x204   :  { %v262_v32 = vmul.f32 0.03125, %v257_v31  ;;  %v274_v33 = vsel %vm245_vm13, %v268_v30, 0.0  ;;  %v269_v34 = vmul.f32 %v265_v28, %v265_v28 }
 0x205   :  { %275 = vadd.xlane.f32.xlu0 %v274_v33 }
 0x206   :  { %v266_v35 = vsub.f32 %v242_v17, %v262_v32  ;;  %v277_v36 = vsel %vm245_vm13, %v269_v34, 0.0  ;;  %v2897_v17 = vld [vmem:[%s4439_s3 + $0x68] sm:$0xff] }
 0x207   :  { %278 = vadd.xlane.f32.xlu1 %v277_v36  ;;  %v510_v21 = vpack.c.bf16 %v2897_v17, %v2896_v16 }
 0x208   :  { %v270_v37 = vmul.f32 %v266_v35, %v266_v35 }
 0x20a   :  { %v280_v38 = vsel %vm245_vm13, %v270_v37, 0.0 }
 0x20b   :  { %281 = vadd.xlane.f32.xlu0 %v280_v38 }
 0x290   :  { %v273_v50 = vpop.xlane.xlu1 %272 }
 0x291   :  { %v283_v51 = vmul.f32 0.03125, %v273_v50 }
 0x292   :  { %v276_v52 = vpop.xlane.xlu0 %275 }
 0x293   :  { %v287_v53 = vadd.f32 1e-12, %v283_v51  ;;  %v284_v54 = vmul.f32 0.03125, %v276_v52 }
 0x294   :  { %v279_v55 = vpop.xlane.xlu1 %278 }
 0x295   :  { %3468 = vrsqrt.f32 %v287_v53  ;;  %v288_v56 = vadd.f32 1e-12, %v284_v54  ;;  %v285_v57 = vmul.f32 0.03125, %v279_v55  ;;  %v2907_v53 = vld [vmem:[%s4439_s3 + $0xc0] ss:$0 sm:$0xff] }
 0x297   :  { %3470 = vrsqrt.f32 %v288_v56  ;;  %v289_v58 = vadd.f32 1e-12, %v285_v57 }
 0x298   :  { %v282_v59 = vpop.xlane.xlu0 %281 }
 0x299   :  { %3472 = vrsqrt.f32 %v289_v58  ;;  %v286_v60 = vmul.f32 0.03125, %v282_v59 }
 0x29b   :  { %v290_v61 = vadd.f32 1e-12, %v286_v60  ;;  %v2922_v60 = vld [vmem:[%s4439_s3 + $0x78] sm:$0xff] }
 0x29d   :  { %3474 = vrsqrt.f32 %v290_v61  ;;  %v2923_v61 = vld [vmem:[%s4439_s3 + $0x80] sm:$0xff] }
 0x29f   :  { %v3469_v62 = vpop.eup %3468 }
 0x2a0   :  { %v295_v0 = vmul.f32 %v3469_v62, %v263_v22  ;;  %v2902_v22 = vld [vmem:[%s4439_s3 + $0xa0] sm:$0xff] }
 0x2a1   :  { %v3471_v1 = vpop.eup %3470  ;;  %v570_v24 = vpack.c.bf16 %v2903_v23, %v2902_v22 }
 0x2a2   :  { %v303_v2 = vmul.f32 %v2889_v63, %v295_v0  ;;  %v296_v3 = vmul.f32 %v3471_v1, %v264_v25  ;;  %v2904_v25 = vld [vmem:[%s4439_s3 + $0xb0] sm:$0xff] }
 0x2a3   :  { %v3473_v4 = vpop.eup %3472  ;;  %v571_v27 = vpack.c.bf16 %v2905_v26, %v2904_v25 }
 0x2a4   :  { %v304_v6 = vmul.f32 %v2889_v63, %v296_v3  ;;  %v297_v7 = vmul.f32 %v3473_v4, %v265_v28  ;;  %v3774_v8 = vadd.f32 %v2890_v5, %v303_v2  ;;  %v874_v2 = vpack.c.bf16 %v2923_v61, %v2922_v60  ;;  %v2924_v4 = vld [vmem:[%s4439_s3 + $0x88] sm:$0xff] }
 0x2a6   :  { %v3776_v9 = vadd.f32 %v2890_v5, %v304_v6  ;;  %v305_v11 = vmul.f32 %v2889_v63, %v297_v7 }
 0x2a7   :  { %v3475_v10 = vpop.eup %3474 }
 0x2a8   :  { %v298_v12 = vmul.f32 %v3475_v10, %v266_v35  ;;  %v3780_v13 = vpack.c.bf16 %v3776_v9, %v3774_v8  ;;  %v3790_v18 = vadd.f32 %v2890_v5, %v305_v11 }
 0x2aa   :  { %v306_v14 = vmul.f32 %v2889_v63, %v298_v12  ;;  %3212 = vmatprep.mubr.msk.bf16.mxu1 %vm245_vm13, %v3780_v13  ;;  %v3592_v12 = vmov -1e+09  }
 0x2ab   :  { %v3873_v22 = vsel %vm429_vm12, 0.0, %v3592_v12  ;;  %v3877_v23 = vsel %vm3859_vm6, 0.0, %v3592_v12 }
 0x2ac   :  { %v3792_v19 = vadd.f32 %v2890_v5, %v306_v14  ;;  %v2925_v5 = vld [vmem:[%s4439_s3 + $0x90] sm:$0xff]  ;;  %v3869_v14 = vsel %vm428_vm10, 0.0, %v3592_v12 }
 0x2ad   :  { %v875_v6 = vpack.c.bf16 %v2925_v5, %v2924_v4  ;;  %v2914_v5 = vld [vmem:[%s4439_s3 + $0x28] sm:$0xff] }
 0x2ae   :  { %v3796_v20 = vpack.c.bf16 %v3792_v19, %v3790_v18 }
 0x2b0   :  { %3213 = vmatmul.mubr.msk.bf16.vlgmr.msra.gmra.mrb[4].mxu1 %vm245_vm13, %v3796_v20 }
 0x2b1   :  { %3217 = vmatpush3.bf16.msra.mxu1 %v509_v49  ;;  %3220 = vmatprep.mubr.msk.bf16.mxu1 %vm245_vm13, %v3780_v13 }
 0x2b2   :  { %3218 = vmatprep.subr.bf16.mxu1 %v510_v21 }
 0x2b5   :  { %3219 = vmatpush3.bf16.msra.mxu1 %v510_v21 }
 0x2b6   :  { %3224 = vmatprep.subr.bf16.mxu1 %v570_v24 }
 0x2b8   :  { %3221 = vmatmul.mubr.msk.bf16.vlgmr.msra.gmra.mrb[8].mxu1 %vm245_vm13, %v3796_v20 }
 0x2b9   :  { %3225 = vmatpush3.bf16.msra.mxu1 %v570_v24  ;;  %3228 = vmatprep.mubr.msk.bf16.mxu1 %vm245_vm13, %v3780_v13 }
 0x2ba   :  { %3226 = vmatprep.subr.bf16.mxu1 %v571_v27 }
 0x2bd   :  { %3227 = vmatpush3.bf16.msra.mxu1 %v571_v27  ;;  %v3880_v27 = vsel %vm431_vm15, 0.0, %v3592_v12 }
 0x2c0   :  { %3229 = vmatmul.mubr.msk.bf16.vlgmr.msra.gmra.mrb[12].mxu1 %vm245_vm13, %v3796_v20 }
 0x383   :  { %v3214_v28 = vpop.f32.mrb[4].mxu1 }
 0x384   :  { %v489_v30 = vpop.f32.mrb[5].mxu1  ;;  %v498_v32 = vadd.f32 %v3214_v28, %v2891_v29 }
 0x385   :  { %v3215_v31 = vpop.f32.mrb[6].mxu1  ;;  %v490_v35 = vadd.f32 %v2891_v29, %v489_v30 }
 0x386   :  { %v501_v33 = vadd.f32 %v3215_v31, %v2891_v29  ;;  %v492_v34 = vpop.f32.mrb[7].mxu1  ;;  %v2927_v31 = vld [vmem:[%s4439_s3 + $0x98] ss:$0 sm:$0xff] }
 0x387   :  { %v493_v36 = vadd.f32 %v2891_v29, %v492_v34 }
 0x388   :  { %v627_v37 = vpack.c.bf16 %v501_v33, %v498_v32 }
 0x389   :  { %v626_v38 = vpack.c.bf16 %v493_v36, %v490_v35 }
 0x38b   :  { %v3222_v40 = vpop.f32.mrb[8].mxu1  ;;  %3236 = vmatprep.mubr.msk.bf16.mxu1 %vm630_vm14, %v626_v38 }
 0x38c   :  { %v550_v42 = vpop.f32.mrb[9].mxu1  ;;  %v559_v45 = vadd.f32 %v3222_v40, %v2899_v41 }
 0x38d   :  { %v3223_v43 = vpop.f32.mrb[10].mxu1  ;;  %v551_v48 = vadd.f32 %v2899_v41, %v550_v42 }
 0x38e   :  { %v562_v46 = vadd.f32 %v3223_v43, %v2899_v41  ;;  %v553_v47 = vpop.f32.mrb[11].mxu1 }
 0x38f   :  { %v554_v49 = vadd.f32 %v2899_v41, %v553_v47 }
 0x390   :  { %v629_v50 = vpack.c.bf16 %v562_v46, %v559_v45 }
 0x391   :  { %v628_v51 = vpack.c.bf16 %v554_v49, %v551_v48 }
 0x392   :  { %v641_v3 = vsel %vm630_vm14, %v629_v50, 0 }
 0x393   :  { %v3230_v52 = vpop.f32.mrb[12].mxu1  ;;  %3454 = vmatprep.subr.msk.bf16.mxu1 %vm630_vm14, %v628_v51  ;;  %v638_v54 = vsel %vm630_vm14, %v628_v51, 0 }
 0x394   :  { %v611_v55 = vpop.f32.mrb[13].mxu1  ;;  %3233 = vmatpush3.bf16.xpose.msra.mxu1 %v638_v54  ;;  %v620_v57 = vadd.f32 %v3230_v52, %v2907_v53 }
 0x395   :  { %v3231_v56 = vpop.f32.mrb[14].mxu1  ;;  %3455 = vmatprep.subr.msk.bf16.mxu1 %vm630_vm14, %v629_v50  ;;  %v612_v62 = vadd.f32 %v2907_v53, %v611_v55 }
 0x396   :  { %v623_v58 = vadd.f32 %v3231_v56, %v2907_v53  ;;  %v614_v59 = vpop.f32.mrb[15].mxu1 }
 0x397   :  { %v615_v63 = vadd.f32 %v2907_v53, %v614_v59 }
 0x398   :  { %v747_v0 = vpack.c.bf16 %v623_v58, %v620_v57 }
 0x399   :  { %v746_v1 = vpack.c.bf16 %v615_v63, %v612_v62 }
 0x39b   :  { %3240 = vmatprep.subr.bf16.mxu0 %v746_v1 }
 0x39c   :  { %3235 = vmatpush3.bf16.xpose.msra.mxu1 %v641_v3  ;;  %3241 = vmatpush3.bf16.msra.mxu0 %v746_v1 }
 0x39d   :  { %3242 = vmatprep.subr.bf16.mxu0 %v747_v0  ;;  %3256 = vmatprep.subr.bf16.mxu1 %v874_v2 }
 0x3a0   :  { %3243 = vmatpush3.bf16.msra.mxu0 %v747_v0 }
 0x3a3   :  { %3237 = vmatmul.mubr.msk.bf16.vlgmr.msra.gmra.mrb[16].mxu1 %vm630_vm14, %v627_v37 }
 0x3a4   :  { %3257 = vmatpush3.bf16.msra.mxu1 %v874_v2  ;;  %3260 = vmatprep.mubr.msk.bf16.mxu1 %vm245_vm13, %v3780_v13 }
 0x3a5   :  { %3258 = vmatprep.subr.bf16.mxu1 %v875_v6 }
 0x3a8   :  { %3259 = vmatpush3.bf16.msra.mxu1 %v875_v6  ;;  %v2915_v6 = vld [vmem:[%s4439_s3 + $0x30] sm:$0xff] }
 0x3a9   :  { %v813_v7 = vpack.c.bf16 %v2915_v6, %v2914_v5 }
 0x3ab   :  { %3261 = vmatmul.mubr.msk.bf16.vlgmr.msra.gmra.mrb[20].mxu1 %vm245_vm13, %v3796_v20  ;;  %3248 = vmatprep.subr.bf16.mxu0 %v813_v7 }
 0x476   :  { %v3238_v10 = vpop.f32.mrb[16].mxu1 }
 0x477   :  { %v677_v11 = vpop.f32.mrb[17].mxu1  ;;  %v694_v16 = vmul.f32 0.25, %v3238_v10 }
 0x478   :  { %v692_v17 = vmul.f32 0.25, %v677_v11  ;;  %v3239_v21 = vpop.f32.mrb[18].mxu1 }
 0x479   :  { %v680_v39 = vpop.f32.mrb[19].mxu1  ;;  %v695_v24 = vmul.f32 0.25, %v3239_v21  ;;  %v698_v15 = vadd.f32 %v694_v16, %v3877_v23 }
 0x47a   :  { %v693_v25 = vmul.f32 0.25, %v680_v39  ;;  %v696_v26 = vadd.f32 %v692_v17, %v3869_v14 }
 0x47b   :  { %v699_v33 = vadd.f32 %v695_v24, %v3880_v27  ;;  %v706_v36 = vsel %vm245_vm13, %v698_v15, -inf }
 0x47c   :  { %v700_v28 = vsel %vm245_vm13, %v696_v26, -inf  ;;  %v697_v29 = vadd.f32 %v693_v25, %v3873_v22 }
 0x47d   :  { %701 = vmax.xlane.f32.xlu1 %v700_v28  ;;  %v709_v43 = vsel %vm245_vm13, %v699_v33, -inf }
 0x47e   :  { %v3262_v30 = vpop.f32.mrb[20].mxu1  ;;  %v703_v32 = vsel %vm245_vm13, %v697_v29, -inf }
 0x47f   :  { %v915_v34 = vpop.f32.mrb[21].mxu1  ;;  %704 = vmax.xlane.f32.xlu0 %v703_v32  ;;  %v924_v37 = vadd.f32 %v3262_v30, %v2927_v31 }
 0x480   :  { %v3263_v35 = vpop.f32.mrb[22].mxu1  ;;  %v916_v41 = vadd.f32 %v2927_v31, %v915_v34  ;;  %v2930_v34 = vld [vmem:[%s4439_s3 + $0xc8] sm:$0xff] }
 0x481   :  { %v927_v38 = vadd.f32 %v3263_v35, %v2927_v31  ;;  %707 = vmax.xlane.f32.xlu1 %v706_v36  ;;  %v918_v40 = vpop.f32.mrb[23].mxu1  ;;  %v2931_v35 = vld [vmem:[%s4439_s3 + $0xd0] sm:$0xff] }
 0x482   :  { %v919_v42 = vadd.f32 %v2927_v31, %v918_v40  ;;  %v935_v36 = vpack.c.bf16 %v2931_v35, %v2930_v34 }
 0x483   :  { %v994_v45 = vpack.c.bf16 %v927_v38, %v924_v37  ;;  %710 = vmax.xlane.f32.xlu0 %v709_v43  ;;  %v2932_v37 = vld [vmem:[%s4439_s3 + $0xd8] sm:$0xff]  ;;  %v2933_v38 = vld [vmem:[%s4439_s3 + $0xe0] sm:$0xff] }
 0x484   :  { %v993_v46 = vpack.c.bf16 %v919_v42, %v916_v41  ;;  %v936_v40 = vpack.c.bf16 %v2933_v38, %v2932_v37 }
 0x485   :  { %v1005_v48 = vsel %vm630_vm14, %v994_v45, 0 }
 0x486   :  { %3456 = vmatprep.subr.msk.bf16.mxu1 %vm630_vm14, %v993_v46  ;;  %v1002_v47 = vsel %vm630_vm14, %v993_v46, 0 }
 0x487   :  { %3273 = vmatpush3.bf16.xpose.msra.mxu1 %v1002_v47 }
 0x488   :  { %3457 = vmatprep.subr.msk.bf16.mxu1 %vm630_vm14, %v994_v45 }
 0x48f   :  { %3275 = vmatpush3.bf16.xpose.msra.mxu1 %v1005_v48  ;;  %v2919_v48 = vld [vmem:[%s4439_s3 + $0x48] ss:$0 sm:$0xff] }
 0x50a   :  { %v702_v49 = vpop.xlane.xlu1 %701 }
 0x50b   :  { %v712_v50 = vsub.f32 %v696_v26, %v702_v49 }
 0x50c   :  { %v705_v51 = vpop.xlane.xlu0 %704 }
 0x50d   :  { %v716_v52 = vmul.f32 1.442695, %v712_v50  ;;  %v713_v53 = vsub.f32 %v697_v29, %v705_v51  ;;  %v2916_v29 = vld [vmem:[%s4439_s3 + $0x38] sm:$0xff] }
 0x50e   :  { %v708_v54 = vpop.xlane.xlu1 %707 }
 0x50f   :  { %3476 = vpow2.f32 %v716_v52  ;;  %v718_v55 = vmul.f32 1.442695, %v713_v53  ;;  %v714_v56 = vsub.f32 %v698_v15, %v708_v54  ;;  %v2917_v15 = vld [vmem:[%s4439_s3 + $0x40] sm:$0xff] }
 0x510   :  { %v711_v57 = vpop.xlane.xlu0 %710 }
 0x511   :  { %3478 = vpow2.f32 %v718_v55  ;;  %v720_v58 = vmul.f32 1.442695, %v714_v56  ;;  %v715_v59 = vsub.f32 %v699_v33, %v711_v57  ;;  %v814_v33 = vpack.c.bf16 %v2917_v15, %v2916_v29 }
 0x513   :  { %3480 = vpow2.f32 %v720_v58  ;;  %v722_v60 = vmul.f32 1.442695, %v715_v59  ;;  %v2935_v58 = vld [vmem:[%s4439_s3 + $0xe8] ss:$0 sm:$0xff] }
 0x515   :  { %3482 = vpow2.f32 %v722_v60 }
 0x519   :  { %v3477_v61 = vpop.eup %3476 }
 0x51a   :  { %v724_v62 = vsel %vm245_vm13, %v3477_v61, 0.0 }
 0x51b   :  { %v3479_v63 = vpop.eup %3478  ;;  %725 = vadd.xlane.f32.xlu1 %v724_v62 }
 0x51c   :  { %v727_v0 = vsel %vm245_vm13, %v3479_v63, 0.0 }
 0x51d   :  { %v3481_v1 = vpop.eup %3480  ;;  %728 = vadd.xlane.f32.xlu0 %v727_v0 }
 0x51e   :  { %v730_v2 = vsel %vm245_vm13, %v3481_v1, 0.0 }
 0x51f   :  { %v3483_v3 = vpop.eup %3482  ;;  %731 = vadd.xlane.f32.xlu1 %v730_v2 }
 0x520   :  { %v733_v4 = vsel %vm245_vm13, %v3483_v3, 0.0 }
 0x521   :  { %734 = vadd.xlane.f32.xlu0 %v733_v4 }
 0x5a8   :  { %v726_v10 = vpop.xlane.xlu1 %725 }
 0x5a9   :  { %3484 = vrcp.f32 %v726_v10 }
 0x5aa   :  { %v729_v11 = vpop.xlane.xlu0 %728 }
 0x5ab   :  { %3486 = vrcp.f32 %v729_v11 }
 0x5ac   :  { %v732_v12 = vpop.xlane.xlu1 %731 }
 0x5ad   :  { %3488 = vrcp.f32 %v732_v12 }
 0x5ae   :  { %v735_v16 = vpop.xlane.xlu0 %734 }
 0x5af   :  { %3490 = vrcp.f32 %v735_v16 }
 0x5b3   :  { %v3485_v17 = vpop.eup %3484 }
 0x5b4   :  { %v740_v39 = vmul.f32 %v3485_v17, %v3477_v61 }
 0x5b5   :  { %v3487_v21 = vpop.eup %3486 }
 0x5b6   :  { %v741_v24 = vmul.f32 %v3487_v21, %v3479_v63 }
 0x5b7   :  { %v3489_v25 = vpop.eup %3488 }
 0x5b8   :  { %v744_v26 = vpack.c.bf16 %v741_v24, %v740_v39  ;;  %v742_v30 = vmul.f32 %v3489_v25, %v3481_v1 }
 0x5b9   :  { %v3491_v28 = vpop.eup %3490 }
 0x5ba   :  { %v743_v31 = vmul.f32 %v3491_v28, %v3483_v3  ;;  %3244 = vmatprep.mubr.msk.bf16.mxu0 %vm245_vm13, %v744_v26 }
 0x5bc   :  { %v745_v32 = vpack.c.bf16 %v743_v31, %v742_v30 }
 0x5be   :  { %3245 = vmatmul.mubr.msk.bf16.vlgmr.msra.gmra.mrb[4].mxu0 %vm245_vm13, %v745_v32 }
 0x5bf   :  { %3249 = vmatpush3.bf16.msra.mxu0 %v813_v7  ;;  %3252 = vmatprep.mubr.msk.bf16.mxu0 %vm245_vm13, %v3780_v13 }
 0x5c0   :  { %3250 = vmatprep.subr.bf16.mxu0 %v814_v33 }
 0x5c3   :  { %3251 = vmatpush3.bf16.msra.mxu0 %v814_v33 }
 0x5c4   :  { %3264 = vmatprep.subr.bf16.mxu0 %v935_v36 }
 0x5c6   :  { %3253 = vmatmul.mubr.msk.bf16.vlgmr.msra.gmra.mrb[8].mxu0 %vm245_vm13, %v3796_v20 }
 0x5c7   :  { %3265 = vmatpush3.bf16.msra.mxu0 %v935_v36  ;;  %3268 = vmatprep.mubr.msk.bf16.mxu0 %vm245_vm13, %v3780_v13 }
 0x5c8   :  { %3266 = vmatprep.subr.bf16.mxu0 %v936_v40 }
 0x5cb   :  { %3267 = vmatpush3.bf16.msra.mxu0 %v936_v40 }
 0x5ce   :  { %3269 = vmatmul.mubr.msk.bf16.vlgmr.msra.gmra.mrb[12].mxu0 %vm245_vm13, %v3796_v20 }
 0x691   :  { %v3934_v41 = vpop.f32.mrb[4].mxu0 }
 0x692   :  { %v3936_v42 = vpop.f32.mrb[5].mxu0 }
 0x693   :  { %v3938_v43 = vpop.f32.mrb[6].mxu0 }
 0x694   :  { %v804_v45 = vpack.c.bf16 %v3938_v43, %v3934_v41  ;;  %v3942_v46 = vpop.f32.mrb[7].mxu0 }
 0x695   :  { %v803_v47 = vpack.c.bf16 %v3942_v46, %v3936_v42 }
 0x699   :  { %v3254_v13 = vpop.f32.mrb[8].mxu0 }
 0x69a   :  { %v854_v20 = vpop.f32.mrb[9].mxu0  ;;  %v863_v50 = vadd.f32 %v3254_v13, %v2919_v48 }
 0x69b   :  { %v3255_v49 = vpop.f32.mrb[10].mxu0  ;;  %v855_v53 = vadd.f32 %v2919_v48, %v854_v20 }
 0x69c   :  { %v866_v51 = vadd.f32 %v3255_v49, %v2919_v48  ;;  %v857_v52 = vpop.f32.mrb[11].mxu0 }
 0x69d   :  { %v858_v54 = vadd.f32 %v2919_v48, %v857_v52 }
 0x69e   :  { %v992_v55 = vpack.c.bf16 %v866_v51, %v863_v50 }
 0x69f   :  { %v991_v56 = vpack.c.bf16 %v858_v54, %v855_v53 }
 0x6a1   :  { %v3270_v57 = vpop.f32.mrb[12].mxu0  ;;  %3276 = vmatprep.mubr.msk.bf16.mxu1 %vm630_vm14, %v991_v56  ;;  %v2943_v56 = vld [vmem:[%s4440_s4 + $0x18] sm:$0xff] }
 0x6a2   :  { %v976_v59 = vpop.f32.mrb[13].mxu0  ;;  %3277 = vmatmul.mubr.msk.bf16.vlgmr.msra.gmra.mrb[24].mxu1 %vm630_vm14, %v992_v55  ;;  %v985_v61 = vadd.f32 %v3270_v57, %v2935_v58  ;;  %v2942_v55 = vld [vmem:[%s4440_s4 + $0x10] sm:$0xff] }
 0x6a3   :  { %v3271_v60 = vpop.f32.mrb[14].mxu0  ;;  %v977_v0 = vadd.f32 %v2935_v58, %v976_v59  ;;  %v1172_v57 = vpack.c.bf16 %v2943_v56, %v2942_v55 }
 0x6a4   :  { %v988_v62 = vadd.f32 %v3271_v60, %v2935_v58  ;;  %v979_v63 = vpop.f32.mrb[15].mxu0 }
 0x6a5   :  { %v980_v1 = vadd.f32 %v2935_v58, %v979_v63 }
 0x6a6   :  { %v1111_v2 = vpack.c.bf16 %v988_v62, %v985_v61 }
 0x6a7   :  { %v1110_v3 = vpack.c.bf16 %v980_v1, %v977_v0 }
 0x6a9   :  { %3280 = vmatprep.subr.bf16.mxu0 %v1110_v3 }
 0x6aa   :  { %3281 = vmatpush3.bf16.msra.mxu0 %v1110_v3 }
 0x6ab   :  { %3282 = vmatprep.subr.bf16.mxu0 %v1111_v2 }
 0x6ae   :  { %3283 = vmatpush3.bf16.msra.mxu0 %v1111_v2 }
 0x6af   :  { %3288 = vmatprep.subr.bf16.mxu0 %v1172_v57 }
 0x775   :  { %v3278_v4 = vpop.f32.mrb[24].mxu1 }
 0x776   :  { %v1041_v5 = vpop.f32.mrb[25].mxu1  ;;  %v1058_v6 = vmul.f32 0.25, %v3278_v4 }
 0x777   :  { %v1056_v7 = vmul.f32 0.25, %v1041_v5  ;;  %v3279_v10 = vpop.f32.mrb[26].mxu1 }
 0x778   :  { %v1044_v11 = vpop.f32.mrb[27].mxu1  ;;  %v1059_v12 = vmul.f32 0.25, %v3279_v10  ;;  %v1062_v24 = vadd.f32 %v1058_v6, %v3877_v23  ;;  %v805_v10 = vld [vmem:[%s4440_s4] sm:$0xff] }
 0x779   :  { %v1057_v16 = vmul.f32 0.25, %v1044_v11  ;;  %v1060_v17 = vadd.f32 %v1056_v7, %v3869_v14  ;;  %v806_v11 = vld [vmem:[%s4440_s4 + $0x8] sm:$0xff] }
 0x77a   :  { %v1063_v26 = vadd.f32 %v1059_v12, %v3880_v27  ;;  %v1070_v28 = vsel %vm245_vm13, %v1062_v24, -inf  ;;  %v807_v12 = vpack.c.bf16 %v806_v11, %v805_v10 }
 0x77b   :  { %v1064_v21 = vsel %vm245_vm13, %v1060_v17, -inf  ;;  %v1061_v39 = vadd.f32 %v1057_v16, %v3873_v22 }
 0x77c   :  { %1065 = vmax.xlane.f32.xlu1 %v1064_v21  ;;  %v1073_v29 = vsel %vm245_vm13, %v1063_v26, -inf }
 0x77d   :  { %v1067_v25 = vsel %vm245_vm13, %v1061_v39, -inf }
 0x77e   :  { %1068 = vmax.xlane.f32.xlu0 %v1067_v25 }
 0x780   :  { %1071 = vmax.xlane.f32.xlu1 %v1070_v28 }
 0x782   :  { %1074 = vmax.xlane.f32.xlu0 %v1073_v29 }
 0x809   :  { %v1066_v15 = vpop.xlane.xlu1 %1065 }
 0x80a   :  { %v1076_v30 = vsub.f32 %v1060_v17, %v1066_v15 }
 0x80b   :  { %v1069_v31 = vpop.xlane.xlu0 %1068 }
 0x80c   :  { %v1080_v32 = vmul.f32 1.442695, %v1076_v30  ;;  %v1077_v33 = vsub.f32 %v1061_v39, %v1069_v31 }
 0x80d   :  { %v1072_v34 = vpop.xlane.xlu1 %1071 }
 0x80e   :  { %3492 = vpow2.f32 %v1080_v32  ;;  %v1082_v35 = vmul.f32 1.442695, %v1077_v33  ;;  %v1078_v36 = vsub.f32 %v1062_v24, %v1072_v34 }
 0x80f   :  { %v1075_v37 = vpop.xlane.xlu0 %1074 }
 0x810   :  { %3494 = vpow2.f32 %v1082_v35  ;;  %v1084_v38 = vmul.f32 1.442695, %v1078_v36  ;;  %v1079_v40 = vsub.f32 %v1063_v26, %v1075_v37  ;;  %v2948_v26 = vld [vmem:[%s4441_s7] ss:$0 sm:$0xff] }
 0x812   :  { %3496 = vpow2.f32 %v1084_v38  ;;  %v1086_v13 = vmul.f32 1.442695, %v1079_v40 }
 0x814   :  { %3498 = vpow2.f32 %v1086_v13 }
 0x818   :  { %v3493_v48 = vpop.eup %3492 }
 0x819   :  { %v1088_v20 = vsel %vm245_vm13, %v3493_v48, 0.0 }
 0x81a   :  { %v3495_v49 = vpop.eup %3494  ;;  %1089 = vadd.xlane.f32.xlu1 %v1088_v20 }
 0x81b   :  { %v1091_v50 = vsel %vm245_vm13, %v3495_v49, 0.0 }
 0x81c   :  { %v3497_v51 = vpop.eup %3496  ;;  %1092 = vadd.xlane.f32.xlu0 %v1091_v50 }
 0x81d   :  { %v1094_v52 = vsel %vm245_vm13, %v3497_v51, 0.0 }
 0x81e   :  { %v3499_v53 = vpop.eup %3498  ;;  %1095 = vadd.xlane.f32.xlu1 %v1094_v52 }
 0x81f   :  { %v1097_v54 = vsel %vm245_vm13, %v3499_v53, 0.0 }
 0x820   :  { %1098 = vadd.xlane.f32.xlu0 %v1097_v54 }
 0x8a7   :  { %v1090_v58 = vpop.xlane.xlu1 %1089 }
 0x8a8   :  { %3500 = vrcp.f32 %v1090_v58 }
 0x8a9   :  { %v1093_v59 = vpop.xlane.xlu0 %1092 }
 0x8aa   :  { %3502 = vrcp.f32 %v1093_v59  ;;  %v1368_v59 = vld [vmem:[%s4442_s5] sm:$0xff] }
 0x8ab   :  { %v1096_v60 = vpop.xlane.xlu1 %1095 }
 0x8ac   :  { %3504 = vrcp.f32 %v1096_v60  ;;  %v1369_v60 = vld [vmem:[%s4442_s5 + $0x8] sm:$0xff] }
 0x8ad   :  { %v1099_v61 = vpop.xlane.xlu0 %1098 }
 0x8ae   :  { %3506 = vrcp.f32 %v1099_v61  ;;  %v1372_v61 = vpack.c.bf16 %v1369_v60, %v1368_v59 }
 0x8b0   :  { %3300 = vmatprep.subr.bf16.mxu1 %v1372_v61 }
 0x8b1   :  { %3301 = vmatpush3.bf16.msra.mxu1 %v1372_v61 }
 0x8b2   :  { %v3501_v62 = vpop.eup %3500 }
 0x8b3   :  { %v1104_v0 = vmul.f32 %v3501_v62, %v3493_v48  ;;  %v1370_v62 = vld [vmem:[%s4442_s5 + $0x10] sm:$0xff] }
 0x8b4   :  { %v3503_v63 = vpop.eup %3502 }
 0x8b5   :  { %v1105_v1 = vmul.f32 %v3503_v63, %v3495_v49  ;;  %v1371_v63 = vld [vmem:[%s4442_s5 + $0x18] sm:$0xff] }
 0x8b6   :  { %v3505_v2 = vpop.eup %3504 }
 0x8b7   :  { %v1108_v3 = vpack.c.bf16 %v1105_v1, %v1104_v0  ;;  %v1106_v5 = vmul.f32 %v3505_v2, %v3497_v51  ;;  %v1373_v0 = vpack.c.bf16 %v1371_v63, %v1370_v62 }
 0x8b8   :  { %v3507_v4 = vpop.eup %3506 }
 0x8b9   :  { %v1107_v6 = vmul.f32 %v3507_v4, %v3499_v53  ;;  %3284 = vmatprep.mubr.msk.bf16.mxu0 %vm245_vm13, %v1108_v3  ;;  %3302 = vmatprep.subr.bf16.mxu1 %v1373_v0 }
 0x8ba   :  { %3303 = vmatpush3.bf16.msra.mxu1 %v1373_v0 }
 0x8bb   :  { %v1109_v7 = vpack.c.bf16 %v1107_v6, %v1106_v5 }
 0x8bd   :  { %3285 = vmatmul.mubr.msk.bf16.vlgmr.msra.gmra.mrb[16].mxu0 %vm245_vm13, %v1109_v7 }
 0x8be   :  { %3289 = vmatpush3.bf16.msra.mxu0 %v1172_v57 }
 0x8bf   :  { %3294 = vmatprep.subr.bf16.mxu0 %v807_v12 }
 0x990   :  { %v3286_v16 = vpop.f32.mrb[16].mxu0 }
 0x991   :  { %v1152_v17 = vpop.f32.mrb[17].mxu0 }
 0x992   :  { %v3287_v21 = vpop.f32.mrb[18].mxu0 }
 0x993   :  { %v1168_v39 = vpack.c.bf16 %v3287_v21, %v3286_v16  ;;  %v1155_v24 = vpop.f32.mrb[19].mxu0 }
 0x994   :  { %v1167_v25 = vpack.c.bf16 %v1155_v24, %v1152_v17 }
 0x996   :  { %3290 = vmatprep.mubr.msk.bf16.mxu0 %vm630_vm14, %v1167_v25 }
 0x997   :  { %3291 = vmatmul.mubr.msk.bf16.vlgmr.msra.gmra.mrb[20].mxu0 %vm630_vm14, %v1168_v39  ;;  %v2949_v39 = vld [vmem:[%s4441_s7 + $0x1] ss:$0 sm:$0xff] }
 0x998   :  { %3295 = vmatpush3.bf16.msra.mxu0 %v807_v12  ;;  %3296 = vmatprep.mubr.msk.bf16.mxu0 %vm630_vm14, %v803_v47 }
 0x9a3   :  { %3297 = vmatmul.mubr.msk.bf16.vlgmr.msra.gmra.mrb[20].mxu0 %vm630_vm14, %v804_v45 }
 0xa76   :  { %v3298_v28 = vpop.f32.mrb[20].mxu0 }
 0xa77   :  { %v1268_v29 = vpop.f32.mrb[21].mxu0  ;;  %v1290_v15 = vadd.f32 %v3298_v28, %v2948_v26 }
 0xa78   :  { %v1288_v30 = vadd.f32 %v2948_v26, %v1268_v29  ;;  %v3299_v31 = vpop.f32.mrb[22].mxu0 }
 0xa79   :  { %v1271_v32 = vpop.f32.mrb[23].mxu0  ;;  %v1291_v33 = vadd.f32 %v3299_v31, %v2948_v26  ;;  %v1294_v43 = vadd.f32 %v1290_v15, %v3790_v18  ;;  %v2950_v15 = vld [vmem:[%s4441_s7 + $0x2] ss:$0 sm:$0xff] }
 0xa7a   :  { %v1289_v34 = vadd.f32 %v2948_v26, %v1271_v32  ;;  %v1292_v42 = vadd.f32 %v1288_v30, %v3774_v8 }
 0xa7b   :  { %v1295_v47 = vadd.f32 %v1291_v33, %v3792_v19  ;;  %v1304_v35 = vsel %vm245_vm13, %v1294_v43, 0.0 }
 0xa7c   :  { %v1298_v46 = vsel %vm245_vm13, %v1292_v42, 0.0  ;;  %v1293_v41 = vadd.f32 %v1289_v34, %v3776_v9 }
 0xa7d   :  { %1299 = vadd.xlane.f32.xlu1 %v1298_v46  ;;  %v1307_v36 = vsel %vm245_vm13, %v1295_v47, 0.0 }
 0xa7e   :  { %v1301_v45 = vsel %vm245_vm13, %v1293_v41, 0.0 }
 0xa7f   :  { %1302 = vadd.xlane.f32.xlu0 %v1301_v45 }
 0xa81   :  { %1305 = vadd.xlane.f32.xlu1 %v1304_v35 }
 0xa83   :  { %1308 = vadd.xlane.f32.xlu0 %v1307_v36  ;;  %v1456_v36 = vld [vmem:[%s4443_s6] sm:$0xff] }
 0xb0a   :  { %v1300_v37 = vpop.xlane.xlu1 %1299 }
 0xb0b   :  { %v1310_v8 = vmul.f32 0.03125, %v1300_v37  ;;  %v1457_v37 = vld [vmem:[%s4443_s6 + $0x8] sm:$0xff] }
 0xb0c   :  { %v1303_v38 = vpop.xlane.xlu0 %1302 }
 0xb0d   :  { %v1314_v40 = vsub.f32 %v1292_v42, %v1310_v8  ;;  %v1311_v13 = vmul.f32 0.03125, %v1303_v38  ;;  %v1464_v8 = vpack.c.bf16 %v1457_v37, %v1456_v36  ;;  %v1458_v38 = vld [vmem:[%s4443_s6 + $0x10] sm:$0xff] }
 0xb0e   :  { %v1306_v9 = vpop.xlane.xlu1 %1305 }
 0xb0f   :  { %v1315_v48 = vsub.f32 %v1293_v41, %v1311_v13  ;;  %v1312_v18 = vmul.f32 0.03125, %v1306_v9  ;;  %v1318_v20 = vmul.f32 %v1314_v40, %v1314_v40  ;;  %3308 = vmatprep.subr.bf16.mxu1 %v1464_v8  ;;  %v1460_v9 = vld [vmem:[%s4443_s6 + $0x20] sm:$0xff] }
 0xb10   :  { %v1309_v49 = vpop.xlane.xlu0 %1308 }
 0xb11   :  { %v1316_v50 = vsub.f32 %v1294_v43, %v1312_v18  ;;  %v1313_v51 = vmul.f32 0.03125, %v1309_v49  ;;  %v1322_v19 = vsel %vm245_vm13, %v1318_v20, 0.0  ;;  %v1319_v52 = vmul.f32 %v1315_v48, %v1315_v48  ;;  %v1462_v20 = vld [vmem:[%s4443_s6 + $0x30] sm:$0xff]  ;;  %v1463_v49 = vld [vmem:[%s4443_s6 + $0x38] sm:$0xff] }
 0xb12   :  { %1323 = vadd.xlane.f32.xlu1 %v1322_v19 }
 0xb13   :  { %v1317_v53 = vsub.f32 %v1295_v47, %v1313_v51  ;;  %v1325_v54 = vsel %vm245_vm13, %v1319_v52, 0.0  ;;  %v1320_v55 = vmul.f32 %v1316_v50, %v1316_v50  ;;  %v2951_v51 = vld [vmem:[%s4441_s7 + $0x3] ss:$0 sm:$0xff] }
 0xb14   :  { %1326 = vadd.xlane.f32.xlu0 %v1325_v54 }
 0xb15   :  { %v1328_v56 = vsel %vm245_vm13, %v1320_v55, 0.0  ;;  %v1321_v57 = vmul.f32 %v1317_v53, %v1317_v53 }
 0xb16   :  { %1329 = vadd.xlane.f32.xlu1 %v1328_v56 }
 0xb17   :  { %v1331_v58 = vsel %vm245_vm13, %v1321_v57, 0.0 }
 0xb18   :  { %1332 = vadd.xlane.f32.xlu0 %v1331_v58 }
 0xb9f   :  { %v1324_v1 = vpop.xlane.xlu1 %1323 }
 0xba0   :  { %v1334_v2 = vmul.f32 0.03125, %v1324_v1 }
 0xba1   :  { %v1327_v3 = vpop.xlane.xlu0 %1326 }
 0xba2   :  { %v1338_v4 = vadd.f32 1e-12, %v1334_v2  ;;  %v1335_v5 = vmul.f32 0.03125, %v1327_v3 }
 0xba3   :  { %v1330_v6 = vpop.xlane.xlu1 %1329 }
 0xba4   :  { %3508 = vrsqrt.f32 %v1338_v4  ;;  %v1339_v7 = vadd.f32 1e-12, %v1335_v5  ;;  %v1336_v10 = vmul.f32 0.03125, %v1330_v6 }
 0xba5   :  { %v1333_v11 = vpop.xlane.xlu0 %1332 }
 0xba6   :  { %3510 = vrsqrt.f32 %v1339_v7  ;;  %v1340_v12 = vadd.f32 1e-12, %v1336_v10  ;;  %v1337_v16 = vmul.f32 0.03125, %v1333_v11 }
 0xba8   :  { %3512 = vrsqrt.f32 %v1340_v12  ;;  %v1341_v17 = vadd.f32 1e-12, %v1337_v16 }
 0xbaa   :  { %3514 = vrsqrt.f32 %v1341_v17 }
 0xbae   :  { %v3509_v21 = vpop.eup %3508 }
 0xbaf   :  { %v1346_v24 = vmul.f32 %v3509_v21, %v1314_v40  ;;  %v1459_v40 = vld [vmem:[%s4443_s6 + $0x18] sm:$0xff] }
 0xbb0   :  { %v3511_v25 = vpop.eup %3510  ;;  %v1465_v13 = vpack.c.bf16 %v1459_v40, %v1458_v38 }
 0xbb1   :  { %v1347_v26 = vmul.f32 %v3511_v25, %v1315_v48  ;;  %v1354_v28 = vmul.f32 %v2949_v39, %v1346_v24  ;;  %v1461_v48 = vld [vmem:[%s4443_s6 + $0x28] sm:$0xff] }
 0xbb2   :  { %v3513_v29 = vpop.eup %3512  ;;  %v1466_v18 = vpack.c.bf16 %v1461_v48, %v1460_v9 }
 0xbb3   :  { %v1348_v30 = vmul.f32 %v3513_v29, %v1316_v50  ;;  %v1355_v31 = vmul.f32 %v2949_v39, %v1347_v26  ;;  %v4023_v42 = vadd.f32 %v2950_v15, %v1354_v28  ;;  %v1467_v50 = vpack.c.bf16 %v1463_v49, %v1462_v20  ;;  %v2954_v26 = vld [vmem:[%s4441_s7 + $0x4] ss:$0 sm:$0xff] }
 0xbb4   :  { %v3515_v32 = vpop.eup %3514 }
 0xbb5   :  { %v1356_v33 = vmul.f32 %v2949_v39, %v1348_v30  ;;  %v1349_v34 = vmul.f32 %v3515_v32, %v1317_v53  ;;  %v4025_v46 = vadd.f32 %v2950_v15, %v1355_v31 }
 0xbb7   :  { %v1357_v41 = vmul.f32 %v2949_v39, %v1349_v34  ;;  %v1366_v43 = vpack.c.bf16 %v4025_v46, %v4023_v42  ;;  %v4030_v45 = vadd.f32 %v2950_v15, %v1356_v33 }
 0xbb9   :  { %3304 = vmatprep.mubr.msk.bf16.mxu1 %vm245_vm13, %v1366_v43  ;;  %v4032_v47 = vadd.f32 %v2950_v15, %v1357_v41 }
 0xbbb   :  { %v1367_v35 = vpack.c.bf16 %v4032_v47, %v4030_v45 }
 0xbbd   :  { %3305 = vmatmul.mubr.msk.bf16.vlgmr.msra.gmra.mrb[28].mxu1 %vm245_vm13, %v1367_v35 }
 0xbbe   :  { %3309 = vmatpush3.bf16.msra.mxu1 %v1464_v8 }
 0xbbf   :  { %3310 = vmatprep.subr.bf16.mxu1 %v1465_v13 }
 0xbc2   :  { %3311 = vmatpush3.bf16.msra.mxu1 %v1465_v13 }
 0xbc3   :  { %3312 = vmatprep.subr.bf16.mxu1 %v1466_v18 }
 0xbc6   :  { %3313 = vmatpush3.bf16.msra.mxu1 %v1466_v18 }
 0xbc7   :  { %3314 = vmatprep.subr.bf16.mxu1 %v1467_v50 }
 0xbca   :  { %3315 = vmatpush3.bf16.msra.mxu1 %v1467_v50 }
 0xc90   :  { %v3306_v19 = vpop.f32.mrb[28].mxu1 }
 0xc91   :  { %v1428_v52 = vadd.f32 %v3306_v19, %v2951_v51  ;;  %v1419_v53 = vpop.f32.mrb[29].mxu1 }
 0xc92   :  { %v1420_v54 = vadd.f32 %v2951_v51, %v1419_v53  ;;  %v3307_v55 = vpop.f32.mrb[30].mxu1 }
 0xc93   :  { %v1440_v56 = vmul.f32 0.70710677, %v1428_v52  ;;  %v1431_v57 = vadd.f32 %v3307_v55, %v2951_v51  ;;  %v1422_v58 = vpop.f32.mrb[31].mxu1  ;;  %v1436_v5 = vmul.f32 0.5, %v1428_v52 }
 0xc94   :  { %v1438_v59 = vmul.f32 0.70710677, %v1420_v54  ;;  %v1423_v60 = vadd.f32 %v2951_v51, %v1422_v58  ;;  %v1434_v10 = vmul.f32 0.5, %v1420_v54 }
 0xc95   :  { %3516 = verf.f32 %v1440_v56  ;;  %v1441_v61 = vmul.f32 0.70710677, %v1431_v57  ;;  %v1437_v6 = vmul.f32 0.5, %v1431_v57 }
 0xc96   :  { %3518 = verf.f32 %v1438_v59  ;;  %v1439_v62 = vmul.f32 0.70710677, %v1423_v60  ;;  %v1435_v11 = vmul.f32 0.5, %v1423_v60  ;;  %v2959_v59 = vld [vmem:[%s4439_s3 + $0xf0] sm:$0xff]  ;;  %v2960_v60 = vld [vmem:[%s4439_s3 + $0xf8] sm:$0xff] }
 0xc97   :  { %3520 = verf.f32 %v1441_v61  ;;  %v2975_v61 = vld [vmem:[%s4439_s3 + $0x190] sm:$0xff] }
 0xc98   :  { %3522 = verf.f32 %v1439_v62  ;;  %v1610_v62 = vpack.c.bf16 %v2960_v60, %v2959_v59 }
 0xc9a   :  { %3320 = vmatprep.subr.bf16.mxu0 %v1610_v62 }
 0xc9b   :  { %3321 = vmatpush3.bf16.msra.mxu0 %v1610_v62 }
 0xc9f   :  { %v3517_v63 = vpop.eup %3516 }
 0xca0   :  { %v3519_v0 = vpop.eup %3518  ;;  %v1448_v1 = vadd.f32 1.0, %v3517_v63  ;;  %v2976_v63 = vld [vmem:[%s4439_s3 + $0x198] sm:$0xff] }
 0xca1   :  { %v3521_v2 = vpop.eup %3520  ;;  %v1446_v3 = vadd.f32 1.0, %v3519_v0  ;;  %v1738_v0 = vpack.c.bf16 %v2976_v63, %v2975_v61 }
 0xca2   :  { %v3523_v4 = vpop.eup %3522  ;;  %v1449_v7 = vadd.f32 1.0, %v3521_v2  ;;  %v1452_v16 = vmul.f32 %v1448_v1, %v1436_v5  ;;  %v2961_v1 = vld [vmem:[%s4439_s3 + $0x100] sm:$0xff]  ;;  %v2962_v2 = vld [vmem:[%s4439_s3 + $0x108] sm:$0xff] }
 0xca3   :  { %v1447_v12 = vadd.f32 1.0, %v3523_v4  ;;  %v1450_v21 = vmul.f32 %v1446_v3, %v1434_v10  ;;  %3336 = vmatprep.subr.bf16.mxu1 %v1738_v0  ;;  %v2977_v3 = vld [vmem:[%s4439_s3 + $0x1a0] sm:$0xff]  ;;  %v1611_v4 = vpack.c.bf16 %v2962_v2, %v2961_v1  ;;  %v2978_v5 = vld [vmem:[%s4439_s3 + $0x1a8] sm:$0xff] }
 0xca4   :  { %v1453_v17 = vmul.f32 %v1449_v7, %v1437_v6  ;;  %v1739_v6 = vpack.c.bf16 %v2978_v5, %v2977_v3  ;;  %v2967_v7 = vld [vmem:[%s4439_s3 + $0x140] sm:$0xff]  ;;  %v2968_v10 = vld [vmem:[%s4439_s3 + $0x148] sm:$0xff] }
 0xca5   :  { %v1451_v39 = vmul.f32 %v1447_v12, %v1435_v11  ;;  %3322 = vmatprep.subr.bf16.mxu0 %v1611_v4  ;;  %v1677_v11 = vpack.c.bf16 %v2968_v10, %v2967_v7 }
 0xca6   :  { %v1455_v24 = vpack.c.bf16 %v1453_v17, %v1452_v16  ;;  %3323 = vmatpush3.bf16.msra.mxu0 %v1611_v4 }
 0xca7   :  { %v1454_v25 = vpack.c.bf16 %v1451_v39, %v1450_v21  ;;  %3328 = vmatprep.subr.bf16.mxu0 %v1677_v11 }
 0xca9   :  { %3316 = vmatprep.mubr.msk.bf16.mxu1 %vm1473_vm0, %v1454_v25 }
 0xcaa   :  { %3317 = vmatmul.mubr.msk.bf16.vlgmr.msra.gmra.mrb[32].mxu1 %vm1473_vm0, %v1455_v24 }
 0xcab   :  { %3337 = vmatpush3.bf16.msra.mxu1 %v1738_v0 }
 0xcac   :  { %3338 = vmatprep.subr.bf16.mxu1 %v1739_v6 }
 0xcaf   :  { %3339 = vmatpush3.bf16.msra.mxu1 %v1739_v6 }
 0xd7d   :  { %v3318_v28 = vpop.f32.mrb[32].mxu1 }
 0xd7e   :  { %v1514_v29 = vpop.f32.mrb[33].mxu1  ;;  %v1523_v15 = vadd.f32 %v3318_v28, %v2954_v26 }
 0xd7f   :  { %v1515_v30 = vadd.f32 %v2954_v26, %v1514_v29  ;;  %v3319_v31 = vpop.f32.mrb[34].mxu1 }
 0xd80   :  { %v1517_v32 = vpop.f32.mrb[35].mxu1  ;;  %v1526_v33 = vadd.f32 %v3319_v31, %v2954_v26  ;;  %v1531_v36 = vadd.f32 %v1523_v15, %v4030_v45 }
 0xd81   :  { %v1518_v34 = vadd.f32 %v2954_v26, %v1517_v32  ;;  %v1529_v41 = vadd.f32 %v1515_v30, %v4023_v42  ;;  %v2957_v32 = vld [vmem:[%s4441_s7 + $0x5] ss:$0 sm:$0xff] }
 0xd82   :  { %v1532_v8 = vadd.f32 %v1526_v33, %v4032_v47  ;;  %v1541_v38 = vsel %vm245_vm13, %v1531_v36, 0.0 }
 0xd83   :  { %v1535_v43 = vsel %vm245_vm13, %v1529_v41, 0.0  ;;  %v1530_v35 = vadd.f32 %v1518_v34, %v4025_v46 }
 0xd84   :  { %1536 = vadd.xlane.f32.xlu1 %v1535_v43  ;;  %v1544_v40 = vsel %vm245_vm13, %v1532_v8, 0.0 }
 0xd85   :  { %v1538_v37 = vsel %vm245_vm13, %v1530_v35, 0.0 }
 0xd86   :  { %1539 = vadd.xlane.f32.xlu0 %v1538_v37 }
 0xd88   :  { %1542 = vadd.xlane.f32.xlu1 %v1541_v38 }
 0xd8a   :  { %1545 = vadd.xlane.f32.xlu0 %v1544_v40 }
 0xe11   :  { %v1537_v13 = vpop.xlane.xlu1 %1536 }
 0xe12   :  { %v1547_v42 = vmul.f32 0.03125, %v1537_v13 }
 0xe13   :  { %v1540_v9 = vpop.xlane.xlu0 %1539 }
 0xe14   :  { %v4077_v48 = vsub.f32 %v1529_v41, %v1547_v42  ;;  %v1548_v46 = vmul.f32 0.03125, %v1540_v9 }
 0xe15   :  { %v1543_v18 = vpop.xlane.xlu1 %1542 }
 0xe16   :  { %v4079_v45 = vsub.f32 %v1530_v35, %v1548_v46  ;;  %v1549_v20 = vmul.f32 0.03125, %v1543_v18  ;;  %v1555_v47 = vmul.f32 %v4077_v48, %v4077_v48  ;;  %v2969_v18 = vld [vmem:[%s4439_s3 + $0x150] sm:$0xff] }
 0xe17   :  { %v1546_v49 = vpop.xlane.xlu0 %1545 }
 0xe18   :  { %v4083_v50 = vsub.f32 %v1531_v36, %v1549_v20  ;;  %v1550_v51 = vmul.f32 0.03125, %v1546_v49  ;;  %v1559_v19 = vsel %vm245_vm13, %v1555_v47, 0.0  ;;  %v1556_v52 = vmul.f32 %v4079_v45, %v4079_v45  ;;  %v2958_v36 = vld [vmem:[%s4441_s7 + $0x6] ss:$0 sm:$0xff] }
 0xe19   :  { %1560 = vadd.xlane.f32.xlu1 %v1559_v19  ;;  %v2964_v19 = vld [vmem:[%s4439_s3 + $0x110] ss:$0 sm:$0xff] }
 0xe1a   :  { %v4088_v53 = vsub.f32 %v1532_v8, %v1550_v51  ;;  %v1562_v54 = vsel %vm245_vm13, %v1556_v52, 0.0  ;;  %v1557_v55 = vmul.f32 %v4083_v50, %v4083_v50 }
 0xe1b   :  { %1563 = vadd.xlane.f32.xlu0 %v1562_v54 }
 0xe1c   :  { %v1565_v56 = vsel %vm245_vm13, %v1557_v55, 0.0  ;;  %v1558_v57 = vmul.f32 %v4088_v53, %v4088_v53 }
 0xe1d   :  { %1566 = vadd.xlane.f32.xlu1 %v1565_v56 }
 0xe1e   :  { %v1568_v58 = vsel %vm245_vm13, %v1558_v57, 0.0 }
 0xe1f   :  { %1569 = vadd.xlane.f32.xlu0 %v1568_v58 }
 0xea6   :  { %v1561_v12 = vpop.xlane.xlu1 %1560 }
 0xea7   :  { %v1571_v16 = vmul.f32 0.03125, %v1561_v12 }
 0xea8   :  { %v1564_v17 = vpop.xlane.xlu0 %1563 }
 0xea9   :  { %v1575_v21 = vadd.f32 1e-12, %v1571_v16  ;;  %v1572_v39 = vmul.f32 0.03125, %v1564_v17 }
 0xeaa   :  { %v1567_v24 = vpop.xlane.xlu1 %1566 }
 0xeab   :  { %3524 = vrsqrt.f32 %v1575_v21  ;;  %v1576_v25 = vadd.f32 1e-12, %v1572_v39  ;;  %v1573_v26 = vmul.f32 0.03125, %v1567_v24 }
 0xeac   :  { %v1570_v28 = vpop.xlane.xlu0 %1569 }
 0xead   :  { %3526 = vrsqrt.f32 %v1576_v25  ;;  %v1577_v29 = vadd.f32 1e-12, %v1573_v26  ;;  %v1574_v15 = vmul.f32 0.03125, %v1570_v28 }
 0xeaf   :  { %3528 = vrsqrt.f32 %v1577_v29  ;;  %v1578_v30 = vadd.f32 1e-12, %v1574_v15  ;;  %v2997_v15 = vld [vmem:[%s4439_s3 + $0x168] sm:$0xff] }
 0xeb1   :  { %3530 = vrsqrt.f32 %v1578_v30  ;;  %v2998_v30 = vld [vmem:[%s4439_s3 + $0x170] sm:$0xff] }
 0xeb5   :  { %v3525_v31 = vpop.eup %3524 }
 0xeb6   :  { %v1583_v33 = vmul.f32 %v3525_v31, %v4077_v48  ;;  %v2042_v31 = vpack.c.bf16 %v2998_v30, %v2997_v15 }
 0xeb7   :  { %v3527_v34 = vpop.eup %3526 }
 0xeb8   :  { %v1591_v41 = vmul.f32 %v2957_v32, %v1583_v33  ;;  %v1584_v43 = vmul.f32 %v3527_v34, %v4079_v45  ;;  %v2970_v45 = vld [vmem:[%s4439_s3 + $0x158] sm:$0xff]  ;;  %v3000_v34 = vld [vmem:[%s4439_s3 + $0x180] sm:$0xff] }
 0xeb9   :  { %v3529_v35 = vpop.eup %3528  ;;  %v2999_v33 = vld [vmem:[%s4439_s3 + $0x178] sm:$0xff] }
 0xeba   :  { %v1592_v37 = vmul.f32 %v2957_v32, %v1584_v43  ;;  %v1585_v8 = vmul.f32 %v3529_v35, %v4083_v50  ;;  %v4136_v40 = vadd.f32 %v2958_v36, %v1591_v41  ;;  %v1678_v50 = vpack.c.bf16 %v2970_v45, %v2969_v18 }
 0xebb   :  { %v3531_v38 = vpop.eup %3530  ;;  %v2043_v41 = vpack.c.bf16 %v3000_v34, %v2999_v33  ;;  %v2990_v33 = vld [vmem:[%s4439_s3 + $0x120] sm:$0xff] }
 0xebc   :  { %v4138_v13 = vadd.f32 %v2958_v36, %v1592_v37  ;;  %v1593_v42 = vmul.f32 %v2957_v32, %v1585_v8  ;;  %v1586_v9 = vmul.f32 %v3531_v38, %v4088_v53  ;;  %v2980_v53 = vld [vmem:[%s4439_s3 + $0x1b0] ss:$0 sm:$0xff] }
 0xebe   :  { %v1594_v48 = vmul.f32 %v2957_v32, %v1586_v9  ;;  %v4143_v46 = vpack.c.bf16 %v4138_v13, %v4136_v40  ;;  %v4151_v20 = vadd.f32 %v2958_v36, %v1593_v42 }
 0xec0   :  { %v4153_v47 = vadd.f32 %v2958_v36, %v1594_v48  ;;  %3324 = vmatprep.mubr.msk.bf16.mxu0 %vm245_vm13, %v4143_v46  ;;  %3340 = vmatprep.mubr.msk.bf16.mxu1 %vm245_vm13, %v4143_v46 }
 0xec2   :  { %v4161_v49 = vpack.c.bf16 %v4153_v47, %v4151_v20 }
 0xec4   :  { %3325 = vmatmul.mubr.msk.bf16.vlgmr.msra.gmra.mrb[24].mxu0 %vm245_vm13, %v4161_v49  ;;  %3341 = vmatmul.mubr.msk.bf16.vlgmr.msra.gmra.mrb[36].mxu1 %vm245_vm13, %v4161_v49 }
 0xec5   :  { %3329 = vmatpush3.bf16.msra.mxu0 %v1677_v11  ;;  %3332 = vmatprep.mubr.msk.bf16.mxu0 %vm245_vm13, %v4143_v46  ;;  %v2972_v11 = vld [vmem:[%s4439_s3 + $0x160] ss:$0 sm:$0xff] }
 0xec6   :  { %3330 = vmatprep.subr.bf16.mxu0 %v1678_v50 }
 0xec9   :  { %3331 = vmatpush3.bf16.msra.mxu0 %v1678_v50 }
 0xecc   :  { %3333 = vmatmul.mubr.msk.bf16.vlgmr.msra.gmra.mrb[28].mxu0 %vm245_vm13, %v4161_v49 }
 0xf97   :  { %v3326_v51 = vpop.f32.mrb[24].mxu0  ;;  %v3342_v52 = vpop.f32.mrb[36].mxu1 }
 0xf98   :  { %v1657_v54 = vpop.f32.mrb[25].mxu0  ;;  %v1779_v55 = vpop.f32.mrb[37].mxu1  ;;  %v1666_v58 = vadd.f32 %v3326_v51, %v2964_v19  ;;  %v1788_v59 = vadd.f32 %v3342_v52, %v2980_v53 }
 0xf99   :  { %v3327_v56 = vpop.f32.mrb[26].mxu0  ;;  %v3343_v57 = vpop.f32.mrb[38].mxu1  ;;  %v1658_v0 = vadd.f32 %v2964_v19, %v1657_v54  ;;  %v1780_v1 = vadd.f32 %v2980_v53, %v1779_v55 }
 0xf9a   :  { %v1669_v60 = vadd.f32 %v3327_v56, %v2964_v19  ;;  %v1791_v61 = vadd.f32 %v3343_v57, %v2980_v53  ;;  %v1660_v62 = vpop.f32.mrb[27].mxu0  ;;  %v1782_v63 = vpop.f32.mrb[39].mxu1 }
 0xf9b   :  { %v1661_v2 = vadd.f32 %v2964_v19, %v1660_v62  ;;  %v1783_v3 = vadd.f32 %v2980_v53, %v1782_v63  ;;  %v3002_v19 = vld [vmem:[%s4439_s3 + $0x188] ss:$0 sm:$0xff] }
 0xf9c   :  { %v1795_v4 = vpack.c.bf16 %v1669_v60, %v1666_v58  ;;  %v1914_v5 = vpack.c.bf16 %v1791_v61, %v1788_v59 }
 0xf9d   :  { %v1794_v6 = vpack.c.bf16 %v1661_v2, %v1658_v0  ;;  %v1913_v7 = vpack.c.bf16 %v1783_v3, %v1780_v1 }
 0xf9f   :  { %v3334_v10 = vpop.f32.mrb[28].mxu0  ;;  %3348 = vmatprep.mubr.msk.bf16.mxu0 %vm630_vm14, %v1794_v6  ;;  %3352 = vmatprep.subr.bf16.mxu1 %v1913_v7 }
 0xfa0   :  { %v1718_v12 = vpop.f32.mrb[29].mxu0  ;;  %3353 = vmatpush3.bf16.msra.mxu1 %v1913_v7  ;;  %v1727_v17 = vadd.f32 %v3334_v10, %v2972_v11 }
 0xfa1   :  { %v3335_v16 = vpop.f32.mrb[30].mxu0  ;;  %3354 = vmatprep.subr.bf16.mxu1 %v1914_v5  ;;  %v1719_v24 = vadd.f32 %v2972_v11, %v1718_v12 }
 0xfa2   :  { %v1730_v21 = vadd.f32 %v3335_v16, %v2972_v11  ;;  %v1721_v39 = vpop.f32.mrb[31].mxu0 }
 0xfa3   :  { %v1722_v25 = vadd.f32 %v2972_v11, %v1721_v39 }
 0xfa4   :  { %v1797_v26 = vpack.c.bf16 %v1730_v21, %v1727_v17  ;;  %3355 = vmatpush3.bf16.msra.mxu1 %v1914_v5 }
 0xfa5   :  { %v1796_v28 = vpack.c.bf16 %v1722_v25, %v1719_v24 }
 0xfa6   :  { %v1808_v32 = vsel %vm630_vm14, %v1797_v26, 0 }
 0xfa7   :  { %3458 = vmatprep.subr.msk.bf16.mxu0 %vm630_vm14, %v1796_v28  ;;  %v1805_v29 = vsel %vm630_vm14, %v1796_v28, 0 }
 0xfa8   :  { %3345 = vmatpush3.bf16.xpose.msra.mxu0 %v1805_v29 }
 0xfa9   :  { %3459 = vmatprep.subr.msk.bf16.mxu0 %vm630_vm14, %v1797_v26 }
 0xfb0   :  { %3347 = vmatpush3.bf16.xpose.msra.mxu0 %v1808_v32  ;;  %v2989_v32 = vld [vmem:[%s4439_s3 + $0x118] sm:$0xff] }
 0xfb1   :  { %3368 = vmatprep.subr.bf16.mxu0 %v2042_v31  ;;  %v1981_v34 = vpack.c.bf16 %v2990_v33, %v2989_v32 }
 0xfb3   :  { %3360 = vmatprep.subr.bf16.mxu1 %v1981_v34 }
 0xfb7   :  { %3349 = vmatmul.mubr.msk.bf16.vlgmr.msra.gmra.mrb[32].mxu0 %vm630_vm14, %v1795_v4 }
 0xfb8   :  { %3369 = vmatpush3.bf16.msra.mxu0 %v2042_v31  ;;  %3372 = vmatprep.mubr.msk.bf16.mxu0 %vm245_vm13, %v4143_v46 }
 0xfb9   :  { %3370 = vmatprep.subr.bf16.mxu0 %v2043_v41 }
 0xfbc   :  { %3371 = vmatpush3.bf16.msra.mxu0 %v2043_v41 }
 0xfbf   :  { %3373 = vmatmul.mubr.msk.bf16.vlgmr.msra.gmra.mrb[36].mxu0 %vm245_vm13, %v4161_v49 }
0x108a   :  { %v3350_v43 = vpop.f32.mrb[32].mxu0 }
0x108b   :  { %v1844_v35 = vpop.f32.mrb[33].mxu0  ;;  %v1861_v36 = vmul.f32 0.25, %v3350_v43 }
0x108c   :  { %v1859_v37 = vmul.f32 0.25, %v1844_v35  ;;  %v3351_v8 = vpop.f32.mrb[34].mxu0 }
0x108d   :  { %v1847_v38 = vpop.f32.mrb[35].mxu0  ;;  %v1862_v42 = vmul.f32 0.25, %v3351_v8  ;;  %v1865_v50 = vadd.f32 %v1861_v36, %v3877_v23 }
0x108e   :  { %v1860_v9 = vmul.f32 0.25, %v1847_v38  ;;  %v1863_v48 = vadd.f32 %v1859_v37, %v3869_v14 }
0x108f   :  { %v1866_v53 = vadd.f32 %v1862_v42, %v3880_v27  ;;  %v1873_v56 = vsel %vm245_vm13, %v1865_v50, -inf }
0x1090   :  { %v1867_v18 = vsel %vm245_vm13, %v1863_v48, -inf  ;;  %v1864_v45 = vadd.f32 %v1860_v9, %v3873_v22 }
0x1091   :  { %1868 = vmax.xlane.f32.xlu1 %v1867_v18  ;;  %v1876_v62 = vsel %vm245_vm13, %v1866_v53, -inf }
0x1092   :  { %v3374_v51 = vpop.f32.mrb[36].mxu0  ;;  %v1870_v52 = vsel %vm245_vm13, %v1864_v45, -inf }
0x1093   :  { %v2083_v54 = vpop.f32.mrb[37].mxu0  ;;  %1871 = vmax.xlane.f32.xlu0 %v1870_v52  ;;  %v2092_v57 = vadd.f32 %v3374_v51, %v3002_v19 }
0x1094   :  { %v3375_v55 = vpop.f32.mrb[38].mxu0  ;;  %v2084_v60 = vadd.f32 %v3002_v19, %v2083_v54  ;;  %v3005_v54 = vld [vmem:[%s4439_s3 + $0x1b8] sm:$0xff] }
0x1095   :  { %v2095_v58 = vadd.f32 %v3375_v55, %v3002_v19  ;;  %1874 = vmax.xlane.f32.xlu1 %v1873_v56  ;;  %v2086_v59 = vpop.f32.mrb[39].mxu0  ;;  %v3006_v55 = vld [vmem:[%s4439_s3 + $0x1c0] sm:$0xff] }
0x1096   :  { %v2087_v61 = vadd.f32 %v3002_v19, %v2086_v59  ;;  %v2103_v56 = vpack.c.bf16 %v3006_v55, %v3005_v54 }
0x1097   :  { %v2162_v63 = vpack.c.bf16 %v2095_v58, %v2092_v57  ;;  %1877 = vmax.xlane.f32.xlu0 %v1876_v62  ;;  %v3007_v57 = vld [vmem:[%s4439_s3 + $0x1c8] sm:$0xff]  ;;  %v3008_v58 = vld [vmem:[%s4439_s3 + $0x1d0] sm:$0xff] }
0x1098   :  { %v2161_v0 = vpack.c.bf16 %v2087_v61, %v2084_v60  ;;  %v2104_v59 = vpack.c.bf16 %v3008_v58, %v3007_v57 }
0x1099   :  { %v2173_v2 = vsel %vm630_vm14, %v2162_v63, 0 }
0x109a   :  { %3460 = vmatprep.subr.msk.bf16.mxu0 %vm630_vm14, %v2161_v0  ;;  %v2170_v1 = vsel %vm630_vm14, %v2161_v0, 0 }
0x109b   :  { %3385 = vmatpush3.bf16.xpose.msra.mxu0 %v2170_v1 }
0x109c   :  { %3461 = vmatprep.subr.msk.bf16.mxu0 %vm630_vm14, %v2162_v63 }
0x10a3   :  { %3387 = vmatpush3.bf16.xpose.msra.mxu0 %v2173_v2  ;;  %v2994_v2 = vld [vmem:[%s4439_s3 + $0x138] ss:$0 sm:$0xff] }
0x111e   :  { %v1869_v3 = vpop.xlane.xlu1 %1868 }
0x111f   :  { %v1879_v4 = vsub.f32 %v1863_v48, %v1869_v3 }
0x1120   :  { %v1872_v5 = vpop.xlane.xlu0 %1871 }
0x1121   :  { %v1883_v6 = vmul.f32 1.442695, %v1879_v4  ;;  %v1880_v7 = vsub.f32 %v1864_v45, %v1872_v5  ;;  %v2991_v45 = vld [vmem:[%s4439_s3 + $0x128] sm:$0xff] }
0x1122   :  { %v1875_v10 = vpop.xlane.xlu1 %1874 }
0x1123   :  { %3532 = vpow2.f32 %v1883_v6  ;;  %v1885_v11 = vmul.f32 1.442695, %v1880_v7  ;;  %v1881_v12 = vsub.f32 %v1865_v50, %v1875_v10  ;;  %v2992_v50 = vld [vmem:[%s4439_s3 + $0x130] sm:$0xff] }
0x1124   :  { %v1878_v16 = vpop.xlane.xlu0 %1877 }
0x1125   :  { %3534 = vpow2.f32 %v1885_v11  ;;  %v1887_v17 = vmul.f32 1.442695, %v1881_v12  ;;  %v1882_v21 = vsub.f32 %v1866_v53, %v1878_v16  ;;  %v1982_v53 = vpack.c.bf16 %v2992_v50, %v2991_v45 }
0x1127   :  { %3536 = vpow2.f32 %v1887_v17  ;;  %v1889_v39 = vmul.f32 1.442695, %v1882_v21  ;;  %v3010_v17 = vld [vmem:[%s4439_s3 + $0x1d8] ss:$0 sm:$0xff] }
0x1129   :  { %3538 = vpow2.f32 %v1889_v39 }
0x112d   :  { %v3533_v24 = vpop.eup %3532 }
0x112e   :  { %v1891_v25 = vsel %vm245_vm13, %v3533_v24, 0.0 }
0x112f   :  { %v3535_v26 = vpop.eup %3534  ;;  %1892 = vadd.xlane.f32.xlu1 %v1891_v25 }
0x1130   :  { %v1894_v28 = vsel %vm245_vm13, %v3535_v26, 0.0 }
0x1131   :  { %v3537_v29 = vpop.eup %3536  ;;  %1895 = vadd.xlane.f32.xlu0 %v1894_v28 }
0x1132   :  { %v1897_v15 = vsel %vm245_vm13, %v3537_v29, 0.0 }
0x1133   :  { %v3539_v30 = vpop.eup %3538  ;;  %1898 = vadd.xlane.f32.xlu1 %v1897_v15 }
0x1134   :  { %v1900_v31 = vsel %vm245_vm13, %v3539_v30, 0.0 }
0x1135   :  { %1901 = vadd.xlane.f32.xlu0 %v1900_v31 }
0x11bc   :  { %v1893_v41 = vpop.xlane.xlu1 %1892 }
0x11bd   :  { %3540 = vrcp.f32 %v1893_v41 }
0x11be   :  { %v1896_v43 = vpop.xlane.xlu0 %1895 }
0x11bf   :  { %3542 = vrcp.f32 %v1896_v43 }
0x11c0   :  { %v1899_v35 = vpop.xlane.xlu1 %1898 }
0x11c1   :  { %3544 = vrcp.f32 %v1899_v35 }
0x11c2   :  { %v1902_v36 = vpop.xlane.xlu0 %1901 }
0x11c3   :  { %3546 = vrcp.f32 %v1902_v36 }
0x11c7   :  { %v3541_v37 = vpop.eup %3540 }
0x11c8   :  { %v1907_v38 = vmul.f32 %v3541_v37, %v3533_v24 }
0x11c9   :  { %v3543_v8 = vpop.eup %3542 }
0x11ca   :  { %v1908_v42 = vmul.f32 %v3543_v8, %v3535_v26 }
0x11cb   :  { %v3545_v9 = vpop.eup %3544 }
0x11cc   :  { %v1911_v48 = vpack.c.bf16 %v1908_v42, %v1907_v38  ;;  %v1909_v51 = vmul.f32 %v3545_v9, %v3537_v29 }
0x11cd   :  { %v3547_v18 = vpop.eup %3546 }
0x11ce   :  { %v1910_v19 = vmul.f32 %v3547_v18, %v3539_v30  ;;  %3356 = vmatprep.mubr.msk.bf16.mxu1 %vm245_vm13, %v1911_v48 }
0x11d0   :  { %v1912_v52 = vpack.c.bf16 %v1910_v19, %v1909_v51 }
0x11d2   :  { %3357 = vmatmul.mubr.msk.bf16.vlgmr.msra.gmra.mrb[40].mxu1 %vm245_vm13, %v1912_v52 }
0x11d3   :  { %3361 = vmatpush3.bf16.msra.mxu1 %v1981_v34  ;;  %3364 = vmatprep.mubr.msk.bf16.mxu1 %vm245_vm13, %v4143_v46 }
0x11d4   :  { %3362 = vmatprep.subr.bf16.mxu1 %v1982_v53 }
0x11d7   :  { %3363 = vmatpush3.bf16.msra.mxu1 %v1982_v53 }
0x11d8   :  { %3376 = vmatprep.subr.bf16.mxu1 %v2103_v56 }
0x11da   :  { %3365 = vmatmul.mubr.msk.bf16.vlgmr.msra.gmra.mrb[44].mxu1 %vm245_vm13, %v4161_v49 }
0x11db   :  { %3377 = vmatpush3.bf16.msra.mxu1 %v2103_v56  ;;  %3380 = vmatprep.mubr.msk.bf16.mxu1 %vm245_vm13, %v4143_v46 }
0x11dc   :  { %3378 = vmatprep.subr.bf16.mxu1 %v2104_v59 }
0x11df   :  { %3379 = vmatpush3.bf16.msra.mxu1 %v2104_v59 }
0x11e2   :  { %3381 = vmatmul.mubr.msk.bf16.vlgmr.msra.gmra.mrb[48].mxu1 %vm245_vm13, %v4161_v49 }
0x12a5   :  { %v4255_v60 = vpop.f32.mrb[40].mxu1 }
0x12a6   :  { %v4257_v61 = vpop.f32.mrb[41].mxu1 }
0x12a7   :  { %v4259_v62 = vpop.f32.mrb[42].mxu1 }
0x12a8   :  { %v1971_v63 = vpack.c.bf16 %v4259_v62, %v4255_v60  ;;  %v4263_v0 = vpop.f32.mrb[43].mxu1 }
0x12a9   :  { %v1970_v1 = vpack.c.bf16 %v4263_v0, %v4257_v61 }
0x12ad   :  { %v3366_v46 = vpop.f32.mrb[44].mxu1 }
0x12ae   :  { %v2022_v49 = vpop.f32.mrb[45].mxu1  ;;  %v2031_v4 = vadd.f32 %v3366_v46, %v2994_v2 }
0x12af   :  { %v3367_v3 = vpop.f32.mrb[46].mxu1  ;;  %v2023_v7 = vadd.f32 %v2994_v2, %v2022_v49 }
0x12b0   :  { %v2034_v5 = vadd.f32 %v3367_v3, %v2994_v2  ;;  %v2025_v6 = vpop.f32.mrb[47].mxu1 }
0x12b1   :  { %v2026_v10 = vadd.f32 %v2994_v2, %v2025_v6  ;;  %v3018_v6 = vld [vmem:[%s4440_s4 + $0x38] sm:$0xff] }
0x12b2   :  { %v2160_v11 = vpack.c.bf16 %v2034_v5, %v2031_v4  ;;  %v3017_v5 = vld [vmem:[%s4440_s4 + $0x30] sm:$0xff] }
0x12b3   :  { %v2159_v12 = vpack.c.bf16 %v2026_v10, %v2023_v7  ;;  %v2340_v7 = vpack.c.bf16 %v3018_v6, %v3017_v5  ;;  %v3029_v5 = vld [vmem:[%s4442_s5 + $0x20] sm:$0xff]  ;;  %v3030_v6 = vld [vmem:[%s4442_s5 + $0x28] sm:$0xff] }
0x12b5   :  { %v3382_v16 = vpop.f32.mrb[48].mxu1  ;;  %3388 = vmatprep.mubr.msk.bf16.mxu0 %vm630_vm14, %v2159_v12 }
0x12b6   :  { %v2144_v21 = vpop.f32.mrb[49].mxu1  ;;  %3389 = vmatmul.mubr.msk.bf16.vlgmr.msra.gmra.mrb[40].mxu0 %vm630_vm14, %v2160_v11  ;;  %v2153_v24 = vadd.f32 %v3382_v16, %v3010_v17 }
0x12b7   :  { %v3383_v39 = vpop.f32.mrb[50].mxu1  ;;  %v2145_v28 = vadd.f32 %v3010_v17, %v2144_v21 }
0x12b8   :  { %v2156_v25 = vadd.f32 %v3383_v39, %v3010_v17  ;;  %v2147_v26 = vpop.f32.mrb[51].mxu1 }
0x12b9   :  { %v2148_v29 = vadd.f32 %v3010_v17, %v2147_v26 }
0x12ba   :  { %v2279_v15 = vpack.c.bf16 %v2156_v25, %v2153_v24 }
0x12bb   :  { %v2278_v30 = vpack.c.bf16 %v2148_v29, %v2145_v28 }
0x12bd   :  { %3392 = vmatprep.subr.bf16.mxu1 %v2278_v30 }
0x12be   :  { %3393 = vmatpush3.bf16.msra.mxu1 %v2278_v30 }
0x12bf   :  { %3394 = vmatprep.subr.bf16.mxu1 %v2279_v15 }
0x12c2   :  { %3395 = vmatpush3.bf16.msra.mxu1 %v2279_v15 }
0x12c3   :  { %3400 = vmatprep.subr.bf16.mxu1 %v2340_v7 }
0x1389   :  { %v3390_v31 = vpop.f32.mrb[40].mxu0 }
0x138a   :  { %v2209_v32 = vpop.f32.mrb[41].mxu0  ;;  %v2226_v33 = vmul.f32 0.25, %v3390_v31  ;;  %v2987_v31 = vld [vmem:[%s4440_s4 + $0x20] sm:$0xff] }
0x138b   :  { %v2224_v34 = vmul.f32 0.25, %v2209_v32  ;;  %v3391_v41 = vpop.f32.mrb[42].mxu0  ;;  %v2988_v32 = vld [vmem:[%s4440_s4 + $0x28] sm:$0xff] }
0x138c   :  { %v2212_v43 = vpop.f32.mrb[43].mxu0  ;;  %v2227_v35 = vmul.f32 0.25, %v3391_v41  ;;  %v2230_v42 = vadd.f32 %v2226_v33, %v3877_v23  ;;  %v1975_v33 = vpack.c.bf16 %v2988_v32, %v2987_v31 }
0x138d   :  { %v2225_v36 = vmul.f32 0.25, %v2212_v43  ;;  %v2228_v37 = vadd.f32 %v2224_v34, %v3869_v14 }
0x138e   :  { %v2231_v48 = vadd.f32 %v2227_v35, %v3880_v27  ;;  %v2238_v18 = vsel %vm245_vm13, %v2230_v42, -inf }
0x138f   :  { %v2232_v8 = vsel %vm245_vm13, %v2228_v37, -inf  ;;  %v2229_v38 = vadd.f32 %v2225_v36, %v3873_v22 }
0x1390   :  { %2233 = vmax.xlane.f32.xlu1 %v2232_v8  ;;  %v2241_v45 = vsel %vm245_vm13, %v2231_v48, -inf  ;;  %v3024_v8 = vld [vmem:[%s4441_s7 + $0x8] ss:$0 sm:$0xff] }
0x1391   :  { %v2235_v9 = vsel %vm245_vm13, %v2229_v38, -inf }
0x1392   :  { %2236 = vmax.xlane.f32.xlu0 %v2235_v9 }
0x1394   :  { %2239 = vmax.xlane.f32.xlu1 %v2238_v18 }
0x1396   :  { %2242 = vmax.xlane.f32.xlu0 %v2241_v45 }
0x141d   :  { %v2234_v50 = vpop.xlane.xlu1 %2233 }
0x141e   :  { %v2244_v14 = vsub.f32 %v2228_v37, %v2234_v50 }
0x141f   :  { %v2237_v51 = vpop.xlane.xlu0 %2236 }
0x1420   :  { %v2248_v19 = vmul.f32 1.442695, %v2244_v14  ;;  %v2245_v52 = vsub.f32 %v2229_v38, %v2237_v51 }
0x1421   :  { %v2240_v22 = vpop.xlane.xlu1 %2239 }
0x1422   :  { %3548 = vpow2.f32 %v2248_v19  ;;  %v2250_v23 = vmul.f32 1.442695, %v2245_v52  ;;  %v2246_v53 = vsub.f32 %v2230_v42, %v2240_v22 }
0x1423   :  { %v2243_v54 = vpop.xlane.xlu0 %2242 }
0x1424   :  { %3550 = vpow2.f32 %v2250_v23  ;;  %v2252_v55 = vmul.f32 1.442695, %v2246_v53  ;;  %v2247_v27 = vsub.f32 %v2231_v48, %v2243_v54 }
0x1426   :  { %3552 = vpow2.f32 %v2252_v55  ;;  %v2254_v56 = vmul.f32 1.442695, %v2247_v27 }
0x1428   :  { %3554 = vpow2.f32 %v2254_v56 }
0x142c   :  { %v3549_v57 = vpop.eup %3548 }
0x142d   :  { %v2256_v58 = vsel %vm245_vm13, %v3549_v57, 0.0 }
0x142e   :  { %v3551_v59 = vpop.eup %3550  ;;  %2257 = vadd.xlane.f32.xlu1 %v2256_v58 }
0x142f   :  { %v2259_v46 = vsel %vm245_vm13, %v3551_v59, 0.0 }
0x1430   :  { %v3553_v2 = vpop.eup %3552  ;;  %2260 = vadd.xlane.f32.xlu0 %v2259_v46 }
0x1431   :  { %v2262_v49 = vsel %vm245_vm13, %v3553_v2, 0.0 }
0x1432   :  { %v3555_v3 = vpop.eup %3554  ;;  %2263 = vadd.xlane.f32.xlu1 %v2262_v49 }
0x1433   :  { %v2265_v4 = vsel %vm245_vm13, %v3555_v3, 0.0 }
0x1434   :  { %2266 = vadd.xlane.f32.xlu0 %v2265_v4 }
0x14bb   :  { %v2258_v10 = vpop.xlane.xlu1 %2257 }
0x14bc   :  { %3556 = vrcp.f32 %v2258_v10  ;;  %v3031_v10 = vld [vmem:[%s4442_s5 + $0x30] sm:$0xff] }
0x14bd   :  { %v2261_v11 = vpop.xlane.xlu0 %2260 }
0x14be   :  { %3558 = vrcp.f32 %v2261_v11  ;;  %v3032_v11 = vld [vmem:[%s4442_s5 + $0x38] sm:$0xff] }
0x14bf   :  { %v2264_v12 = vpop.xlane.xlu1 %2263 }
0x14c0   :  { %3560 = vrcp.f32 %v2264_v12  ;;  %v2543_v12 = vpack.c.bf16 %v3032_v11, %v3031_v10 }
0x14c1   :  { %v2267_v16 = vpop.xlane.xlu0 %2266 }
0x14c2   :  { %3562 = vrcp.f32 %v2267_v16 }
0x14c6   :  { %v3557_v17 = vpop.eup %3556 }
0x14c7   :  { %v2272_v39 = vmul.f32 %v3557_v17, %v3549_v57 }
0x14c8   :  { %v3559_v21 = vpop.eup %3558 }
0x14c9   :  { %v2273_v24 = vmul.f32 %v3559_v21, %v3551_v59 }
0x14ca   :  { %v3561_v25 = vpop.eup %3560 }
0x14cb   :  { %v2276_v26 = vpack.c.bf16 %v2273_v24, %v2272_v39  ;;  %v2274_v29 = vmul.f32 %v3561_v25, %v3553_v2 }
0x14cc   :  { %v3563_v28 = vpop.eup %3562 }
0x14cd   :  { %v2275_v15 = vmul.f32 %v3563_v28, %v3555_v3  ;;  %3396 = vmatprep.mubr.msk.bf16.mxu1 %vm245_vm13, %v2276_v26 }
0x14cf   :  { %v2277_v30 = vpack.c.bf16 %v2275_v15, %v2274_v29 }
0x14d1   :  { %3397 = vmatmul.mubr.msk.bf16.vlgmr.msra.gmra.mrb[52].mxu1 %vm245_vm13, %v2277_v30 }
0x14d2   :  { %3401 = vmatpush3.bf16.msra.mxu1 %v2340_v7  ;;  %v2542_v7 = vpack.c.bf16 %v3030_v6, %v3029_v5 }
0x14d3   :  { %3406 = vmatprep.subr.bf16.mxu1 %v1975_v33 }
0x14d4   :  { %3412 = vmatprep.subr.bf16.mxu0 %v2542_v7 }
0x14d5   :  { %3413 = vmatpush3.bf16.msra.mxu0 %v2542_v7 }
0x14d6   :  { %3414 = vmatprep.subr.bf16.mxu0 %v2543_v12 }
0x14d9   :  { %3415 = vmatpush3.bf16.msra.mxu0 %v2543_v12 }
0x15a4   :  { %v3398_v34 = vpop.f32.mrb[52].mxu1 }
0x15a5   :  { %v2320_v41 = vpop.f32.mrb[53].mxu1 }
0x15a6   :  { %v3399_v43 = vpop.f32.mrb[54].mxu1 }
0x15a7   :  { %v2336_v35 = vpack.c.bf16 %v3399_v43, %v3398_v34  ;;  %v2323_v36 = vpop.f32.mrb[55].mxu1 }
0x15a8   :  { %v2335_v37 = vpack.c.bf16 %v2323_v36, %v2320_v41 }
0x15aa   :  { %3402 = vmatprep.mubr.msk.bf16.mxu1 %vm630_vm14, %v2335_v37  ;;  %v3028_v37 = vld [vmem:[%s4441_s7 + $0xa] ss:$0 sm:$0xff] }
0x15ab   :  { %3403 = vmatmul.mubr.msk.bf16.vlgmr.msra.gmra.mrb[56].mxu1 %vm630_vm14, %v2336_v35 }
0x15ac   :  { %3407 = vmatpush3.bf16.msra.mxu1 %v1975_v33  ;;  %3408 = vmatprep.mubr.msk.bf16.mxu1 %vm630_vm14, %v1970_v1  ;;  %v3027_v33 = vld [vmem:[%s4441_s7 + $0x9] ss:$0 sm:$0xff] }
0x15ad   :  { %3432 = vmatprep.subr.bf16.mxu1 %v3591_v44 }
0x15b7   :  { %3409 = vmatmul.mubr.msk.bf16.vlgmr.msra.gmra.mrb[56].mxu1 %vm630_vm14, %v1971_v63  ;;  %vm3593_vm14 = vmmov 0  }
0x15b8   :  { %3436 = vmatprep.mubr.msk.bf16.mxu1 %vm3593_vm14, %v3591_v44 }
0x168a   :  { %v3410_v38 = vpop.f32.mrb[56].mxu1 }
0x168b   :  { %v2436_v42 = vpop.f32.mrb[57].mxu1  ;;  %v2459_v9 = vadd.f32 %v3410_v38, %v3024_v8 }
0x168c   :  { %v2457_v48 = vadd.f32 %v3024_v8, %v2436_v42  ;;  %v3411_v18 = vpop.f32.mrb[58].mxu1 }
0x168d   :  { %v2439_v45 = vpop.f32.mrb[59].mxu1  ;;  %v2460_v61 = vadd.f32 %v3411_v18, %v3024_v8  ;;  %v2463_v62 = vadd.f32 %v2459_v9, %v4151_v20 }
0x168e   :  { %v2458_v0 = vadd.f32 %v3024_v8, %v2439_v45  ;;  %v2461_v1 = vadd.f32 %v2457_v48, %v4136_v40 }
0x168f   :  { %v2464_v14 = vadd.f32 %v2460_v61, %v4153_v47  ;;  %v2473_v51 = vsel %vm245_vm13, %v2463_v62, 0.0 }
0x1690   :  { %v2467_v50 = vsel %vm245_vm13, %v2461_v1, 0.0  ;;  %v2462_v60 = vadd.f32 %v2458_v0, %v4138_v13 }
0x1691   :  { %2468 = vadd.xlane.f32.xlu1 %v2467_v50  ;;  %v2476_v19 = vsel %vm245_vm13, %v2464_v14, 0.0 }
0x1692   :  { %v2470_v63 = vsel %vm245_vm13, %v2462_v60, 0.0 }
0x1693   :  { %2471 = vadd.xlane.f32.xlu0 %v2470_v63  ;;  %v3038_v63 = vld [vmem:[%s4443_s6 + $0x48] sm:$0xff] }
0x1695   :  { %2474 = vadd.xlane.f32.xlu1 %v2473_v51  ;;  %v3039_v51 = vld [vmem:[%s4443_s6 + $0x50] sm:$0xff] }
0x1697   :  { %2477 = vadd.xlane.f32.xlu0 %v2476_v19  ;;  %v3040_v19 = vld [vmem:[%s4443_s6 + $0x58] sm:$0xff] }
0x171e   :  { %v2469_v52 = vpop.xlane.xlu1 %2468 }
0x171f   :  { %v2479_v40 = vmul.f32 0.03125, %v2469_v52  ;;  %v2636_v52 = vpack.c.bf16 %v3040_v19, %v3039_v51 }
0x1720   :  { %v2472_v22 = vpop.xlane.xlu0 %2471 }
0x1721   :  { %v2483_v23 = vsub.f32 %v2461_v1, %v2479_v40  ;;  %v2480_v53 = vmul.f32 0.03125, %v2472_v22  ;;  %v3041_v40 = vld [vmem:[%s4443_s6 + $0x60] sm:$0xff]  ;;  %v3042_v22 = vld [vmem:[%s4443_s6 + $0x68] sm:$0xff] }
0x1722   :  { %v2475_v13 = vpop.xlane.xlu1 %2474 }
0x1723   :  { %v2484_v54 = vsub.f32 %v2462_v60, %v2480_v53  ;;  %v2481_v20 = vmul.f32 0.03125, %v2475_v13  ;;  %v2487_v55 = vmul.f32 %v2483_v23, %v2483_v23  ;;  %v3043_v53 = vld [vmem:[%s4443_s6 + $0x70] sm:$0xff]  ;;  %v3044_v13 = vld [vmem:[%s4443_s6 + $0x78] sm:$0xff] }
0x1724   :  { %v2478_v27 = vpop.xlane.xlu0 %2477 }
0x1725   :  { %v2485_v56 = vsub.f32 %v2463_v62, %v2481_v20  ;;  %v2482_v57 = vmul.f32 0.03125, %v2478_v27  ;;  %v2491_v47 = vsel %vm245_vm13, %v2487_v55, 0.0  ;;  %v2488_v58 = vmul.f32 %v2484_v54, %v2484_v54  ;;  %v3037_v62 = vld [vmem:[%s4443_s6 + $0x40] sm:$0xff]  ;;  %v3034_v20 = vld [vmem:[%s4441_s7 + $0xb] ss:$0 sm:$0xff] }
0x1726   :  { %2492 = vadd.xlane.f32.xlu1 %v2491_v47 }
0x1727   :  { %v2486_v59 = vsub.f32 %v2464_v14, %v2482_v57  ;;  %v2494_v46 = vsel %vm245_vm13, %v2488_v58, 0.0  ;;  %v2489_v2 = vmul.f32 %v2485_v56, %v2485_v56  ;;  %v2635_v14 = vpack.c.bf16 %v3038_v63, %v3037_v62 }
0x1728   :  { %2495 = vadd.xlane.f32.xlu0 %v2494_v46 }
0x1729   :  { %v2497_v49 = vsel %vm245_vm13, %v2489_v2, 0.0  ;;  %v2490_v3 = vmul.f32 %v2486_v59, %v2486_v59  ;;  %3420 = vmatprep.subr.bf16.mxu0 %v2635_v14 }
0x172a   :  { %2498 = vadd.xlane.f32.xlu1 %v2497_v49 }
0x172b   :  { %v2500_v4 = vsel %vm245_vm13, %v2490_v3, 0.0 }
0x172c   :  { %2501 = vadd.xlane.f32.xlu0 %v2500_v4 }
0x17b3   :  { %v2493_v16 = vpop.xlane.xlu1 %2492 }
0x17b4   :  { %v2503_v17 = vmul.f32 0.03125, %v2493_v16 }
0x17b5   :  { %v2496_v21 = vpop.xlane.xlu0 %2495 }
0x17b6   :  { %v2507_v39 = vadd.f32 1e-12, %v2503_v17  ;;  %v2504_v24 = vmul.f32 0.03125, %v2496_v21 }
0x17b7   :  { %v2499_v25 = vpop.xlane.xlu1 %2498 }
0x17b8   :  { %3564 = vrsqrt.f32 %v2507_v39  ;;  %v2508_v26 = vadd.f32 1e-12, %v2504_v24  ;;  %v2505_v28 = vmul.f32 0.03125, %v2499_v25 }
0x17b9   :  { %v2502_v29 = vpop.xlane.xlu0 %2501 }
0x17ba   :  { %3566 = vrsqrt.f32 %v2508_v26  ;;  %v2509_v15 = vadd.f32 1e-12, %v2505_v28  ;;  %v2506_v30 = vmul.f32 0.03125, %v2502_v29 }
0x17bc   :  { %3568 = vrsqrt.f32 %v2509_v15  ;;  %v2510_v31 = vadd.f32 1e-12, %v2506_v30 }
0x17be   :  { %3570 = vrsqrt.f32 %v2510_v31 }
0x17c2   :  { %v3565_v32 = vpop.eup %3564 }
0x17c3   :  { %v2515_v34 = vmul.f32 %v3565_v32, %v2483_v23  ;;  %v2637_v23 = vpack.c.bf16 %v3042_v22, %v3041_v40  ;;  %v3046_v32 = vld [vmem:[%s4441_s7 + $0xc] ss:$0 sm:$0xff] }
0x17c4   :  { %v3567_v41 = vpop.eup %3566 }
0x17c5   :  { %v2516_v43 = vmul.f32 %v3567_v41, %v2484_v54  ;;  %v2523_v35 = vmul.f32 %v3027_v33, %v2515_v34  ;;  %v2638_v54 = vpack.c.bf16 %v3044_v13, %v3043_v53 }
0x17c6   :  { %v3569_v36 = vpop.eup %3568 }
0x17c7   :  { %v2517_v8 = vmul.f32 %v3569_v36, %v2485_v56  ;;  %v2524_v38 = vmul.f32 %v3027_v33, %v2516_v43  ;;  %v4345_v18 = vadd.f32 %v3028_v37, %v2523_v35 }
0x17c8   :  { %v3571_v42 = vpop.eup %3570 }
0x17c9   :  { %v2525_v9 = vmul.f32 %v3027_v33, %v2517_v8  ;;  %v2518_v48 = vmul.f32 %v3571_v42, %v2486_v59  ;;  %v4347_v45 = vadd.f32 %v3028_v37, %v2524_v38 }
0x17cb   :  { %v2526_v61 = vmul.f32 %v3027_v33, %v2518_v48  ;;  %v2535_v0 = vpack.c.bf16 %v4347_v45, %v4345_v18  ;;  %v4352_v1 = vadd.f32 %v3028_v37, %v2525_v9 }
0x17cd   :  { %3416 = vmatprep.mubr.msk.bf16.mxu0 %vm245_vm13, %v2535_v0  ;;  %v4354_v50 = vadd.f32 %v3028_v37, %v2526_v61 }
0x17cf   :  { %v2536_v60 = vpack.c.bf16 %v4354_v50, %v4352_v1 }
0x17d1   :  { %3417 = vmatmul.mubr.msk.bf16.vlgmr.msra.gmra.mrb[44].mxu0 %vm245_vm13, %v2536_v60 }
0x17d2   :  { %3421 = vmatpush3.bf16.msra.mxu0 %v2635_v14 }
0x17d3   :  { %3422 = vmatprep.subr.bf16.mxu0 %v2636_v52 }
0x17d6   :  { %3423 = vmatpush3.bf16.msra.mxu0 %v2636_v52 }
0x17d7   :  { %3424 = vmatprep.subr.bf16.mxu0 %v2637_v23 }
0x17da   :  { %3425 = vmatpush3.bf16.msra.mxu0 %v2637_v23 }
0x17db   :  { %3426 = vmatprep.subr.bf16.mxu0 %v2638_v54 }
0x17de   :  { %3427 = vmatpush3.bf16.msra.mxu0 %v2638_v54 }
0x18a4   :  { %v3418_v55 = vpop.f32.mrb[44].mxu0 }
0x18a5   :  { %v2598_v27 = vadd.f32 %v3418_v55, %v3034_v20  ;;  %v2589_v56 = vpop.f32.mrb[45].mxu0 }
0x18a6   :  { %v2590_v57 = vadd.f32 %v3034_v20, %v2589_v56  ;;  %v3419_v47 = vpop.f32.mrb[46].mxu0 }
0x18a7   :  { %v2610_v58 = vmul.f32 0.70710677, %v2598_v27  ;;  %v2601_v59 = vadd.f32 %v3419_v47, %v3034_v20  ;;  %v2592_v46 = vpop.f32.mrb[47].mxu0  ;;  %v2606_v16 = vmul.f32 0.5, %v2598_v27  ;;  %v2777_v47 = vld [vmem:[%s4444_s8] sm:$0xff] }
0x18a8   :  { %v2608_v2 = vmul.f32 0.70710677, %v2590_v57  ;;  %v2593_v49 = vadd.f32 %v3034_v20, %v2592_v46  ;;  %v2604_v39 = vmul.f32 0.5, %v2590_v57  ;;  %v2779_v46 = vld [vmem:[%s4444_s8 + $0x10] sm:$0xff] }
0x18a9   :  { %3572 = verf.f32 %v2610_v58  ;;  %v2611_v3 = vmul.f32 0.70710677, %v2601_v59  ;;  %v2607_v17 = vmul.f32 0.5, %v2601_v59  ;;  %v2778_v58 = vld [vmem:[%s4444_s8 + $0x8] sm:$0xff] }
0x18aa   :  { %3574 = verf.f32 %v2608_v2  ;;  %v2609_v4 = vmul.f32 0.70710677, %v2593_v49  ;;  %v2605_v24 = vmul.f32 0.5, %v2593_v49  ;;  %v2781_v59 = vpack.c.bf16 %v2778_v58, %v2777_v47  ;;  %v2780_v2 = vld [vmem:[%s4444_s8 + $0x18] sm:$0xff] }
0x18ab   :  { %3576 = verf.f32 %v2611_v3  ;;  %v2782_v49 = vpack.c.bf16 %v2780_v2, %v2779_v46 }
0x18ac   :  { %3578 = verf.f32 %v2609_v4  ;;  %3433 = vmatpush3.bf16.msra.mxu1 %v2781_v59 }
0x18ad   :  { %3434 = vmatprep.subr.bf16.mxu1 %v3591_v44  ;;  %v3051_v44 = vld [vmem:[%s4441_s7 + $0xd] ss:$0 sm:$0xff] }
0x18b0   :  { %3435 = vmatpush3.bf16.msra.mxu1 %v2782_v49 }
0x18b3   :  { %v3573_v5 = vpop.eup %3572 }
0x18b4   :  { %v3575_v6 = vpop.eup %3574  ;;  %v2618_v7 = vadd.f32 1.0, %v3573_v5 }
0x18b5   :  { %v3577_v10 = vpop.eup %3576  ;;  %v2616_v11 = vadd.f32 1.0, %v3575_v6 }
0x18b6   :  { %v3579_v12 = vpop.eup %3578  ;;  %v2619_v21 = vadd.f32 1.0, %v3577_v10  ;;  %v2622_v26 = vmul.f32 %v2618_v7, %v2606_v16 }
0x18b7   :  { %v2617_v25 = vadd.f32 1.0, %v3579_v12  ;;  %v2620_v29 = vmul.f32 %v2616_v11, %v2604_v39 }
0x18b8   :  { %v2623_v28 = vmul.f32 %v2619_v21, %v2607_v17 }
0x18b9   :  { %v2621_v15 = vmul.f32 %v2617_v25, %v2605_v24 }
0x18ba   :  { %v2625_v30 = vpack.c.bf16 %v2623_v28, %v2622_v26  ;;  %v3052_v26 = vld [vmem:[%s4441_s7 + $0xe] ss:$0 sm:$0xff] }
0x18bb   :  { %v2624_v31 = vpack.c.bf16 %v2621_v15, %v2620_v29 }
0x18bd   :  { %3428 = vmatprep.mubr.msk.bf16.mxu0 %vm1473_vm0, %v2624_v31 }
0x18be   :  { %3429 = vmatmul.mubr.msk.bf16.vlgmr.msra.gmra.mrb[48].mxu0 %vm1473_vm0, %v2625_v30 }
0x1991   :  { %v3430_v33 = vpop.f32.mrb[48].mxu0 }
0x1992   :  { %v2693_v34 = vadd.f32 %v3430_v33, %v3046_v32  ;;  %v2684_v41 = vpop.f32.mrb[49].mxu0 }
0x1993   :  { %v3431_v43 = vpop.f32.mrb[50].mxu0  ;;  %v2685_v8 = vadd.f32 %v3046_v32, %v2684_v41 }
0x1994   :  { %v2696_v35 = vadd.f32 %v3431_v43, %v3046_v32  ;;  %v2687_v36 = vpop.f32.mrb[51].mxu0  ;;  %v2701_v37 = vadd.f32 %v2693_v34, %v4352_v1 }
0x1995   :  { %v2688_v38 = vadd.f32 %v3046_v32, %v2687_v36  ;;  %v2699_v0 = vadd.f32 %v2685_v8, %v4345_v18 }
0x1996   :  { %v2711_v42 = vsel %vm245_vm13, %v2701_v37, 0.0  ;;  %v2702_v9 = vadd.f32 %v2696_v35, %v4354_v50 }
0x1997   :  { %2712 = vadd.xlane.f32.xlu0 %v2711_v42  ;;  %v2700_v48 = vadd.f32 %v2688_v38, %v4347_v45  ;;  %v2705_v62 = vsel %vm245_vm13, %v2699_v0, 0.0 }
0x1998   :  { %v2714_v60 = vsel %vm245_vm13, %v2702_v9, 0.0 }
0x1999   :  { %v2708_v61 = vsel %vm245_vm13, %v2700_v48, 0.0 }
0x199a   :  { %2709 = vadd.xlane.f32.xlu1 %v2708_v61 }
0x199b   :  { %2715 = vadd.xlane.f32.xlu0 %v2714_v60 }
0x199e   :  { %2706 = vadd.xlane.f32.xlu1 %v2705_v62 }
0x1a24   :  { %v2713_v1 = vpop.xlane.xlu0 %2712 }
0x1a25   :  { %v2719_v63 = vmul.f32 0.03125, %v2713_v1 }
0x1a27   :  { %v2723_v14 = vsub.f32 %v2701_v37, %v2719_v63  ;;  %v2710_v51 = vpop.xlane.xlu1 %2709 }
0x1a28   :  { %v2718_v19 = vmul.f32 0.03125, %v2710_v51  ;;  %v2716_v50 = vpop.xlane.xlu0 %2715 }
0x1a29   :  { %v2720_v52 = vmul.f32 0.03125, %v2716_v50  ;;  %v2727_v40 = vmul.f32 %v2723_v14, %v2723_v14 }
0x1a2a   :  { %v2722_v45 = vsub.f32 %v2700_v48, %v2718_v19 }
0x1a2b   :  { %v2724_v22 = vsub.f32 %v2702_v9, %v2720_v52  ;;  %v2707_v23 = vpop.xlane.xlu1 %2706  ;;  %v2735_v18 = vsel %vm245_vm13, %v2727_v40, 0.0  ;;  %v3053_v40 = vld [vmem:[%s4444_s8 + $0x20] ss:$0 sm:$0xff] }
0x1a2c   :  { %v2717_v53 = vmul.f32 0.03125, %v2707_v23  ;;  %2736 = vadd.xlane.f32.xlu0 %v2735_v18  ;;  %v2726_v13 = vmul.f32 %v2722_v45, %v2722_v45 }
0x1a2d   :  { %v2728_v54 = vmul.f32 %v2724_v22, %v2724_v22 }
0x1a2e   :  { %v2721_v20 = vsub.f32 %v2699_v0, %v2717_v53  ;;  %v2732_v55 = vsel %vm245_vm13, %v2726_v13, 0.0  ;;  %v3055_v53 = vld [vmem:[%s4444_s8 + $0x21] ss:$0 sm:$0xff] }
0x1a2f   :  { %2733 = vadd.xlane.f32.xlu1 %v2732_v55  ;;  %v2738_v27 = vsel %vm245_vm13, %v2728_v54, 0.0 }
0x1a30   :  { %2739 = vadd.xlane.f32.xlu0 %v2738_v27  ;;  %v2725_v56 = vmul.f32 %v2721_v20, %v2721_v20  ;;  %v3056_v27 = vld [vmem:[%s4444_s8 + $0x22] ss:$0 sm:$0xff] }
0x1a32   :  { %v2729_v57 = vsel %vm245_vm13, %v2725_v56, 0.0 }
0x1a33   :  { %2730 = vadd.xlane.f32.xlu1 %v2729_v57 }
0x1ab9   :  { %v2737_v3 = vpop.xlane.xlu0 %2736 }
0x1aba   :  { %v2743_v4 = vmul.f32 0.03125, %v2737_v3 }
0x1abc   :  { %v2747_v5 = vadd.f32 1e-12, %v2743_v4  ;;  %v2734_v6 = vpop.xlane.xlu1 %2733 }
0x1abd   :  { %v2742_v7 = vmul.f32 0.03125, %v2734_v6  ;;  %v2740_v10 = vpop.xlane.xlu0 %2739 }
0x1abe   :  { %3580 = vrsqrt.f32 %v2747_v5  ;;  %v2744_v11 = vmul.f32 0.03125, %v2740_v10 }
0x1abf   :  { %v2746_v12 = vadd.f32 1e-12, %v2742_v7 }
0x1ac0   :  { %v2748_v16 = vadd.f32 1e-12, %v2744_v11  ;;  %v2731_v17 = vpop.xlane.xlu1 %2730 }
0x1ac1   :  { %3582 = vrsqrt.f32 %v2746_v12  ;;  %v2741_v21 = vmul.f32 0.03125, %v2731_v17 }
0x1ac2   :  { %3584 = vrsqrt.f32 %v2748_v16 }
0x1ac3   :  { %v2745_v39 = vadd.f32 1e-12, %v2741_v21 }
0x1ac5   :  { %3586 = vrsqrt.f32 %v2745_v39 }
0x1ac8   :  { %v3581_v24 = vpop.eup %3580 }
0x1ac9   :  { %v2755_v25 = vmul.f32 %v3581_v24, %v2723_v14 }
0x1acb   :  { %v3583_v28 = vpop.eup %3582  ;;  %v2763_v29 = vmul.f32 %v3051_v44, %v2755_v25 }
0x1acc   :  { %v3585_v15 = vpop.eup %3584  ;;  %v2754_v30 = vmul.f32 %v3583_v28, %v2722_v45 }
0x1acd   :  { %v2771_v31 = vadd.f32 %v3052_v26, %v2763_v29  ;;  %v2756_v32 = vmul.f32 %v3585_v15, %v2724_v22 }
0x1ace   :  { %v2762_v33 = vmul.f32 %v3051_v44, %v2754_v30 }
0x1acf   :  { %v3587_v34 = vpop.eup %3586  ;;  %v2764_v41 = vmul.f32 %v3051_v44, %v2756_v32  ;;  %v2775_v36 = vpack.c.bf16 %v2771_v31, %v2771_v31 }
0x1ad0   :  { %v2770_v43 = vadd.f32 %v3052_v26, %v2762_v33  ;;  %v2753_v35 = vmul.f32 %v3587_v34, %v2721_v20 }
0x1ad1   :  { %v2772_v37 = vadd.f32 %v3052_v26, %v2764_v41  ;;  %v2794_v61 = vunpack.c.l.b16 %v2775_v36 }
0x1ad2   :  { %v2774_v8 = vpack.c.bf16 %v2770_v43, %v2770_v43  ;;  %v2761_v38 = vmul.f32 %v3051_v44, %v2753_v35 }
0x1ad3   :  { %v2776_v42 = vpack.c.bf16 %v2772_v37, %v2772_v37  ;;  %v2799_v63 = vrot.slane %v2794_v61, 6 }
0x1ad4   :  { %v2793_v9 = vunpack.c.l.b16 %v2774_v8  ;;  %v2769_v48 = vadd.f32 %v3052_v26, %v2761_v38 }
0x1ad5   :  { %v2795_v0 = vunpack.c.l.b16 %v2776_v42 }
0x1ad6   :  { %v2773_v60 = vpack.c.bf16 %v2769_v48, %v2769_v48  ;;  %v2796_v62 = vrot.slane %v2793_v9, 7 }
0x1ad7   :  { %v2802_v51 = vrot.slane %v2795_v0, 5 }
0x1ad8   :  { %v2792_v1 = vunpack.c.l.b16 %v2773_v60 }
0x1ada   :  { %v2798_v14 = vsel %vm2797_vm1, %v2796_v62, %v2792_v1 }
0x1adb   :  { %v2801_v19 = vsel %vm2800_vm2, %v2799_v63, %v2798_v14 }
0x1adc   :  { %v2804_v50 = vsel %vm2803_vm3, %v2802_v51, %v2801_v19 }
0x1add   :  { %v2805_v52 = vpack.c.b16 %v2804_v50, %v2804_v50 }
0x1adf   :  { %3437 = vmatmul.mubr.msk.bf16.vlgmr.msra.gmra.mrb[60].mxu1 %vm245_vm13, %v2805_v52  ;;  %vm2867_vm13 = vcmask 3072  }
0x1bb2   :  { %v2843_v45 = vpop.f32.mrb[60].mxu1 }
0x1bb3   :  { %v2844_v22 = vadd.f32 %v3053_v40, %v2843_v45  ;;  %v3438_v23 = vpop.f32.mrb[61].mxu1 }
0x1bb4   :  { %v2846_v18 = vpop.f32.mrb[62].mxu1 }
0x1bb5   :  { %v2849_v13 = vmax.f32 %v2844_v22, 0.0  ;;  %v3439_v54 = vpop.f32.mrb[63].mxu1 }
0x1bb7   :  { %v2856_v20 = vmul.f32 %v3055_v53, %v2849_v13 }
0x1bb9   :  { %v2858_v55 = vsel %vm2857_vm4, %v2856_v20, 0.0 }
0x1bba   :  { %2859 = vadd.xlane.f32.xlu1 %v2858_v55 }
0x1c47   :  { %v2860_v56 = vpop.xlane.xlu1 %2859 }
0x1c48   :  { %v2865_v57 = vadd.f32 %v3056_v27, %v2860_v56 }
0x1c4a   :  { %3588 = vtanh.f32 %v2865_v57 }
0x1c54   :  { %v3589_v47 = vpop.eup %3588 }
0x1c55   :  { %2868 = vst.msk [vmem:[%s4445_s9] sm:$0xf] %vm2867_vm13, %v3589_v47 }

</bundles_post_ra>
